<compile_context>
chip_gen: v7x
topology: tpu7x:2x2x1
jax: 0.10.0
libtpu: 0.0.40
codegen_flags: <defaults>
</compile_context>

<pallas_src>
import math
from functools import partial

import jax
import jax.numpy as jnp
from jax import lax
from jax.experimental import pallas as pl
from jax.experimental.pallas import tpu as pltpu


def _gelu_exact(x):
    # exact (erf-based) GELU == torch.nn.GELU() default
    return 0.5 * x * (1.0 + lax.erf(x * (1.0 / math.sqrt(2.0))))


def _round_up(x, m):
    return ((x + m - 1) // m) * m


def _tensorcores_per_chip():
    """Best-effort: 2 on megacore chips (v4 / v5p / v7x), else 1 (v5e / v6e)."""
    try:
        kind = jax.devices()[0].device_kind.lower()
    except Exception:
        return 1
    if any(tag in kind for tag in ("v7", "7x", "v4", "v5p", "v5 p")):
        return 2
    return 1


def _pick_tm(M, tm_max, n_tc):
    """Row-tile size: as large as possible (128-aligned), whole-M when it fits, and
    split only on megacore chips so the 'parallel' grid axis has >= n_tc steps."""
    if M <= 128:
        return M                                # single full-extent block (always legal)
    tm = min(tm_max, _round_up(M, 128))
    if tm >= M:
        tm = M                                  # one block covering all rows, no tail
    if n_tc > 1:
        split = _round_up(pl.cdiv(M, n_tc), 128)
        tm = min(tm, max(128, split))
    return tm


def _make_multi_mlp_kernel(n_streams, compute_dtype):
    """Kernel computing `n_streams` independent  GELU(x @ w1 + b1) @ w2 + b2  per step.

    Ref order: x_0..x_{n-1}, (w1, b1, w2, b2) x n, o_0..o_{n-1}.
    Weights live in VMEM for the whole call; GELU intermediates never leave VMEM.
    """
    def kernel(*refs):
        xs = refs[:n_streams]
        outs = refs[len(refs) - n_streams:]
        wrefs = refs[n_streams:len(refs) - n_streams]
        for s in range(n_streams):
            x_ref = xs[s]
            w1_ref, b1_ref, w2_ref, b2_ref = wrefs[4 * s:4 * s + 4]
            o_ref = outs[s]
            x = x_ref[...].astype(compute_dtype)       # in-kernel cast (hidden under DMA)
            h = jnp.dot(x, w1_ref[...], preferred_element_type=jnp.float32)
            h = _gelu_exact(h + b1_ref[...])           # f32 bias-add + exact GELU
            y = jnp.dot(h.astype(compute_dtype), w2_ref[...],
                        preferred_element_type=jnp.float32)
            o_ref[...] = (y + b2_ref[...]).astype(o_ref.dtype)
    return kernel


def _multi_mlp(xs_2d, plist, out_dtypes, *, compute_dtype, tm_max=1024):
    """Run len(xs_2d) fused 2-layer MLPs (sharing row count M) in ONE pallas_call."""
    n = len(xs_2d)
    M, K = xs_2d[0].shape
    H = plist[0]["w1"].shape[1]
    N = plist[0]["w2"].shape[1]
    for x in xs_2d:
        assert x.shape == (M, K)
    for p in plist:
        assert p["w1"].shape == (K, H) and p["b1"].shape == (1, H)
        assert p["w2"].shape == (H, N) and p["b2"].shape == (1, N)

    n_tc = _tensorcores_per_chip()
    tm = _pick_tm(M, tm_max, n_tc)
    grid = (pl.cdiv(M, tm),)          # partial tail block (if any) is masked by Pallas

    c_bytes = jnp.dtype(compute_dtype).itemsize

    # --- CostEstimate: what actually hits HBM (native-dtype activations, bf16 weights)
    bytes_accessed = 0
    for x, od in zip(xs_2d, out_dtypes):
        bytes_accessed += M * K * jnp.dtype(x.dtype).itemsize    # activation read
        bytes_accessed += M * N * jnp.dtype(od).itemsize         # output write
    bytes_accessed += n * ((K * H + H * N) * c_bytes + (H + N) * 4)
    cost = pl.CostEstimate(
        flops=n * (2 * M * K * H + 2 * M * H * N),
        transcendentals=n * M * H,                               # erf in the fused GELU
        bytes_accessed=int(bytes_accessed),
    )

    # --- Explicit VMEM budget: double-buffered activation/output tiles + resident
    #     weights (conservatively also counted x2) + f32 intermediates, 2x headroom.
    act = sum(2 * tm * K * jnp.dtype(x.dtype).itemsize for x in xs_2d)
    act += sum(2 * tm * N * jnp.dtype(od).itemsize for od in out_dtypes)
    wgt = 2 * n * ((K * H + H * N) * c_bytes + (H + N) * 4)
    mid = n * tm * (H + N) * 4
    vmem_limit = int(min(48 * 1024 * 1024, max(16 * 1024 * 1024, 2 * (act + wgt + mid))))

    in_specs, args = [], []
    for x in xs_2d:
        in_specs.append(pl.BlockSpec((tm, K), lambda i: (i, 0)))    # pipelined rows
        args.append(x)
    for p in plist:
        # Constant index_map -> each weight/bias is DMA'd once and stays VMEM-resident.
        in_specs += [
            pl.BlockSpec((K, H), lambda i: (0, 0)),
            pl.BlockSpec((1, H), lambda i: (0, 0)),
            pl.BlockSpec((H, N), lambda i: (0, 0)),
            pl.BlockSpec((1, N), lambda i: (0, 0)),
        ]
        args += [p["w1"], p["b1"], p["w2"], p["b2"]]

    out_shape = tuple(jax.ShapeDtypeStruct((M, N), od) for od in out_dtypes)
    out_specs = tuple(pl.BlockSpec((tm, N), lambda i: (i, 0)) for _ in range(n))

    outs = pl.pallas_call(
        _make_multi_mlp_kernel(n, compute_dtype),
        out_shape=out_shape,
        grid=grid,
        in_specs=in_specs,
        out_specs=out_specs,
        compiler_params=pltpu.CompilerParams(
            dimension_semantics=("parallel",),
            vmem_limit_bytes=vmem_limit,
        ),
        cost_estimate=cost,
    )(*args)
    if not isinstance(outs, (tuple, list)):
        outs = (outs,)
    return list(outs)


def init_params(key, mm_hidden, hidden):
    """Raw f32 parameters for the three 2-layer MLPs (ori / body / face).
    PyTorch nn.Linear weights [out, in] are stored transposed here as [in, out]."""
    names = ("ori", "body", "face")
    keys = jax.random.split(key, 4 * len(names))
    s = 0.02
    params = {}
    for n, (k1, k2, k3, k4) in zip(names, zip(*(iter(keys),) * 4)):
        params[n] = {
            "w1": s * jax.random.normal(k1, (mm_hidden, hidden), jnp.float32),
            "b1": s * jax.random.normal(k2, (hidden,), jnp.float32),
            "w2": s * jax.random.normal(k3, (hidden, hidden), jnp.float32),
            "b2": s * jax.random.normal(k4, (hidden,), jnp.float32),
        }
    return params


def prepare_params(params, compute_dtype=jnp.bfloat16):
    """Pre-cast weights to the MXU compute dtype and reshape biases to [1, H].
    Do this ONCE, outside jit: the weights are reused every forward call."""
    def prep(p):
        return {
            "w1": jnp.asarray(p["w1"], compute_dtype),
            "b1": jnp.asarray(p["b1"], jnp.float32).reshape(1, -1),
            "w2": jnp.asarray(p["w2"], compute_dtype),
            "b2": jnp.asarray(p["b2"], jnp.float32).reshape(1, -1),
        }
    return {k: prep(v) for k, v in params.items()}


def all_in_one_mlp_forward(video, body, face, params, *, out_dtype=None, tm_max=1024):
    """Mirror of AllInOneMLP.forward:
         returns (mlp_ori(video), mlp_body(body), mlp_face(face)).
    `params` must come from prepare_params() (weights pre-cast, biases [1, H])."""
    order = (("ori", video), ("body", body), ("face", face))
    compute_dtype = params["ori"]["w1"].dtype
    K = params["ori"]["w1"].shape[0]
    N = params["ori"]["w2"].shape[1]

    leads, xs_2d, plist, out_dtypes = [], [], [], []
    for name, x in order:
        assert x.shape[-1] == K, f"{name}: last dim {x.shape[-1]} != mm_hidden {K}"
        lead = x.shape[:-1]
        M = math.prod(lead)
        leads.append(lead)
        xs_2d.append(x.reshape(M, K))          # no dtype cast here: kernel casts on-chip
        plist.append(params[name])
        out_dtypes.append(out_dtype if out_dtype is not None else x.dtype)

    if len({x.shape[0] for x in xs_2d}) == 1:
        # one pallas_call for all three MLPs (single launch, weights DMA'd once)
        ys = _multi_mlp(xs_2d, plist, out_dtypes,
                        compute_dtype=compute_dtype, tm_max=tm_max)
    else:
        # token counts differ between streams: one fused call per stream
        ys = [_multi_mlp([x], [p], [od], compute_dtype=compute_dtype, tm_max=tm_max)[0]
              for x, p, od in zip(xs_2d, plist, out_dtypes)]

    return tuple(y.reshape(lead + (N,)) for y, lead in zip(ys, leads))


if __name__ == "__main__":
    # Small but lane-dense config: feature dims multiple of 128 so stores are unmasked.
    mm_hidden = 128
    hidden = 128
    b, t, l = 2, 4, 64          # 512 token positions per input

    key = jax.random.PRNGKey(0)
    kv, kb, kf, kp = jax.random.split(key, 4)
    video = jax.random.normal(kv, (b, t, l, mm_hidden), jnp.float32)
    body = jax.random.normal(kb, (b, t, l, mm_hidden), jnp.float32)
    face = jax.random.normal(kf, (b, t, l, mm_hidden), jnp.float32)

    params = init_params(kp, mm_hidden, hidden)
    prepared = prepare_params(params)           # weights cast to bf16 once, outside jit

    fwd = jax.jit(partial(all_in_one_mlp_forward, params=prepared))
    mlp_ori, mlp_body, mlp_face = fwd(video, body, face)
    jax.block_until_ready((mlp_ori, mlp_body, mlp_face))

    assert mlp_ori.shape == (b, t, l, hidden)
    assert mlp_body.shape == (b, t, l, hidden)
    assert mlp_face.shape == (b, t, l, hidden)

    # f32 reference (loose tolerance: kernel computes bf16 matmuls with f32 accumulate).
    def ref_mlp(x, p):
        h = _gelu_exact(x @ p["w1"] + p["b1"])
        return h @ p["w2"] + p["b2"]

    assert jnp.allclose(mlp_ori, ref_mlp(video, params["ori"]), rtol=5e-2, atol=5e-2)
    assert jnp.allclose(mlp_body, ref_mlp(body, params["body"]), rtol=5e-2, atol=5e-2)
    assert jnp.allclose(mlp_face, ref_mlp(face, params["face"]), rtol=5e-2, atol=5e-2)

    print("KERNEL_OK")
</pallas_src>

<mosaic_0001>
module attributes {stable_mosaic.version = 11 : i64} {
  func.func @kernel(%arg0: i32, %arg1: memref<512x128xf32, #tpu.memory_space<vmem>>, %arg2: memref<512x128xf32, #tpu.memory_space<vmem>>, %arg3: memref<512x128xf32, #tpu.memory_space<vmem>>, %arg4: memref<128x128xbf16, #tpu.memory_space<vmem>>, %arg5: memref<1x128xf32, #tpu.memory_space<vmem>>, %arg6: memref<128x128xbf16, #tpu.memory_space<vmem>>, %arg7: memref<1x128xf32, #tpu.memory_space<vmem>>, %arg8: memref<128x128xbf16, #tpu.memory_space<vmem>>, %arg9: memref<1x128xf32, #tpu.memory_space<vmem>>, %arg10: memref<128x128xbf16, #tpu.memory_space<vmem>>, %arg11: memref<1x128xf32, #tpu.memory_space<vmem>>, %arg12: memref<128x128xbf16, #tpu.memory_space<vmem>>, %arg13: memref<1x128xf32, #tpu.memory_space<vmem>>, %arg14: memref<128x128xbf16, #tpu.memory_space<vmem>>, %arg15: memref<1x128xf32, #tpu.memory_space<vmem>>, %arg16: memref<512x128xf32, #tpu.memory_space<vmem>>, %arg17: memref<512x128xf32, #tpu.memory_space<vmem>>, %arg18: memref<512x128xf32, #tpu.memory_space<vmem>>) attributes {dimension_semantics = [#tpu.dimension_semantics<parallel>], iteration_bounds = array<i64: 1>, scalar_prefetch = 0 : i64, scratch_operands = 0 : i64, tpu.core_type = #tpu.core_type<tc>, window_params = [{transform_indices = @transform_0, window_bounds = array<i64: 512, 128>}, {transform_indices = @transform_1, window_bounds = array<i64: 512, 128>}, {transform_indices = @transform_2, window_bounds = array<i64: 512, 128>}, {pipeline_mode = #tpu.pipeline_mode<synchronous>, transform_indices = @transform_3, window_bounds = array<i64: 128, 128>}, {pipeline_mode = #tpu.pipeline_mode<synchronous>, transform_indices = @transform_4, window_bounds = array<i64: 1, 128>}, {pipeline_mode = #tpu.pipeline_mode<synchronous>, transform_indices = @transform_5, window_bounds = array<i64: 128, 128>}, {pipeline_mode = #tpu.pipeline_mode<synchronous>, transform_indices = @transform_6, window_bounds = array<i64: 1, 128>}, {pipeline_mode = #tpu.pipeline_mode<synchronous>, transform_indices = @transform_7, window_bounds = array<i64: 128, 128>}, {pipeline_mode = #tpu.pipeline_mode<synchronous>, transform_indices = @transform_8, window_bounds = array<i64: 1, 128>}, {pipeline_mode = #tpu.pipeline_mode<synchronous>, transform_indices = @transform_9, window_bounds = array<i64: 128, 128>}, {pipeline_mode = #tpu.pipeline_mode<synchronous>, transform_indices = @transform_10, window_bounds = array<i64: 1, 128>}, {pipeline_mode = #tpu.pipeline_mode<synchronous>, transform_indices = @transform_11, window_bounds = array<i64: 128, 128>}, {pipeline_mode = #tpu.pipeline_mode<synchronous>, transform_indices = @transform_12, window_bounds = array<i64: 1, 128>}, {pipeline_mode = #tpu.pipeline_mode<synchronous>, transform_indices = @transform_13, window_bounds = array<i64: 128, 128>}, {pipeline_mode = #tpu.pipeline_mode<synchronous>, transform_indices = @transform_14, window_bounds = array<i64: 1, 128>}, {transform_indices = @transform_15, window_bounds = array<i64: 512, 128>}, {transform_indices = @transform_16, window_bounds = array<i64: 512, 128>}, {transform_indices = @transform_17, window_bounds = array<i64: 512, 128>}]} {
    %c0 = arith.constant 0 : index
    %c0_0 = arith.constant 0 : index
    %0 = vector.load %arg1[%c0, %c0_0] : memref<512x128xf32, #tpu.memory_space<vmem>>, vector<512x128xf32>
    %1 = arith.truncf %0 : vector<512x128xf32> to vector<512x128xbf16>
    %c0_1 = arith.constant 0 : index
    %c0_2 = arith.constant 0 : index
    %2 = vector.load %arg4[%c0_1, %c0_2] : memref<128x128xbf16, #tpu.memory_space<vmem>>, vector<128x128xbf16>
    %cst = arith.constant dense<0.000000e+00> : vector<512x128xf32>
    %3 = tpu.matmul %1, %2, %cst {dimension_numbers = #tpu.dot_dimension_numbers<[1], [0], [0], [1], [0, 0, 1, 1], [], []>} : vector<512x128xbf16>, vector<128x128xbf16>, vector<512x128xf32> -> vector<512x128xf32>
    %c0_3 = arith.constant 0 : index
    %c0_4 = arith.constant 0 : index
    %4 = vector.load %arg5[%c0_3, %c0_4] : memref<1x128xf32, #tpu.memory_space<vmem>>, vector<1x128xf32>
    %5 = vector.broadcast %4 : vector<1x128xf32> to vector<512x128xf32>
    %6 = arith.addf %3, %5 : vector<512x128xf32>
    %cst_5 = arith.constant 5.000000e-01 : f32
    %7 = vector.broadcast %cst_5 : f32 to vector<512x128xf32>
    %8 = arith.mulf %7, %6 : vector<512x128xf32>
    %cst_6 = arith.constant 0.707106769 : f32
    %9 = vector.broadcast %cst_6 : f32 to vector<512x128xf32>
    %10 = arith.mulf %6, %9 : vector<512x128xf32>
    %11 = math.erf %10 : vector<512x128xf32>
    %cst_7 = arith.constant 1.000000e+00 : f32
    %12 = vector.broadcast %cst_7 : f32 to vector<512x128xf32>
    %13 = arith.addf %12, %11 : vector<512x128xf32>
    %14 = arith.mulf %8, %13 : vector<512x128xf32>
    %15 = arith.truncf %14 : vector<512x128xf32> to vector<512x128xbf16>
    %c0_8 = arith.constant 0 : index
    %c0_9 = arith.constant 0 : index
    %16 = vector.load %arg6[%c0_8, %c0_9] : memref<128x128xbf16, #tpu.memory_space<vmem>>, vector<128x128xbf16>
    %cst_10 = arith.constant dense<0.000000e+00> : vector<512x128xf32>
    %17 = tpu.matmul %15, %16, %cst_10 {dimension_numbers = #tpu.dot_dimension_numbers<[1], [0], [0], [1], [0, 0, 1, 1], [], []>} : vector<512x128xbf16>, vector<128x128xbf16>, vector<512x128xf32> -> vector<512x128xf32>
    %c0_11 = arith.constant 0 : index
    %c0_12 = arith.constant 0 : index
    %18 = vector.load %arg7[%c0_11, %c0_12] : memref<1x128xf32, #tpu.memory_space<vmem>>, vector<1x128xf32>
    %19 = vector.broadcast %18 : vector<1x128xf32> to vector<512x128xf32>
    %20 = arith.addf %17, %19 : vector<512x128xf32>
    %c0_13 = arith.constant 0 : index
    %c0_14 = arith.constant 0 : index
    %21 = vector.load %arg16[%c0_13, %c0_14] : memref<512x128xf32, #tpu.memory_space<vmem>>, vector<512x128xf32>
    tpu.vector_store %arg16[%c0_13, %c0_14], %20 {strides = array<i32>} : memref<512x128xf32, #tpu.memory_space<vmem>>, vector<512x128xf32>,
    %c0_15 = arith.constant 0 : index
    %c0_16 = arith.constant 0 : index
    %22 = vector.load %arg2[%c0_15, %c0_16] : memref<512x128xf32, #tpu.memory_space<vmem>>, vector<512x128xf32>
    %23 = arith.truncf %22 : vector<512x128xf32> to vector<512x128xbf16>
    %c0_17 = arith.constant 0 : index
    %c0_18 = arith.constant 0 : index
    %24 = vector.load %arg8[%c0_17, %c0_18] : memref<128x128xbf16, #tpu.memory_space<vmem>>, vector<128x128xbf16>
    %cst_19 = arith.constant dense<0.000000e+00> : vector<512x128xf32>
    %25 = tpu.matmul %23, %24, %cst_19 {dimension_numbers = #tpu.dot_dimension_numbers<[1], [0], [0], [1], [0, 0, 1, 1], [], []>} : vector<512x128xbf16>, vector<128x128xbf16>, vector<512x128xf32> -> vector<512x128xf32>
    %c0_20 = arith.constant 0 : index
    %c0_21 = arith.constant 0 : index
    %26 = vector.load %arg9[%c0_20, %c0_21] : memref<1x128xf32, #tpu.memory_space<vmem>>, vector<1x128xf32>
    %27 = vector.broadcast %26 : vector<1x128xf32> to vector<512x128xf32>
    %28 = arith.addf %25, %27 : vector<512x128xf32>
    %cst_22 = arith.constant 5.000000e-01 : f32
    %29 = vector.broadcast %cst_22 : f32 to vector<512x128xf32>
    %30 = arith.mulf %29, %28 : vector<512x128xf32>
    %cst_23 = arith.constant 0.707106769 : f32
    %31 = vector.broadcast %cst_23 : f32 to vector<512x128xf32>
    %32 = arith.mulf %28, %31 : vector<512x128xf32>
    %33 = math.erf %32 : vector<512x128xf32>
    %cst_24 = arith.constant 1.000000e+00 : f32
    %34 = vector.broadcast %cst_24 : f32 to vector<512x128xf32>
    %35 = arith.addf %34, %33 : vector<512x128xf32>
    %36 = arith.mulf %30, %35 : vector<512x128xf32>
    %37 = arith.truncf %36 : vector<512x128xf32> to vector<512x128xbf16>
    %c0_25 = arith.constant 0 : index
    %c0_26 = arith.constant 0 : index
    %38 = vector.load %arg10[%c0_25, %c0_26] : memref<128x128xbf16, #tpu.memory_space<vmem>>, vector<128x128xbf16>
    %cst_27 = arith.constant dense<0.000000e+00> : vector<512x128xf32>
    %39 = tpu.matmul %37, %38, %cst_27 {dimension_numbers = #tpu.dot_dimension_numbers<[1], [0], [0], [1], [0, 0, 1, 1], [], []>} : vector<512x128xbf16>, vector<128x128xbf16>, vector<512x128xf32> -> vector<512x128xf32>
    %c0_28 = arith.constant 0 : index
    %c0_29 = arith.constant 0 : index
    %40 = vector.load %arg11[%c0_28, %c0_29] : memref<1x128xf32, #tpu.memory_space<vmem>>, vector<1x128xf32>
    %41 = vector.broadcast %40 : vector<1x128xf32> to vector<512x128xf32>
    %42 = arith.addf %39, %41 : vector<512x128xf32>
    %c0_30 = arith.constant 0 : index
    %c0_31 = arith.constant 0 : index
    %43 = vector.load %arg17[%c0_30, %c0_31] : memref<512x128xf32, #tpu.memory_space<vmem>>, vector<512x128xf32>
    tpu.vector_store %arg17[%c0_30, %c0_31], %42 {strides = array<i32>} : memref<512x128xf32, #tpu.memory_space<vmem>>, vector<512x128xf32>,
    %c0_32 = arith.constant 0 : index
    %c0_33 = arith.constant 0 : index
    %44 = vector.load %arg3[%c0_32, %c0_33] : memref<512x128xf32, #tpu.memory_space<vmem>>, vector<512x128xf32>
    %45 = arith.truncf %44 : vector<512x128xf32> to vector<512x128xbf16>
    %c0_34 = arith.constant 0 : index
    %c0_35 = arith.constant 0 : index
    %46 = vector.load %arg12[%c0_34, %c0_35] : memref<128x128xbf16, #tpu.memory_space<vmem>>, vector<128x128xbf16>
    %cst_36 = arith.constant dense<0.000000e+00> : vector<512x128xf32>
    %47 = tpu.matmul %45, %46, %cst_36 {dimension_numbers = #tpu.dot_dimension_numbers<[1], [0], [0], [1], [0, 0, 1, 1], [], []>} : vector<512x128xbf16>, vector<128x128xbf16>, vector<512x128xf32> -> vector<512x128xf32>
    %c0_37 = arith.constant 0 : index
    %c0_38 = arith.constant 0 : index
    %48 = vector.load %arg13[%c0_37, %c0_38] : memref<1x128xf32, #tpu.memory_space<vmem>>, vector<1x128xf32>
    %49 = vector.broadcast %48 : vector<1x128xf32> to vector<512x128xf32>
    %50 = arith.addf %47, %49 : vector<512x128xf32>
    %cst_39 = arith.constant 5.000000e-01 : f32
    %51 = vector.broadcast %cst_39 : f32 to vector<512x128xf32>
    %52 = arith.mulf %51, %50 : vector<512x128xf32>
    %cst_40 = arith.constant 0.707106769 : f32
    %53 = vector.broadcast %cst_40 : f32 to vector<512x128xf32>
    %54 = arith.mulf %50, %53 : vector<512x128xf32>
    %55 = math.erf %54 : vector<512x128xf32>
    %cst_41 = arith.constant 1.000000e+00 : f32
    %56 = vector.broadcast %cst_41 : f32 to vector<512x128xf32>
    %57 = arith.addf %56, %55 : vector<512x128xf32>
    %58 = arith.mulf %52, %57 : vector<512x128xf32>
    %59 = arith.truncf %58 : vector<512x128xf32> to vector<512x128xbf16>
    %c0_42 = arith.constant 0 : index
    %c0_43 = arith.constant 0 : index
    %60 = vector.load %arg14[%c0_42, %c0_43] : memref<128x128xbf16, #tpu.memory_space<vmem>>, vector<128x128xbf16>
    %cst_44 = arith.constant dense<0.000000e+00> : vector<512x128xf32>
    %61 = tpu.matmul %59, %60, %cst_44 {dimension_numbers = #tpu.dot_dimension_numbers<[1], [0], [0], [1], [0, 0, 1, 1], [], []>} : vector<512x128xbf16>, vector<128x128xbf16>, vector<512x128xf32> -> vector<512x128xf32>
    %c0_45 = arith.constant 0 : index
    %c0_46 = arith.constant 0 : index
    %62 = vector.load %arg15[%c0_45, %c0_46] : memref<1x128xf32, #tpu.memory_space<vmem>>, vector<1x128xf32>
    %63 = vector.broadcast %62 : vector<1x128xf32> to vector<512x128xf32>
    %64 = arith.addf %61, %63 : vector<512x128xf32>
    %c0_47 = arith.constant 0 : index
    %c0_48 = arith.constant 0 : index
    %65 = vector.load %arg18[%c0_47, %c0_48] : memref<512x128xf32, #tpu.memory_space<vmem>>, vector<512x128xf32>
    tpu.vector_store %arg18[%c0_47, %c0_48], %64 {strides = array<i32>} : memref<512x128xf32, #tpu.memory_space<vmem>>, vector<512x128xf32>,
    return
  }
  func.func @transform_0(%arg0: i32) -> (i32, i32) {
    %c0_i32 = arith.constant 0 : i32
    %c0_i32_0 = arith.constant 0 : i32
    return %arg0, %c0_i32 : i32, i32
  }
  func.func @transform_1(%arg0: i32) -> (i32, i32) {
    %c0_i32 = arith.constant 0 : i32
    %c0_i32_0 = arith.constant 0 : i32
    return %arg0, %c0_i32 : i32, i32
  }
  func.func @transform_2(%arg0: i32) -> (i32, i32) {
    %c0_i32 = arith.constant 0 : i32
    %c0_i32_0 = arith.constant 0 : i32
    return %arg0, %c0_i32 : i32, i32
  }
  func.func @transform_3(%arg0: i32) -> (i32, i32) {
    %c0_i32 = arith.constant 0 : i32
    %c0_i32_0 = arith.constant 0 : i32
    %c0_i32_1 = arith.constant 0 : i32
    return %c0_i32, %c0_i32_0 : i32, i32
  }
  func.func @transform_4(%arg0: i32) -> (i32, i32) {
    %c0_i32 = arith.constant 0 : i32
    %c0_i32_0 = arith.constant 0 : i32
    %c0_i32_1 = arith.constant 0 : i32
    return %c0_i32, %c0_i32_0 : i32, i32
  }
  func.func @transform_5(%arg0: i32) -> (i32, i32) {
    %c0_i32 = arith.constant 0 : i32
    %c0_i32_0 = arith.constant 0 : i32
    %c0_i32_1 = arith.constant 0 : i32
    return %c0_i32, %c0_i32_0 : i32, i32
  }
  func.func @transform_6(%arg0: i32) -> (i32, i32) {
    %c0_i32 = arith.constant 0 : i32
    %c0_i32_0 = arith.constant 0 : i32
    %c0_i32_1 = arith.constant 0 : i32
    return %c0_i32, %c0_i32_0 : i32, i32
  }
  func.func @transform_7(%arg0: i32) -> (i32, i32) {
    %c0_i32 = arith.constant 0 : i32
    %c0_i32_0 = arith.constant 0 : i32
    %c0_i32_1 = arith.constant 0 : i32
    return %c0_i32, %c0_i32_0 : i32, i32
  }
  func.func @transform_8(%arg0: i32) -> (i32, i32) {
    %c0_i32 = arith.constant 0 : i32
    %c0_i32_0 = arith.constant 0 : i32
    %c0_i32_1 = arith.constant 0 : i32
    return %c0_i32, %c0_i32_0 : i32, i32
  }
  func.func @transform_9(%arg0: i32) -> (i32, i32) {
    %c0_i32 = arith.constant 0 : i32
    %c0_i32_0 = arith.constant 0 : i32
    %c0_i32_1 = arith.constant 0 : i32
    return %c0_i32, %c0_i32_0 : i32, i32
  }
  func.func @transform_10(%arg0: i32) -> (i32, i32) {
    %c0_i32 = arith.constant 0 : i32
    %c0_i32_0 = arith.constant 0 : i32
    %c0_i32_1 = arith.constant 0 : i32
    return %c0_i32, %c0_i32_0 : i32, i32
  }
  func.func @transform_11(%arg0: i32) -> (i32, i32) {
    %c0_i32 = arith.constant 0 : i32
    %c0_i32_0 = arith.constant 0 : i32
    %c0_i32_1 = arith.constant 0 : i32
    return %c0_i32, %c0_i32_0 : i32, i32
  }
  func.func @transform_12(%arg0: i32) -> (i32, i32) {
    %c0_i32 = arith.constant 0 : i32
    %c0_i32_0 = arith.constant 0 : i32
    %c0_i32_1 = arith.constant 0 : i32
    return %c0_i32, %c0_i32_0 : i32, i32
  }
  func.func @transform_13(%arg0: i32) -> (i32, i32) {
    %c0_i32 = arith.constant 0 : i32
    %c0_i32_0 = arith.constant 0 : i32
    %c0_i32_1 = arith.constant 0 : i32
    return %c0_i32, %c0_i32_0 : i32, i32
  }
  func.func @transform_14(%arg0: i32) -> (i32, i32) {
    %c0_i32 = arith.constant 0 : i32
    %c0_i32_0 = arith.constant 0 : i32
    %c0_i32_1 = arith.constant 0 : i32
    return %c0_i32, %c0_i32_0 : i32, i32
  }
  func.func @transform_15(%arg0: i32) -> (i32, i32) {
    %c0_i32 = arith.constant 0 : i32
    %c0_i32_0 = arith.constant 0 : i32
    return %arg0, %c0_i32 : i32, i32
  }
  func.func @transform_16(%arg0: i32) -> (i32, i32) {
    %c0_i32 = arith.constant 0 : i32
    %c0_i32_0 = arith.constant 0 : i32
    return %arg0, %c0_i32 : i32, i32
  }
  func.func @transform_17(%arg0: i32) -> (i32, i32) {
    %c0_i32 = arith.constant 0 : i32
    %c0_i32_0 = arith.constant 0 : i32
    return %arg0, %c0_i32 : i32, i32
  }
}

</mosaic_0001>

<bundles_post_ra>
// kernel: all_in_one_mlp_forward.1
= control target key start
LH: loop header
LB: loop body
LE: loop exit
PB: predicated region body
PF: predicated region fallthrough
CT: control target
= control target key end

     0   :  { %s6914_s0 = inlined_call_operand.hbm [shape: f32[512,128], index: 0, kind: input, shape index: {}]   ;;  %s6915_s1 = inlined_call_operand.hbm [shape: f32[512,128], index: 1, kind: input, shape index: {}]   ;;  %s6916_s2 = inlined_call_operand.hbm [shape: f32[512,128], index: 2, kind: input, shape index: {}]   ;;  %s6917_s3 = inlined_call_operand.hbm [shape: bf16[128,128], index: 3, kind: input, shape index: {}]   ;;  %s6918_s4 = inlined_call_operand.vmem [shape: f32[1,128], index: 4, kind: input, shape index: {}]   ;;  %s6919_s5 = inlined_call_operand.hbm [shape: bf16[128,128], index: 5, kind: input, shape index: {}]   ;;  %s6920_s6 = inlined_call_operand.vmem [shape: f32[1,128], index: 6, kind: input, shape index: {}]   ;;  %s6921_s7 = inlined_call_operand.hbm [shape: bf16[128,128], index: 7, kind: input, shape index: {}]   ;;  %s6922_s8 = inlined_call_operand.vmem [shape: f32[1,128], index: 8, kind: input, shape index: {}]   ;;  %s6923_s9 = inlined_call_operand.hbm [shape: bf16[128,128], index: 9, kind: input, shape index: {}]   ;;  %s6924_s10 = inlined_call_operand.vmem [shape: f32[1,128], index: 10, kind: input, shape index: {}]   ;;  %s6925_s11 = inlined_call_operand.hbm [shape: bf16[128,128], index: 11, kind: input, shape index: {}]   ;;  %s6926_s12 = inlined_call_operand.vmem [shape: f32[1,128], index: 12, kind: input, shape index: {}]   ;;  %s6927_s13 = inlined_call_operand.vmem [shape: bf16[128,128], index: 13, kind: input, shape index: {}]   ;;  %s6928_s14 = inlined_call_operand.vmem [shape: f32[1,128], index: 14, kind: input, shape index: {}]   ;;  %s6929_s15 = inlined_call_operand.hbm [shape: f32[512,128], index: 15, kind: output, shape index: {0}]   ;;  %s6930_s16 = inlined_call_operand.hbm [shape: f32[512,128], index: 16, kind: output, shape index: {1}]   ;;  %s6931_s17 = inlined_call_operand.hbm [shape: f32[512,128], index: 17, kind: output, shape index: {2}]  }
   0x1   :  { %6941 = sst [smem:[#allocation27_spill]] %s6914_s0 }
   0x2   :  { %6942 = sst [smem:[#allocation28_spill]] %s6915_s1 }
   0x3   :  { %6943 = sst [smem:[#allocation29_spill]] %s6931_s17 }
   0x4   :  { %23 = vsyncpa [#allocation3], 0 }
   0x5   :  { %24 = vsyncpa [#allocation6], 0 }
   0x6   :  { %25 = vsyncpa [#allocation9], 0 }
   0x7   :  { %26 = vsyncpa [#allocation12], 0 }
   0x8   :  { %27 = vsyncpa [#allocation15], 0 }
   0x9   :  { %28 = vsyncpa [#allocation4], 0 }
   0xa   :  { %29 = vsyncpa [#allocation18], 0  ;;  %s5395_s24 = smov [#allocation5]   ;;  %s5396_s26 = smov [#allocation8]  }
   0xb   :  { %s47_s25 = sshll.u32 %s5395_s24, 4  ;;  %s71_s27 = sshll.u32 %s5396_s26, 4  ;;  %s48_s25 = int_to_ptr.vmem [resolvable:$true] %s47_s25  ;;  %s5500_s27 = int_to_ptr.vmem [resolvable:$true] %s71_s27 }
   0xc   :  { %s6944_s0 = sld [smem:[#allocation28_spill]] }
  0x12   :  { %s5139_s30 = scalar_lea.hbm %s6944_s0, 8192 }
  0x13   :  { %p5140_p0 = scmp.ne.s32.totalorder %s6944_s0, %s5139_s30  ;;  %p5143_p1 = scmp.lt.u32.totalorder %s5139_s30, %s6944_s0 }
  0x15   :  { %p5145_p2 = pnand %p5143_p1, %p5140_p0 }
  0x17   :  { %5148 = shalt.err (!%p5145_p2)
}
  0x18   :  { %s5149_s21 = scalar_lea.vmem %s48_s25, 8192  ;;  %p5154_p4 = scmp.lt.s32.totalorder %s48_s25, %s48_s25 }
  0x19   :  { %p5150_p3 = scmp.ne.s32.totalorder %s48_s25, %s5149_s21  ;;  %p5155_p5 = scmp.lt.s32.totalorder %s5149_s21, %s5149_s21 }
  0x1b   :  { %p5156_p6 = por %p5155_p5, %p5154_p4 }
  0x1d   :  { %p5157_p7 = pnand %p5156_p6, %p5150_p3 }
  0x1f   :  { %5160 = shalt.err (!%p5157_p7)
}
  0x20   :  { %s6934_s22 = smov 128   ;;  %s6936_s23 = smov 8  }
  0x21   :  { %53 = dma.hbm_to_vmem [thread:$0]  %s6944_s0, 8192, %s48_s25, [#allocation6], %s6934_s22, %s6934_s22, %s6936_s23  }
  0x22   :  { %s5161_s30 = scalar_lea.hbm %s6917_s3, 1024 }
  0x23   :  { %p5162_p8 = scmp.ne.s32.totalorder %s6917_s3, %s5161_s30  ;;  %p5165_p9 = scmp.lt.u32.totalorder %s5161_s30, %s6917_s3 }
  0x25   :  { %p5167_p10 = pnand %p5165_p9, %p5162_p8 }
  0x27   :  { %5170 = shalt.err (!%p5167_p10)
}
  0x28   :  { %s5171_s21 = scalar_lea.vmem %s5500_s27, 1024  ;;  %p5176_p12 = scmp.lt.s32.totalorder %s5500_s27, %s5500_s27 }
  0x29   :  { %p5172_p11 = scmp.ne.s32.totalorder %s5500_s27, %s5171_s21  ;;  %p5177_p13 = scmp.lt.s32.totalorder %s5171_s21, %s5171_s21 }
  0x2b   :  { %p5178_p0 = por %p5177_p13, %p5176_p12 }
  0x2d   :  { %p5179_p1 = pnand %p5178_p0, %p5172_p11 }
  0x2f   :  { %5182 = shalt.err (!%p5179_p1)
}
  0x30   :  { %s6939_s25 = smov 64   ;;  %s5400_s0 = smov 4  }
  0x31   :  { %77 = dma.hbm_to_vmem [thread:$0]  %s6917_s3, 1024, %s5500_s27, [#allocation9], %s6939_s25, %s6939_s25, %s5400_s0  }
  0x32   :  { %s5401_s28 = smov [#allocation11]   ;;  %s5402_s30 = smov [#allocation2]  }
  0x33   :  { %s99_s29 = sshll.u32 %s5401_s28, 4  ;;  %s35_s18 = sshll.u32 %s5402_s30, 4  ;;  %s100_s29 = int_to_ptr.vmem [resolvable:$true] %s99_s29  ;;  %s5537_s18 = int_to_ptr.vmem [resolvable:$true] %s35_s18 }
  0x34   :  { %s5183_s20 = scalar_lea.hbm %s6921_s7, 1024 }
  0x35   :  { %p5184_p2 = scmp.ne.s32.totalorder %s6921_s7, %s5183_s20  ;;  %p5187_p3 = scmp.lt.u32.totalorder %s5183_s20, %s6921_s7 }
  0x37   :  { %p5189_p4 = pnand %p5187_p3, %p5184_p2 }
  0x39   :  { %5192 = shalt.err (!%p5189_p4)
}
  0x3a   :  { %s5193_s3 = scalar_lea.vmem %s100_s29, 1024  ;;  %p5198_p6 = scmp.lt.s32.totalorder %s100_s29, %s100_s29 }
  0x3b   :  { %p5194_p5 = scmp.ne.s32.totalorder %s100_s29, %s5193_s3  ;;  %p5199_p7 = scmp.lt.s32.totalorder %s5193_s3, %s5193_s3 }
  0x3d   :  { %p5200_p8 = por %p5199_p7, %p5198_p6 }
  0x3f   :  { %p5201_p9 = pnand %p5200_p8, %p5194_p5 }
  0x41   :  { %5204 = shalt.err (!%p5201_p9)
}
  0x42   :  { %105 = dma.hbm_to_vmem [thread:$0]  %s6921_s7, 1024, %s100_s29, [#allocation12], %s6939_s25, %s6939_s25, %s5400_s0  }
  0x43   :  { %s6945_s17 = sld [smem:[#allocation27_spill]] }
  0x49   :  { %s5205_s23 = scalar_lea.hbm %s6945_s17, 8192 }
  0x4a   :  { %p5206_p10 = scmp.ne.s32.totalorder %s6945_s17, %s5205_s23  ;;  %p5209_p11 = scmp.lt.u32.totalorder %s5205_s23, %s6945_s17 }
  0x4c   :  { %p5211_p12 = pnand %p5209_p11, %p5206_p10 }
  0x4e   :  { %5214 = shalt.err (!%p5211_p12)
}
  0x4f   :  { %s5215_s20 = scalar_lea.vmem %s5537_s18, 8192  ;;  %p5220_p0 = scmp.lt.s32.totalorder %s5537_s18, %s5537_s18 }
  0x50   :  { %p5216_p13 = scmp.ne.s32.totalorder %s5537_s18, %s5215_s20  ;;  %p5221_p1 = scmp.lt.s32.totalorder %s5215_s20, %s5215_s20 }
  0x52   :  { %p5222_p2 = por %p5221_p1, %p5220_p0 }
  0x54   :  { %p5223_p3 = pnand %p5222_p2, %p5216_p13 }
  0x56   :  { %5226 = shalt.err (!%p5223_p3)
}
  0x57   :  { %s6946_s7 = smov 8   ;;  %s6947_s29 = smov 128  }
  0x58   :  { %41 = dma.hbm_to_vmem [thread:$0]  %s6945_s17, 8192, %s5537_s18, [#allocation3], %s6947_s29, %s6947_s29, %s6946_s7  }
  0x59   :  { %s5403_s27 = smov [#allocation7]   ;;  %s5404_s22 = smov [#allocation10]  }
  0x5a   :  { %s59_s24 = sshll.u32 %s5403_s27, 4  ;;  %s85_s26 = sshll.u32 %s5404_s22, 4  ;;  %s60_s24 = int_to_ptr.vmem [resolvable:$true] %s59_s24  ;;  %s5574_s26 = int_to_ptr.vmem [resolvable:$true] %s85_s26 }
  0x5b   :  { %s5227_s30 = scalar_lea.hbm %s6916_s2, 8192 }
  0x5c   :  { %p5228_p4 = scmp.ne.s32.totalorder %s6916_s2, %s5227_s30  ;;  %p5231_p5 = scmp.lt.u32.totalorder %s5227_s30, %s6916_s2 }
  0x5e   :  { %p5233_p6 = pnand %p5231_p5, %p5228_p4 }
  0x60   :  { %5236 = shalt.err (!%p5233_p6)
}
  0x61   :  { %s5237_s18 = scalar_lea.vmem %s60_s24, 8192  ;;  %p5242_p8 = scmp.lt.s32.totalorder %s60_s24, %s60_s24 }
  0x62   :  { %p5238_p7 = scmp.ne.s32.totalorder %s60_s24, %s5237_s18  ;;  %p5243_p9 = scmp.lt.s32.totalorder %s5237_s18, %s5237_s18 }
  0x64   :  { %p5244_p10 = por %p5243_p9, %p5242_p8 }
  0x66   :  { %p5245_p11 = pnand %p5244_p10, %p5238_p7 }
  0x68   :  { %5248 = shalt.err (!%p5245_p11)
}
  0x69   :  { %65 = dma.hbm_to_vmem [thread:$0]  %s6916_s2, 8192, %s60_s24, [#allocation6], %s6947_s29, %s6947_s29, %s6946_s7  }
  0x6a   :  { %s5249_s25 = scalar_lea.hbm %s6919_s5, 1024 }
  0x6b   :  { %p5250_p12 = scmp.ne.s32.totalorder %s6919_s5, %s5249_s25  ;;  %p5253_p13 = scmp.lt.u32.totalorder %s5249_s25, %s6919_s5 }
  0x6d   :  { %p5255_p0 = pnand %p5253_p13, %p5250_p12 }
  0x6f   :  { %5258 = shalt.err (!%p5255_p0)
}
  0x70   :  { %s5259_s19 = scalar_lea.vmem %s5574_s26, 1024  ;;  %p5264_p2 = scmp.lt.s32.totalorder %s5574_s26, %s5574_s26 }
  0x71   :  { %p5260_p1 = scmp.ne.s32.totalorder %s5574_s26, %s5259_s19  ;;  %p5265_p3 = scmp.lt.s32.totalorder %s5259_s19, %s5259_s19 }
  0x73   :  { %p5266_p4 = por %p5265_p3, %p5264_p2 }
  0x75   :  { %p5267_p5 = pnand %p5266_p4, %p5260_p1 }
  0x77   :  { %5270 = shalt.err (!%p5267_p5)
}
  0x78   :  { %s6948_s2 = smov 64   ;;  %s5405_s20 = smov [#allocation13]  }
  0x79   :  { %91 = dma.hbm_to_vmem [thread:$0]  %s6919_s5, 1024, %s5574_s26, [#allocation9], %s6948_s2, %s6948_s2, %s5400_s0  }
  0x7a   :  { %s113_s18 = sshll.u32 %s5405_s20, 4  ;;  %s5406_s17 = smov [#allocation14]   ;;  %s114_s18 = int_to_ptr.vmem [resolvable:$true] %s113_s18 }
  0x7b   :  { %s127_s21 = sshll.u32 %s5406_s17, 4  ;;  %s5271_s25 = scalar_lea.hbm %s6923_s9, 1024  ;;  %s5611_s21 = int_to_ptr.vmem [resolvable:$true] %s127_s21 }
  0x7c   :  { %p5272_p6 = scmp.ne.s32.totalorder %s6923_s9, %s5271_s25  ;;  %p5275_p7 = scmp.lt.u32.totalorder %s5271_s25, %s6923_s9 }
  0x7e   :  { %p5277_p8 = pnand %p5275_p7, %p5272_p6 }
  0x80   :  { %5280 = shalt.err (!%p5277_p8)
}
  0x81   :  { %s5281_s5 = scalar_lea.vmem %s114_s18, 1024  ;;  %p5286_p10 = scmp.lt.s32.totalorder %s114_s18, %s114_s18 }
  0x82   :  { %p5282_p9 = scmp.ne.s32.totalorder %s114_s18, %s5281_s5  ;;  %p5287_p11 = scmp.lt.s32.totalorder %s5281_s5, %s5281_s5 }
  0x84   :  { %p5288_p12 = por %p5287_p11, %p5286_p10 }
  0x86   :  { %p5289_p13 = pnand %p5288_p12, %p5282_p9 }
  0x88   :  { %5292 = shalt.err (!%p5289_p13)
}
  0x89   :  { %119 = dma.hbm_to_vmem [thread:$0]  %s6923_s9, 1024, %s114_s18, [#allocation12], %s6948_s2, %s6948_s2, %s5400_s0  }
  0x8a   :  { %s5293_s20 = scalar_lea.hbm %s6925_s11, 1024 }
  0x8b   :  { %p5294_p0 = scmp.ne.s32.totalorder %s6925_s11, %s5293_s20  ;;  %p5297_p1 = scmp.lt.u32.totalorder %s5293_s20, %s6925_s11 }
  0x8d   :  { %p5299_p2 = pnand %p5297_p1, %p5294_p0 }
  0x8f   :  { %5302 = shalt.err (!%p5299_p2)
}
  0x90   :  { %s5303_s22 = scalar_lea.vmem %s5611_s21, 1024  ;;  %p5308_p4 = scmp.lt.s32.totalorder %s5611_s21, %s5611_s21 }
  0x91   :  { %p5304_p3 = scmp.ne.s32.totalorder %s5611_s21, %s5303_s22  ;;  %p5309_p5 = scmp.lt.s32.totalorder %s5303_s22, %s5303_s22 }
  0x93   :  { %p5310_p6 = por %p5309_p5, %p5308_p4 }
  0x95   :  { %p5311_p7 = pnand %p5310_p6, %p5304_p3 }
  0x97   :  { %5314 = shalt.err (!%p5311_p7)
}
  0x98   :  { %133 = dma.hbm_to_vmem [thread:$0]  %s6925_s11, 1024, %s5611_s21, [#allocation15], %s6948_s2, %s6948_s2, %s5400_s0  }
  0x99   :  { %5381 = dma.done.wait [#allocation3], 8192  }
  0x9a   :  { %5382 = vsyncadd [#allocation3], 4294959104 }
  0x9b   :  { %5383 = dma.done.wait [#allocation6], 16384  }
  0x9c   :  { %5384 = vsyncadd [#allocation6], 4294950912 }
  0x9d   :  { %5385 = dma.done.wait [#allocation9], 2048  }
  0x9e   :  { %5386 = vsyncadd [#allocation9], 4294965248 }
  0x9f   :  { %5387 = dma.done.wait [#allocation12], 2048  }
  0xa0   :  { %5388 = vsyncadd [#allocation12], 4294965248 }
  0xa1   :  { %5389 = dma.done.wait [#allocation15], 1024  }
  0xa2   :  { %5390 = vsyncadd [#allocation15], 4294966272  ;;  %v4702_v0 = vld [vmem:[#allocation8] sm:$0xff]   ;;  %v4703_v1 = vld [vmem:[#allocation8 + $0x8] sm:$0xff]   ;;  %s5408_s17 = smov [#allocation16]  }
  0xa3   :  { %4207 = vmatprep.subr.bf16.mxu0 %v4702_v0  ;;  %v4704_v2 = vld [vmem:[#allocation8 + $0x10] sm:$0xff]   ;;  %v4705_v3 = vld [vmem:[#allocation8 + $0x18] sm:$0xff]   ;;  %v165_v4 = vld [vmem:[#allocation2] sm:$0xff]  ;;  %s3866_s3 = sshll.u32 %s5408_s17, 4  ;;  %s3867_s3 = int_to_ptr.vmem [resolvable:$true] %s3866_s3 }
  0xa4   :  { %4208 = vmatpush3.bf16.msra.mxu0 %v4702_v0  ;;  %v166_v5 = vld [vmem:[#allocation2 + $0x8] sm:$0xff]  ;;  %v4706_v7 = vld [vmem:[#allocation8 + $0x20] sm:$0xff]   ;;  %v4708_v9 = vld [vmem:[#allocation8 + $0x30] sm:$0xff]  }
  0xa5   :  { %4209 = vmatprep.subr.bf16.mxu0 %v4703_v1  ;;  %v229_v6 = vpack.c.bf16 %v166_v5, %v165_v4  ;;  %v4707_v8 = vld [vmem:[#allocation8 + $0x28] sm:$0xff]   ;;  %v4709_v10 = vld [vmem:[#allocation8 + $0x38] sm:$0xff]   ;;  %v167_v11 = vld [vmem:[#allocation2 + $0x10] sm:$0xff] }
  0xa6   :  { %v168_v12 = vld [vmem:[#allocation2 + $0x18] sm:$0xff]  ;;  %v4710_v13 = vld [vmem:[#allocation11] sm:$0xff]   ;;  %v170_v15 = vld [vmem:[#allocation2 + $0x28] sm:$0xff] }
  0xa7   :  { %4223 = vmatprep.mubr.bf16.mxu0 %v229_v6  ;;  %v169_v14 = vld [vmem:[#allocation2 + $0x20] sm:$0xff]  ;;  %v230_v16 = vpack.c.bf16 %v168_v12, %v167_v11  ;;  %v4711_v18 = vld [vmem:[#allocation11 + $0x8] sm:$0xff]   ;;  %v171_v19 = vld [vmem:[#allocation2 + $0x30] sm:$0xff] }
  0xa8   :  { %4210 = vmatpush3.bf16.msra.mxu0 %v4703_v1  ;;  %v231_v17 = vpack.c.bf16 %v170_v15, %v169_v14  ;;  %v172_v20 = vld [vmem:[#allocation2 + $0x38] sm:$0xff]  ;;  %v173_v21 = vld [vmem:[#allocation2 + $0x40] sm:$0xff]  ;;  %v174_v22 = vld [vmem:[#allocation2 + $0x48] sm:$0xff] }
  0xa9   :  { %4211 = vmatprep.subr.bf16.mxu0 %v4704_v2  ;;  %v4712_v23 = vld [vmem:[#allocation11 + $0x10] sm:$0xff]   ;;  %v232_v24 = vpack.c.bf16 %v172_v20, %v171_v19  ;;  %v233_v25 = vpack.c.bf16 %v174_v22, %v173_v21  ;;  %v4713_v26 = vld [vmem:[#allocation11 + $0x18] sm:$0xff]   ;;  %v177_v29 = vld [vmem:[#allocation2 + $0x60] sm:$0xff] }
  0xaa   :  { %v175_v27 = vld [vmem:[#allocation2 + $0x50] sm:$0xff]  ;;  %v176_v28 = vld [vmem:[#allocation2 + $0x58] sm:$0xff]  ;;  %v178_v30 = vld [vmem:[#allocation2 + $0x68] sm:$0xff] }
  0xab   :  { %v4714_v31 = vld [vmem:[#allocation11 + $0x20] sm:$0xff]   ;;  %v234_v32 = vpack.c.bf16 %v176_v28, %v175_v27  ;;  %v4715_v33 = vld [vmem:[#allocation11 + $0x28] sm:$0xff]   ;;  %v235_v34 = vpack.c.bf16 %v178_v30, %v177_v29  ;;  %v179_v35 = vld [vmem:[#allocation2 + $0x70] sm:$0xff] }
  0xac   :  { %4212 = vmatpush3.bf16.msra.mxu0 %v4704_v2  ;;  %v180_v36 = vld [vmem:[#allocation2 + $0x78] sm:$0xff]  ;;  %v181_v37 = vld [vmem:[#allocation2 + $0x80] sm:$0xff]  ;;  %v182_v38 = vld [vmem:[#allocation2 + $0x88] sm:$0xff] }
  0xad   :  { %4213 = vmatprep.subr.bf16.mxu0 %v4705_v3  ;;  %v4716_v39 = vld [vmem:[#allocation11 + $0x30] sm:$0xff]   ;;  %v236_v40 = vpack.c.bf16 %v180_v36, %v179_v35  ;;  %v4717_v41 = vld [vmem:[#allocation11 + $0x38] sm:$0xff]   ;;  %v237_v42 = vpack.c.bf16 %v182_v38, %v181_v37  ;;  %v185_v45 = vld [vmem:[#allocation2 + $0xa0] sm:$0xff] }
  0xae   :  { %v183_v43 = vld [vmem:[#allocation2 + $0x90] sm:$0xff]  ;;  %v184_v44 = vld [vmem:[#allocation2 + $0x98] sm:$0xff]  ;;  %v186_v46 = vld [vmem:[#allocation2 + $0xa8] sm:$0xff] }
  0xaf   :  { %v5648_v47 = vld [vmem:[#allocation14] sm:$0xff]   ;;  %v238_v48 = vpack.c.bf16 %v184_v44, %v183_v43  ;;  %v239_v49 = vpack.c.bf16 %v186_v46, %v185_v45  ;;  %v187_v50 = vld [vmem:[#allocation2 + $0xb0] sm:$0xff]  ;;  %v188_v51 = vld [vmem:[#allocation2 + $0xb8] sm:$0xff] }
  0xb0   :  { %4214 = vmatpush3.bf16.msra.mxu0 %v4705_v3  ;;  %v189_v52 = vld [vmem:[#allocation2 + $0xc0] sm:$0xff]  ;;  %v190_v53 = vld [vmem:[#allocation2 + $0xc8] sm:$0xff]  ;;  %v240_v54 = vpack.c.bf16 %v188_v51, %v187_v50  ;;  %v191_v56 = vld [vmem:[#allocation2 + $0xd0] sm:$0xff] }
  0xb1   :  { %4215 = vmatprep.subr.bf16.mxu0 %v4706_v7  ;;  %v241_v55 = vpack.c.bf16 %v190_v53, %v189_v52  ;;  %v192_v57 = vld [vmem:[#allocation2 + $0xd8] sm:$0xff]  ;;  %v193_v58 = vld [vmem:[#allocation2 + $0xe0] sm:$0xff]  ;;  %v194_v59 = vld [vmem:[#allocation2 + $0xe8] sm:$0xff] }
  0xb2   :  { %v242_v60 = vpack.c.bf16 %v192_v57, %v191_v56  ;;  %v243_v61 = vpack.c.bf16 %v194_v59, %v193_v58  ;;  %v195_v62 = vld [vmem:[#allocation2 + $0xf0] sm:$0xff]  ;;  %v196_v63 = vld [vmem:[#allocation2 + $0xf8] sm:$0xff]  ;;  %v197_v0 = vld [vmem:[#allocation2 + $0x100] sm:$0xff] }
  0xb3   :  { %v198_v1 = vld [vmem:[#allocation2 + $0x108] sm:$0xff]  ;;  %v244_v2 = vpack.c.bf16 %v196_v63, %v195_v62  ;;  %v199_v4 = vld [vmem:[#allocation2 + $0x110] sm:$0xff]  ;;  %v200_v5 = vld [vmem:[#allocation2 + $0x118] sm:$0xff] }
  0xb4   :  { %4216 = vmatpush3.bf16.msra.mxu0 %v4706_v7  ;;  %v245_v3 = vpack.c.bf16 %v198_v1, %v197_v0  ;;  %v201_v6 = vld [vmem:[#allocation2 + $0x120] sm:$0xff]  ;;  %v202_v7 = vld [vmem:[#allocation2 + $0x128] sm:$0xff]  ;;  %v204_v11 = vld [vmem:[#allocation2 + $0x138] sm:$0xff] }
  0xb5   :  { %4217 = vmatprep.subr.bf16.mxu0 %v4707_v8  ;;  %v205_v12 = vld [vmem:[#allocation2 + $0x140] sm:$0xff]  ;;  %v210_v20 = vld [vmem:[#allocation2 + $0x168] sm:$0xff]  ;;  %v4726_v28 = vld [vmem:[#allocation10 + $0x10] sm:$0xff]  }
  0xb6   :  { %v209_v19 = vld [vmem:[#allocation2 + $0x160] sm:$0xff]  ;;  %v214_v27 = vld [vmem:[#allocation2 + $0x188] sm:$0xff]  ;;  %v4731_v44 = vld [vmem:[#allocation10 + $0x30] sm:$0xff]  }
  0xb7   :  { %v251_v22 = vpack.c.bf16 %v210_v20, %v209_v19  ;;  %v218_v35 = vld [vmem:[#allocation2 + $0x1a8] sm:$0xff]  ;;  %v4728_v36 = vld [vmem:[#allocation10 + $0x20] sm:$0xff]   ;;  %v224_v50 = vld [vmem:[#allocation2 + $0x1d8] sm:$0xff] }
  0xb8   :  { %4218 = vmatpush3.bf16.msra.mxu0 %v4707_v8  ;;  %v246_v8 = vpack.c.bf16 %v200_v5, %v199_v4  ;;  %v222_v43 = vld [vmem:[#allocation2 + $0x1c8] sm:$0xff]  ;;  %v225_v51 = vld [vmem:[#allocation2 + $0x1e0] sm:$0xff]  ;;  %v228_v56 = vld [vmem:[#allocation2 + $0x1f8] sm:$0xff] }
  0xb9   :  { %4219 = vmatprep.subr.bf16.mxu0 %v4708_v9  ;;  %v226_v52 = vld [vmem:[#allocation2 + $0x1e8] sm:$0xff]  ;;  %v1397_v57 = vld [vmem:[#allocation5] sm:$0xff]  ;;  %v1400_v62 = vld [vmem:[#allocation5 + $0x18] sm:$0xff] }
  0xba   :  { %v1398_v58 = vld [vmem:[#allocation5 + $0x8] sm:$0xff]  ;;  %v1401_v63 = vld [vmem:[#allocation5 + $0x20] sm:$0xff]  ;;  %v1403_v5 = vld [vmem:[#allocation5 + $0x30] sm:$0xff] }
  0xbb   :  { %v1402_v0 = vld [vmem:[#allocation5 + $0x28] sm:$0xff]  ;;  %v5651_v4 = vld [vmem:[#allocation13] sm:$0xff]   ;;  %v1411_v20 = vld [vmem:[#allocation5 + $0x70] sm:$0xff] }
  0xbc   :  { %4220 = vmatpush3.bf16.msra.mxu0 %v4708_v9  ;;  %v247_v9 = vpack.c.bf16 %v202_v7, %v201_v6  ;;  %v1404_v6 = vld [vmem:[#allocation5 + $0x38] sm:$0xff]  ;;  %v1405_v7 = vld [vmem:[#allocation5 + $0x40] sm:$0xff]  ;;  %v4724_v19 = vld [vmem:[#allocation14 + $0x28] sm:$0xff]  }
  0xbd   :  { %4221 = vmatprep.subr.bf16.mxu0 %v4709_v10 }
  0xc0   :  { %4222 = vmatpush3.bf16.msra.mxu0 %v4709_v10  ;;  %v203_v10 = vld [vmem:[#allocation2 + $0x130] sm:$0xff] }
  0xc1   :  { %4367 = vmatprep.subr.bf16.mxu0 %v4710_v13  ;;  %v248_v14 = vpack.c.bf16 %v204_v11, %v203_v10  ;;  %v1464_v10 = vpack.c.bf16 %v1404_v6, %v1403_v5  ;;  %v1442_v5 = vld [vmem:[#allocation5 + $0x168] sm:$0xff] }
  0xc3   :  { %4224 = vmatmul.mubr.bf16.vlgmr.msra.gmra.mrb[0].mxu0 %v230_v16  ;;  %v4723_v16 = vld [vmem:[#allocation10] sm:$0xff]  }
  0xc4   :  { %4368 = vmatpush3.bf16.msra.mxu0 %v4710_v13  ;;  %4227 = vmatprep.mubr.bf16.mxu0 %v231_v17  ;;  %v206_v13 = vld [vmem:[#allocation2 + $0x148] sm:$0xff]  ;;  %v207_v17 = vld [vmem:[#allocation2 + $0x150] sm:$0xff] }
  0xc5   :  { %4369 = vmatprep.subr.bf16.mxu0 %v4711_v18  ;;  %v249_v15 = vpack.c.bf16 %v206_v13, %v205_v12  ;;  %4287 = vmatprep.subr.bf16.mxu1 %v4723_v16  ;;  %v4721_v12 = vld [vmem:[#allocation14 + $0x18] sm:$0xff]   ;;  %v1407_v13 = vld [vmem:[#allocation5 + $0x50] sm:$0xff] }
  0xc6   :  { %4288 = vmatpush3.bf16.msra.mxu1 %v4723_v16  ;;  %v4722_v16 = vld [vmem:[#allocation14 + $0x20] sm:$0xff]  }
  0xc8   :  { %4370 = vmatpush3.bf16.msra.mxu0 %v4711_v18  ;;  %v208_v18 = vld [vmem:[#allocation2 + $0x158] sm:$0xff] }
  0xc9   :  { %4371 = vmatprep.subr.bf16.mxu0 %v4712_v23  ;;  %v250_v21 = vpack.c.bf16 %v208_v18, %v207_v17 }
  0xcb   :  { %4228 = vmatmul.mubr.bf16.gmra.mrb[4].mxu0 %v232_v24  ;;  %v211_v24 = vld [vmem:[#allocation2 + $0x170] sm:$0xff] }
  0xcc   :  { %4231 = vmatprep.mubr.bf16.mxu0 %v233_v25  ;;  %4372 = vmatpush3.bf16.msra.mxu0 %v4712_v23  ;;  %v4725_v23 = vld [vmem:[#allocation10 + $0x8] sm:$0xff]   ;;  %v212_v25 = vld [vmem:[#allocation2 + $0x178] sm:$0xff] }
  0xcd   :  { %4373 = vmatprep.subr.bf16.mxu0 %v4713_v26  ;;  %4289 = vmatprep.subr.bf16.mxu1 %v4725_v23  ;;  %v252_v29 = vpack.c.bf16 %v212_v25, %v211_v24  ;;  %v4729_v24 = vld [vmem:[#allocation14 + $0x30] sm:$0xff]  }
  0xce   :  { %4290 = vmatpush3.bf16.msra.mxu1 %v4725_v23  ;;  %v1414_v23 = vld [vmem:[#allocation5 + $0x88] sm:$0xff] }
  0xcf   :  { %4291 = vmatprep.subr.bf16.mxu1 %v4726_v28 }
  0xd0   :  { %4374 = vmatpush3.bf16.msra.mxu0 %v4713_v26  ;;  %v213_v26 = vld [vmem:[#allocation2 + $0x180] sm:$0xff] }
  0xd1   :  { %4375 = vmatprep.subr.bf16.mxu0 %v4714_v31  ;;  %v253_v30 = vpack.c.bf16 %v214_v27, %v213_v26  ;;  %v4734_v27 = vld [vmem:[#allocation14 + $0x38] sm:$0xff]  }
  0xd2   :  { %4292 = vmatpush3.bf16.msra.mxu1 %v4726_v28  ;;  %v1415_v28 = vld [vmem:[#allocation5 + $0x90] sm:$0xff] }
  0xd3   :  { %4232 = vmatmul.mubr.bf16.gmra.mrb[8].mxu0 %v234_v32  ;;  %v215_v32 = vld [vmem:[#allocation2 + $0x190] sm:$0xff] }
  0xd4   :  { %4235 = vmatprep.mubr.bf16.mxu0 %v235_v34  ;;  %4376 = vmatpush3.bf16.msra.mxu0 %v4714_v31  ;;  %v4727_v31 = vld [vmem:[#allocation10 + $0x18] sm:$0xff]   ;;  %v217_v34 = vld [vmem:[#allocation2 + $0x1a0] sm:$0xff] }
  0xd5   :  { %4377 = vmatprep.subr.bf16.mxu0 %v4715_v33  ;;  %4293 = vmatprep.subr.bf16.mxu1 %v4727_v31  ;;  %v255_v38 = vpack.c.bf16 %v218_v35, %v217_v34  ;;  %v1419_v34 = vld [vmem:[#allocation5 + $0xb0] sm:$0xff]  ;;  %v1420_v35 = vld [vmem:[#allocation5 + $0xb8] sm:$0xff] }
  0xd6   :  { %4294 = vmatpush3.bf16.msra.mxu1 %v4727_v31  ;;  %v1418_v31 = vld [vmem:[#allocation5 + $0xa8] sm:$0xff] }
  0xd7   :  { %4295 = vmatprep.subr.bf16.mxu1 %v4728_v36 }
  0xd8   :  { %4378 = vmatpush3.bf16.msra.mxu0 %v4715_v33  ;;  %v216_v33 = vld [vmem:[#allocation2 + $0x198] sm:$0xff] }
  0xd9   :  { %4379 = vmatprep.subr.bf16.mxu0 %v4716_v39  ;;  %v254_v37 = vpack.c.bf16 %v216_v33, %v215_v32 }
  0xda   :  { %4296 = vmatpush3.bf16.msra.mxu1 %v4728_v36  ;;  %v1421_v36 = vld [vmem:[#allocation5 + $0xc0] sm:$0xff] }
  0xdb   :  { %4236 = vmatmul.mubr.bf16.gmra.mrb[12].mxu0 %v236_v40  ;;  %v219_v40 = vld [vmem:[#allocation2 + $0x1b0] sm:$0xff] }
  0xdc   :  { %4239 = vmatprep.mubr.bf16.mxu0 %v237_v42  ;;  %4380 = vmatpush3.bf16.msra.mxu0 %v4716_v39  ;;  %v4730_v39 = vld [vmem:[#allocation10 + $0x28] sm:$0xff]   ;;  %v221_v42 = vld [vmem:[#allocation2 + $0x1c0] sm:$0xff] }
  0xdd   :  { %4381 = vmatprep.subr.bf16.mxu0 %v4717_v41  ;;  %4297 = vmatprep.subr.bf16.mxu1 %v4730_v39  ;;  %v257_v46 = vpack.c.bf16 %v222_v43, %v221_v42  ;;  %v1425_v42 = vld [vmem:[#allocation5 + $0xe0] sm:$0xff]  ;;  %v1426_v43 = vld [vmem:[#allocation5 + $0xe8] sm:$0xff] }
  0xde   :  { %4298 = vmatpush3.bf16.msra.mxu1 %v4730_v39 }
  0xdf   :  { %4299 = vmatprep.subr.bf16.mxu1 %v4731_v44 }
  0xe0   :  { %4382 = vmatpush3.bf16.msra.mxu0 %v4717_v41  ;;  %v220_v41 = vld [vmem:[#allocation2 + $0x1b8] sm:$0xff] }
  0xe1   :  { %4527 = vmatprep.subr.bf16.mxu0 %v5648_v47  ;;  %v256_v45 = vpack.c.bf16 %v220_v41, %v219_v40  ;;  %v1423_v40 = vld [vmem:[#allocation5 + $0xd0] sm:$0xff]  ;;  %v1424_v41 = vld [vmem:[#allocation5 + $0xd8] sm:$0xff] }
  0xe2   :  { %4300 = vmatpush3.bf16.msra.mxu1 %v4731_v44  ;;  %v1474_v44 = vpack.c.bf16 %v1424_v41, %v1423_v40 }
  0xe3   :  { %4240 = vmatmul.mubr.bf16.gmra.mrb[16].mxu0 %v238_v48  ;;  %v4732_v48 = vld [vmem:[#allocation10 + $0x38] sm:$0xff]  }
  0xe4   :  { %4243 = vmatprep.mubr.bf16.mxu0 %v239_v49  ;;  %v223_v49 = vld [vmem:[#allocation2 + $0x1d0] sm:$0xff]  ;;  %4301 = vmatprep.subr.bf16.mxu1 %v4732_v48 }
  0xe5   :  { %v258_v53 = vpack.c.bf16 %v224_v50, %v223_v49  ;;  %v1429_v49 = vld [vmem:[#allocation5 + $0x100] sm:$0xff]  ;;  %v1430_v50 = vld [vmem:[#allocation5 + $0x108] sm:$0xff] }
  0xe6   :  { %4302 = vmatpush3.bf16.msra.mxu1 %v4732_v48  ;;  %v1428_v48 = vld [vmem:[#allocation5 + $0xf8] sm:$0xff] }
  0xe7   :  { %4447 = vmatprep.subr.bf16.mxu1 %v5651_v4 }
  0xeb   :  { %4244 = vmatmul.mubr.bf16.gmra.mrb[20].mxu0 %v240_v54  ;;  %v259_v54 = vpack.c.bf16 %v226_v52, %v225_v51  ;;  %v1477_v52 = vpack.c.bf16 %v1430_v50, %v1429_v49 }
  0xec   :  { %4247 = vmatprep.mubr.bf16.mxu0 %v241_v55  ;;  %v227_v55 = vld [vmem:[#allocation2 + $0x1f0] sm:$0xff] }
  0xed   :  { %v260_v59 = vpack.c.bf16 %v228_v56, %v227_v55  ;;  %v1433_v55 = vld [vmem:[#allocation5 + $0x120] sm:$0xff]  ;;  %v1434_v56 = vld [vmem:[#allocation5 + $0x128] sm:$0xff] }
  0xf3   :  { %4248 = vmatmul.mubr.bf16.gmra.mrb[24].mxu0 %v242_v60  ;;  %v1461_v60 = vpack.c.bf16 %v1398_v58, %v1397_v57  ;;  %v1479_v58 = vpack.c.bf16 %v1434_v56, %v1433_v55 }
  0xf4   :  { %4251 = vmatprep.mubr.bf16.mxu0 %v243_v61  ;;  %v1399_v61 = vld [vmem:[#allocation5 + $0x10] sm:$0xff] }
  0xf5   :  { %v1462_v1 = vpack.c.bf16 %v1400_v62, %v1399_v61  ;;  %v1437_v61 = vld [vmem:[#allocation5 + $0x140] sm:$0xff]  ;;  %v1438_v62 = vld [vmem:[#allocation5 + $0x148] sm:$0xff] }
  0xfb   :  { %4252 = vmatmul.mubr.bf16.gmra.mrb[28].mxu0 %v244_v2  ;;  %v1463_v2 = vpack.c.bf16 %v1402_v0, %v1401_v63  ;;  %v1481_v0 = vpack.c.bf16 %v1438_v62, %v1437_v61 }
  0xfc   :  { %4255 = vmatprep.mubr.bf16.mxu0 %v245_v3  ;;  %v4719_v3 = vld [vmem:[#allocation14 + $0x8] sm:$0xff]  }
 0x103   :  { %4256 = vmatmul.mubr.bf16.gmra.mrb[32].mxu0 %v246_v8  ;;  %v1406_v8 = vld [vmem:[#allocation5 + $0x48] sm:$0xff] }
 0x104   :  { %4259 = vmatprep.mubr.bf16.mxu0 %v247_v9  ;;  %v4720_v9 = vld [vmem:[#allocation14 + $0x10] sm:$0xff]   ;;  %v1465_v11 = vpack.c.bf16 %v1406_v8, %v1405_v7  ;;  %v5658_v8 = vld [vmem:[%s6918_s4] ss:$0 sm:$0xff] }
 0x10b   :  { %4260 = vmatmul.mubr.bf16.gmra.mrb[36].mxu0 %v248_v14  ;;  %v1408_v14 = vld [vmem:[#allocation5 + $0x58] sm:$0xff] }
 0x10c   :  { %4263 = vmatprep.mubr.bf16.mxu0 %v249_v15  ;;  %v1410_v15 = vld [vmem:[#allocation5 + $0x68] sm:$0xff]  ;;  %v1466_v17 = vpack.c.bf16 %v1408_v14, %v1407_v13 }
 0x113   :  { %4264 = vmatmul.mubr.bf16.gmra.mrb[40].mxu0 %v250_v21  ;;  %v1412_v21 = vld [vmem:[#allocation5 + $0x78] sm:$0xff] }
 0x114   :  { %4267 = vmatprep.mubr.bf16.mxu0 %v251_v22  ;;  %v1413_v22 = vld [vmem:[#allocation5 + $0x80] sm:$0xff]  ;;  %v1468_v25 = vpack.c.bf16 %v1412_v21, %v1411_v20 }
 0x115   :  { %v1469_v26 = vpack.c.bf16 %v1414_v23, %v1413_v22 }
 0x11b   :  { %4268 = vmatmul.mubr.bf16.gmra.mrb[44].mxu0 %v252_v29  ;;  %v1416_v29 = vld [vmem:[#allocation5 + $0x98] sm:$0xff] }
 0x11c   :  { %4271 = vmatprep.mubr.bf16.mxu0 %v253_v30  ;;  %v1417_v30 = vld [vmem:[#allocation5 + $0xa0] sm:$0xff]  ;;  %v1470_v32 = vpack.c.bf16 %v1416_v29, %v1415_v28  ;;  %v1450_v29 = vld [vmem:[#allocation5 + $0x1a8] sm:$0xff] }
 0x11d   :  { %v1471_v33 = vpack.c.bf16 %v1418_v31, %v1417_v30  ;;  %v1449_v28 = vld [vmem:[#allocation5 + $0x1a0] sm:$0xff] }
 0x123   :  { %4272 = vmatmul.mubr.bf16.gmra.mrb[48].mxu0 %v254_v37  ;;  %v1422_v37 = vld [vmem:[#allocation5 + $0xc8] sm:$0xff] }
 0x124   :  { %4275 = vmatprep.mubr.bf16.mxu0 %v255_v38  ;;  %v1472_v38 = vpack.c.bf16 %v1420_v35, %v1419_v34  ;;  %v1473_v39 = vpack.c.bf16 %v1422_v37, %v1421_v36  ;;  %v1487_v36 = vpack.c.bf16 %v1450_v29, %v1449_v28 }
 0x12b   :  { %4276 = vmatmul.mubr.bf16.gmra.mrb[52].mxu0 %v256_v45  ;;  %v1475_v45 = vpack.c.bf16 %v1426_v43, %v1425_v42  ;;  %v1451_v43 = vld [vmem:[#allocation5 + $0x1b0] sm:$0xff] }
 0x12c   :  { %4279 = vmatprep.mubr.bf16.mxu0 %v257_v46  ;;  %v1427_v46 = vld [vmem:[#allocation5 + $0xf0] sm:$0xff] }
 0x12d   :  { %v1476_v51 = vpack.c.bf16 %v1428_v48, %v1427_v46  ;;  %v1453_v46 = vld [vmem:[#allocation5 + $0x1c0] sm:$0xff]  ;;  %v1454_v48 = vld [vmem:[#allocation5 + $0x1c8] sm:$0xff] }
 0x133   :  { %4280 = vmatmul.mubr.bf16.gmra.mrb[56].mxu0 %v258_v53  ;;  %v1431_v53 = vld [vmem:[#allocation5 + $0x110] sm:$0xff] }
 0x134   :  { %4283 = vmatprep.mubr.bf16.mxu0 %v259_v54  ;;  %v1432_v54 = vld [vmem:[#allocation5 + $0x118] sm:$0xff] }
 0x135   :  { %v1478_v57 = vpack.c.bf16 %v1432_v54, %v1431_v53 }
 0x13b   :  { %4284 = vmatmul.mubr.bf16.gmra.mrb[60].mxu0 %v260_v59  ;;  %v1435_v59 = vld [vmem:[#allocation5 + $0x130] sm:$0xff] }
 0x13c   :  { %4383 = vmatprep.mubr.bf16.mxu0 %v1461_v60  ;;  %v1436_v60 = vld [vmem:[#allocation5 + $0x138] sm:$0xff] }
 0x13d   :  { %v1480_v63 = vpack.c.bf16 %v1436_v60, %v1435_v59 }
 0x143   :  { %4384 = vmatmul.mubr.bf16.vlgmr.msra.gmra.mrb[64].mxu0 %v1462_v1  ;;  %v1439_v1 = vld [vmem:[#allocation5 + $0x150] sm:$0xff] }
 0x144   :  { %4528 = vmatpush3.bf16.msra.mxu0 %v5648_v47  ;;  %4387 = vmatprep.mubr.bf16.mxu0 %v1463_v2  ;;  %v1409_v47 = vld [vmem:[#allocation5 + $0x60] sm:$0xff]  ;;  %v1440_v2 = vld [vmem:[#allocation5 + $0x158] sm:$0xff] }
 0x145   :  { %4529 = vmatprep.subr.bf16.mxu0 %v4719_v3  ;;  %v1467_v18 = vpack.c.bf16 %v1410_v15, %v1409_v47  ;;  %v1482_v6 = vpack.c.bf16 %v1440_v2, %v1439_v1 }
 0x148   :  { %4530 = vmatpush3.bf16.msra.mxu0 %v4719_v3  ;;  %v1441_v3 = vld [vmem:[#allocation5 + $0x160] sm:$0xff] }
 0x149   :  { %4531 = vmatprep.subr.bf16.mxu0 %v4720_v9  ;;  %v1483_v7 = vpack.c.bf16 %v1442_v5, %v1441_v3 }
 0x14b   :  { %4388 = vmatmul.mubr.bf16.gmra.mrb[68].mxu0 %v1464_v10  ;;  %v1444_v10 = vld [vmem:[#allocation5 + $0x178] sm:$0xff] }
 0x14c   :  { %4391 = vmatprep.mubr.bf16.mxu0 %v1465_v11  ;;  %4532 = vmatpush3.bf16.msra.mxu0 %v4720_v9  ;;  %v1443_v9 = vld [vmem:[#allocation5 + $0x170] sm:$0xff]  ;;  %v1445_v11 = vld [vmem:[#allocation5 + $0x180] sm:$0xff] }
 0x14d   :  { %4533 = vmatprep.subr.bf16.mxu0 %v4721_v12  ;;  %v1484_v15 = vpack.c.bf16 %v1444_v10, %v1443_v9 }
 0x150   :  { %4534 = vmatpush3.bf16.msra.mxu0 %v4721_v12  ;;  %v1446_v12 = vld [vmem:[#allocation5 + $0x188] sm:$0xff] }
 0x151   :  { %4535 = vmatprep.subr.bf16.mxu0 %v4722_v16 }
 0x153   :  { %4392 = vmatmul.mubr.bf16.gmra.mrb[72].mxu0 %v1466_v17 }
 0x154   :  { %4395 = vmatprep.mubr.bf16.mxu0 %v1467_v18  ;;  %4536 = vmatpush3.bf16.msra.mxu0 %v4722_v16  ;;  %v1485_v18 = vpack.c.bf16 %v1446_v12, %v1445_v11 }
 0x155   :  { %4537 = vmatprep.subr.bf16.mxu0 %v4724_v19 }
 0x158   :  { %4538 = vmatpush3.bf16.msra.mxu0 %v4724_v19 }
 0x159   :  { %4539 = vmatprep.subr.bf16.mxu0 %v4729_v24 }
 0x15b   :  { %4396 = vmatmul.mubr.bf16.gmra.mrb[76].mxu0 %v1468_v25 }
 0x15c   :  { %4399 = vmatprep.mubr.bf16.mxu0 %v1469_v26  ;;  %4540 = vmatpush3.bf16.msra.mxu0 %v4729_v24  ;;  %v1447_v26 = vld [vmem:[#allocation5 + $0x190] sm:$0xff] }
 0x15d   :  { %4541 = vmatprep.subr.bf16.mxu0 %v4734_v27 }
 0x160   :  { %4542 = vmatpush3.bf16.msra.mxu0 %v4734_v27  ;;  %v1448_v27 = vld [vmem:[#allocation5 + $0x198] sm:$0xff] }
 0x163   :  { %4400 = vmatmul.mubr.bf16.gmra.mrb[80].mxu0 %v1470_v32 }
 0x164   :  { %4403 = vmatprep.mubr.bf16.mxu0 %v1471_v33  ;;  %v1486_v33 = vpack.c.bf16 %v1448_v27, %v1447_v26 }
 0x16b   :  { %4404 = vmatmul.mubr.bf16.gmra.mrb[84].mxu0 %v1472_v38 }
 0x16c   :  { %4407 = vmatprep.mubr.bf16.mxu0 %v1473_v39 }
 0x173   :  { %4408 = vmatmul.mubr.bf16.gmra.mrb[88].mxu0 %v1474_v44  ;;  %v1452_v44 = vld [vmem:[#allocation5 + $0x1b8] sm:$0xff] }
 0x174   :  { %4411 = vmatprep.mubr.bf16.mxu0 %v1475_v45 }
 0x17b   :  { %4412 = vmatmul.mubr.bf16.gmra.mrb[92].mxu0 %v1476_v51 }
 0x17c   :  { %4415 = vmatprep.mubr.bf16.mxu0 %v1477_v52  ;;  %v1488_v52 = vpack.c.bf16 %v1452_v44, %v1451_v43 }
 0x183   :  { %4416 = vmatmul.mubr.bf16.gmra.mrb[96].mxu0 %v1478_v57 }
 0x184   :  { %4419 = vmatprep.mubr.bf16.mxu0 %v1479_v58  ;;  %v1489_v58 = vpack.c.bf16 %v1454_v48, %v1453_v46 }
 0x18b   :  { %4420 = vmatmul.mubr.bf16.gmra.mrb[100].mxu0 %v1480_v63 }
 0x18c   :  { %4423 = vmatprep.mubr.bf16.mxu0 %v1481_v0 }
 0x193   :  { %4424 = vmatmul.mubr.bf16.gmra.mrb[104].mxu0 %v1482_v6 }
 0x194   :  { %4427 = vmatprep.mubr.bf16.mxu0 %v1483_v7 }
 0x196   :  { %v4225_v13 = vpop.f32.mrb[0].mxu0 }
 0x197   :  { %v375_v14 = vadd.f32 %v4225_v13, %v5658_v8  ;;  %v366_v47 = vpop.f32.mrb[1].mxu0 }
 0x198   :  { %v367_v16 = vadd.f32 %v5658_v8, %v366_v47  ;;  %v4226_v17 = vpop.f32.mrb[2].mxu0 }
 0x199   :  { %v687_v19 = vmul.f32 0.70710677, %v375_v14  ;;  %v378_v20 = vadd.f32 %v4226_v17, %v5658_v8  ;;  %v369_v21 = vpop.f32.mrb[3].mxu0  ;;  %v623_v54 = vmul.f32 0.5, %v375_v14  ;;  %v1455_v14 = vld [vmem:[#allocation5 + $0x1d0] sm:$0xff]  ;;  %v1456_v17 = vld [vmem:[#allocation5 + $0x1d8] sm:$0xff] }
 0x19a   :  { %v685_v22 = vmul.f32 0.70710677, %v367_v16  ;;  %v370_v23 = vadd.f32 %v5658_v8, %v369_v21  ;;  %v621_v1 = vmul.f32 0.5, %v367_v16 }
 0x19b   :  { %4750 = verf.f32 %v687_v19  ;;  %v688_v24 = vmul.f32 0.70710677, %v378_v20  ;;  %4428 = vmatmul.mubr.bf16.gmra.mrb[108].mxu0 %v1484_v15  ;;  %v624_v60 = vmul.f32 0.5, %v378_v20  ;;  %v1458_v19 = vld [vmem:[#allocation5 + $0x1e8] sm:$0xff] }
 0x19c   :  { %4752 = verf.f32 %v685_v22  ;;  %v686_v25 = vmul.f32 0.70710677, %v370_v23  ;;  %4431 = vmatprep.mubr.bf16.mxu0 %v1485_v18  ;;  %v622_v9 = vmul.f32 0.5, %v370_v23  ;;  %v1457_v18 = vld [vmem:[#allocation5 + $0x1e0] sm:$0xff] }
 0x19d   :  { %4754 = verf.f32 %v688_v24 }
 0x19e   :  { %4756 = verf.f32 %v686_v25  ;;  %v4229_v30 = vpop.f32.mrb[4].mxu0 }
 0x19f   :  { %v5665_v31 = vadd.f32 %v4229_v30, %v5658_v8  ;;  %v382_v32 = vpop.f32.mrb[5].mxu0  ;;  %v1490_v30 = vpack.c.bf16 %v1456_v17, %v1455_v14 }
 0x1a0   :  { %v5668_v34 = vadd.f32 %v5658_v8, %v382_v32  ;;  %v4230_v35 = vpop.f32.mrb[6].mxu0  ;;  %v1491_v32 = vpack.c.bf16 %v1458_v19, %v1457_v18 }
 0x1a1   :  { %v691_v37 = vmul.f32 0.70710677, %v5665_v31  ;;  %v5672_v38 = vadd.f32 %v4230_v35, %v5658_v8  ;;  %v385_v39 = vpop.f32.mrb[7].mxu0 }
 0x1a2   :  { %v689_v40 = vmul.f32 0.70710677, %v5668_v34  ;;  %v5676_v41 = vadd.f32 %v5658_v8, %v385_v39  ;;  %v625_v43 = vmul.f32 0.5, %v5668_v34 }
 0x1a3   :  { %4758 = verf.f32 %v691_v37  ;;  %v692_v42 = vmul.f32 0.70710677, %v5672_v38  ;;  %4432 = vmatmul.mubr.bf16.gmra.mrb[112].mxu0 %v1486_v33  ;;  %v4735_v33 = vld [vmem:[#allocation13 + $0x8] sm:$0xff]   ;;  %v628_v37 = vmul.f32 0.5, %v5672_v38 }
 0x1a4   :  { %4760 = verf.f32 %v689_v40  ;;  %v690_v45 = vmul.f32 0.70710677, %v5676_v41  ;;  %4435 = vmatprep.mubr.bf16.mxu0 %v1487_v36  ;;  %v627_v36 = vmul.f32 0.5, %v5665_v31  ;;  %v626_v44 = vmul.f32 0.5, %v5676_v41  ;;  %v1459_v41 = vld [vmem:[#allocation5 + $0x1f0] sm:$0xff] }
 0x1a5   :  { %v4751_v49 = vpop.eup %4750  ;;  %4762 = verf.f32 %v692_v42 }
 0x1a6   :  { %v4753_v50 = vpop.eup %4752  ;;  %4764 = verf.f32 %v690_v45  ;;  %v4233_v51 = vpop.f32.mrb[8].mxu0  ;;  %v815_v55 = vadd.f32 1.0, %v4751_v49 }
 0x1a7   :  { %v4755_v53 = vpop.eup %4754  ;;  %v5681_v56 = vadd.f32 %v4233_v51, %v5658_v8  ;;  %v398_v57 = vpop.f32.mrb[9].mxu0  ;;  %v813_v0 = vadd.f32 1.0, %v4753_v50 }
 0x1a8   :  { %v4757_v59 = vpop.eup %4756  ;;  %v816_v61 = vadd.f32 1.0, %v4755_v53  ;;  %v5684_v62 = vadd.f32 %v5658_v8, %v398_v57  ;;  %v4234_v63 = vpop.f32.mrb[10].mxu0  ;;  %v879_v12 = vmul.f32 %v815_v55, %v623_v54  ;;  %v1460_v53 = vld [vmem:[#allocation5 + $0x1f8] sm:$0xff]  ;;  %v4736_v54 = vld [vmem:[#allocation13 + $0x10] sm:$0xff]  }
 0x1a9   :  { %v695_v2 = vmul.f32 0.70710677, %v5681_v56  ;;  %v5688_v3 = vadd.f32 %v4234_v63, %v5658_v8  ;;  %v401_v5 = vpop.f32.mrb[11].mxu0  ;;  %v814_v6 = vadd.f32 1.0, %v4757_v59  ;;  %v877_v15 = vmul.f32 %v813_v0, %v621_v1  ;;  %v2630_v59 = vld [vmem:[#allocation7 + $0x8] sm:$0xff] }
 0x1aa   :  { %v880_v7 = vmul.f32 %v816_v61, %v624_v60  ;;  %v693_v10 = vmul.f32 0.70710677, %v5684_v62  ;;  %v5692_v11 = vadd.f32 %v5658_v8, %v401_v5  ;;  %v631_v14 = vmul.f32 0.5, %v5681_v56 }
 0x1ab   :  { %4766 = verf.f32 %v695_v2  ;;  %v696_v13 = vmul.f32 0.70710677, %v5688_v3  ;;  %4436 = vmatmul.mubr.bf16.gmra.mrb[116].mxu0 %v1488_v52  ;;  %v878_v16 = vmul.f32 %v814_v6, %v622_v9  ;;  %v1492_v2 = vpack.c.bf16 %v1460_v53, %v1459_v41 }
 0x1ac   :  { %4768 = verf.f32 %v693_v10  ;;  %v694_v47 = vmul.f32 0.70710677, %v5692_v11  ;;  %4439 = vmatprep.mubr.bf16.mxu0 %v1489_v58  ;;  %v942_v21 = vpack.c.bf16 %v880_v7, %v879_v12  ;;  %v2629_v58 = vld [vmem:[#allocation7] sm:$0xff]  ;;  %v4737_v12 = vld [vmem:[#allocation13 + $0x18] sm:$0xff]   ;;  %v629_v18 = vmul.f32 0.5, %v5684_v62 }
 0x1ad   :  { %v4759_v20 = vpop.eup %4758  ;;  %4770 = verf.f32 %v696_v13  ;;  %v941_v25 = vpack.c.bf16 %v878_v16, %v877_v15  ;;  %v2693_v10 = vpack.c.bf16 %v2630_v59, %v2629_v58  ;;  %v630_v19 = vmul.f32 0.5, %v5692_v11  ;;  %v4738_v11 = vld [vmem:[#allocation13 + $0x20] sm:$0xff]  }
 0x1ae   :  { %v4761_v22 = vpop.eup %4760  ;;  %v819_v23 = vadd.f32 1.0, %v4759_v20  ;;  %4772 = verf.f32 %v694_v47  ;;  %v4237_v24 = vpop.f32.mrb[12].mxu0  ;;  %v632_v47 = vmul.f32 0.5, %v5688_v3 }
 0x1af   :  { %v4763_v26 = vpop.eup %4762  ;;  %v817_v27 = vadd.f32 1.0, %v4761_v22  ;;  %v5697_v28 = vadd.f32 %v4237_v24, %v5658_v8  ;;  %v414_v29 = vpop.f32.mrb[13].mxu0  ;;  %4303 = vmatprep.mubr.bf16.mxu1 %v941_v25 }
 0x1b0   :  { %v4765_v35 = vpop.eup %4764  ;;  %v820_v39 = vadd.f32 1.0, %v4763_v26  ;;  %v5702_v40 = vadd.f32 %v5658_v8, %v414_v29  ;;  %v4238_v42 = vpop.f32.mrb[14].mxu0  ;;  %4304 = vmatmul.mubr.bf16.vlgmr.msra.gmra.mrb[0].mxu1 %v942_v21  ;;  %v883_v49 = vmul.f32 %v819_v23, %v627_v36 }
 0x1b1   :  { %v818_v45 = vadd.f32 1.0, %v4765_v35  ;;  %v699_v46 = vmul.f32 0.70710677, %v5697_v28  ;;  %v417_v48 = vpop.f32.mrb[15].mxu0  ;;  %v5709_v38 = vadd.f32 %v4238_v42, %v5658_v8  ;;  %4448 = vmatpush3.bf16.msra.mxu1 %v5651_v4  ;;  %v881_v51 = vmul.f32 %v817_v27, %v625_v43 }
 0x1b2   :  { %v884_v50 = vmul.f32 %v820_v39, %v628_v37  ;;  %v697_v31 = vmul.f32 0.70710677, %v5702_v40  ;;  %v5713_v34 = vadd.f32 %v5658_v8, %v417_v48  ;;  %4449 = vmatprep.subr.bf16.mxu1 %v4735_v33  ;;  %v2633_v37 = vld [vmem:[#allocation7 + $0x20] sm:$0xff]  ;;  %v2634_v39 = vld [vmem:[#allocation7 + $0x28] sm:$0xff] }
 0x1b3   :  { %v882_v52 = vmul.f32 %v818_v45, %v626_v44  ;;  %4774 = verf.f32 %v699_v46  ;;  %4440 = vmatmul.mubr.bf16.gmra.mrb[120].mxu0 %v1490_v30  ;;  %v700_v55 = vmul.f32 0.70710677, %v5709_v38  ;;  %v2631_v30 = vld [vmem:[#allocation7 + $0x10] sm:$0xff]  ;;  %v2695_v53 = vpack.c.bf16 %v2634_v39, %v2633_v37 }
 0x1b4   :  { %4776 = verf.f32 %v697_v31  ;;  %v944_v57 = vpack.c.bf16 %v884_v50, %v883_v49  ;;  %4443 = vmatprep.mubr.bf16.mxu0 %v1491_v32  ;;  %v698_v4 = vmul.f32 0.70710677, %v5713_v34  ;;  %v2632_v32 = vld [vmem:[#allocation7 + $0x18] sm:$0xff]  ;;  %v4739_v49 = vld [vmem:[#allocation13 + $0x28] sm:$0xff]   ;;  %v635_v31 = vmul.f32 0.5, %v5697_v28 }
 0x1b5   :  { %v4767_v60 = vpop.eup %4766  ;;  %v943_v61 = vpack.c.bf16 %v882_v52, %v881_v51  ;;  %4778 = verf.f32 %v700_v55  ;;  %4450 = vmatpush3.bf16.msra.mxu1 %v4735_v33  ;;  %v2694_v48 = vpack.c.bf16 %v2632_v32, %v2631_v30  ;;  %v633_v55 = vmul.f32 0.5, %v5702_v40 }
 0x1b6   :  { %v4769_v63 = vpop.eup %4768  ;;  %v823_v0 = vadd.f32 1.0, %v4767_v60  ;;  %v4241_v1 = vpop.f32.mrb[16].mxu0  ;;  %4780 = verf.f32 %v698_v4  ;;  %4451 = vmatprep.subr.bf16.mxu1 %v4736_v54  ;;  %v634_v4 = vmul.f32 0.5, %v5713_v34 }
 0x1b7   :  { %v4771_v5 = vpop.eup %4770  ;;  %v821_v6 = vadd.f32 1.0, %v4769_v63  ;;  %v5718_v7 = vadd.f32 %v4241_v1, %v5658_v8  ;;  %v430_v9 = vpop.f32.mrb[17].mxu0  ;;  %4307 = vmatprep.mubr.bf16.mxu1 %v943_v61 }
 0x1b8   :  { %v4773_v13 = vpop.eup %4772  ;;  %v824_v15 = vadd.f32 1.0, %v4771_v5  ;;  %v5723_v16 = vadd.f32 %v5658_v8, %v430_v9  ;;  %v4242_v17 = vpop.f32.mrb[18].mxu0  ;;  %4308 = vmatmul.mubr.bf16.gmra.mrb[4].mxu1 %v944_v57  ;;  %v887_v23 = vmul.f32 %v823_v0, %v631_v14  ;;  %v636_v57 = vmul.f32 0.5, %v5709_v38  ;;  %v4740_v38 = vld [vmem:[#allocation13 + $0x30] sm:$0xff]   ;;  %v2636_v9 = vld [vmem:[#allocation7 + $0x38] sm:$0xff]  ;;  %v2637_v14 = vld [vmem:[#allocation7 + $0x40] sm:$0xff] }
 0x1b9   :  { %v822_v20 = vadd.f32 1.0, %v4773_v13  ;;  %v703_v21 = vmul.f32 0.70710677, %v5718_v7  ;;  %v433_v22 = vpop.f32.mrb[19].mxu0  ;;  %v5730_v3 = vadd.f32 %v4242_v17, %v5658_v8  ;;  %4452 = vmatpush3.bf16.msra.mxu1 %v4736_v54  ;;  %v885_v25 = vmul.f32 %v821_v6, %v629_v18  ;;  %v2635_v6 = vld [vmem:[#allocation7 + $0x30] sm:$0xff] }
 0x1ba   :  { %v888_v24 = vmul.f32 %v824_v15, %v632_v47  ;;  %v701_v56 = vmul.f32 0.70710677, %v5723_v16  ;;  %v5733_v62 = vadd.f32 %v5658_v8, %v433_v22  ;;  %4453 = vmatprep.subr.bf16.mxu1 %v4737_v12  ;;  %v2638_v47 = vld [vmem:[#allocation7 + $0x48] sm:$0xff]  ;;  %v2696_v22 = vpack.c.bf16 %v2636_v9, %v2635_v6 }
 0x1bb   :  { %v886_v26 = vmul.f32 %v822_v20, %v630_v19  ;;  %4782 = verf.f32 %v703_v21  ;;  %4444 = vmatmul.mubr.bf16.gmra.mrb[124].mxu0 %v1492_v2  ;;  %v704_v27 = vmul.f32 0.70710677, %v5730_v3  ;;  %v637_v30 = vmul.f32 0.5, %v5723_v16 }
 0x1bc   :  { %4784 = verf.f32 %v701_v56  ;;  %v946_v29 = vpack.c.bf16 %v888_v24, %v887_v23  ;;  %4543 = vmatprep.mubr.bf16.mxu0 %v2693_v10  ;;  %v702_v35 = vmul.f32 0.70710677, %v5733_v62  ;;  %v4741_v23 = vld [vmem:[#allocation13 + $0x38] sm:$0xff]   ;;  %v639_v56 = vmul.f32 0.5, %v5718_v7 }
 0x1bd   :  { %v4775_v33 = vpop.eup %4774  ;;  %v945_v36 = vpack.c.bf16 %v886_v26, %v885_v25  ;;  %4786 = verf.f32 %v704_v27  ;;  %4454 = vmatpush3.bf16.msra.mxu1 %v4737_v12  ;;  %v2697_v27 = vpack.c.bf16 %v2638_v47, %v2637_v14  ;;  %v640_v32 = vmul.f32 0.5, %v5730_v3  ;;  %v4742_v3 = vld [vmem:[%s6927_s13] sm:$0xff]  }
 0x1be   :  { %v4777_v42 = vpop.eup %4776  ;;  %v4245_v43 = vpop.f32.mrb[20].mxu0  ;;  %v827_v44 = vadd.f32 1.0, %v4775_v33  ;;  %4788 = verf.f32 %v702_v35  ;;  %4455 = vmatprep.subr.bf16.mxu1 %v4738_v11  ;;  %v638_v37 = vmul.f32 0.5, %v5733_v62 }
 0x1bf   :  { %v5738_v45 = vadd.f32 %v4245_v43, %v5658_v8  ;;  %v446_v46 = vpop.f32.mrb[21].mxu0  ;;  %4311 = vmatprep.mubr.bf16.mxu1 %v945_v36  ;;  %v4779_v50 = vpop.eup %4778  ;;  %v825_v51 = vadd.f32 1.0, %v4777_v42 }
 0x1c0   :  { %v5742_v52 = vadd.f32 %v5658_v8, %v446_v46  ;;  %v4246_v41 = vpop.f32.mrb[22].mxu0  ;;  %v4781_v54 = vpop.eup %4780  ;;  %v828_v58 = vadd.f32 1.0, %v4779_v50  ;;  %4312 = vmatmul.mubr.bf16.gmra.mrb[8].mxu1 %v946_v29  ;;  %v891_v0 = vmul.f32 %v827_v44, %v635_v31  ;;  %v2640_v50 = vld [vmem:[#allocation7 + $0x58] sm:$0xff] }
 0x1c1   :  { %v707_v59 = vmul.f32 0.70710677, %v5738_v45  ;;  %v449_v60 = vpop.f32.mrb[23].mxu0  ;;  %v826_v61 = vadd.f32 1.0, %v4781_v54  ;;  %v5750_v63 = vadd.f32 %v4246_v41, %v5658_v8  ;;  %4456 = vmatpush3.bf16.msra.mxu1 %v4738_v11  ;;  %v889_v2 = vmul.f32 %v825_v51, %v633_v55  ;;  %v2642_v54 = vld [vmem:[#allocation7 + $0x68] sm:$0xff] }
 0x1c2   :  { %v705_v28 = vmul.f32 0.70710677, %v5742_v52  ;;  %v892_v1 = vmul.f32 %v828_v58, %v636_v57  ;;  %v5753_v40 = vadd.f32 %v5658_v8, %v449_v60  ;;  %4457 = vmatprep.subr.bf16.mxu1 %v4739_v49  ;;  %v641_v6 = vmul.f32 0.5, %v5742_v52 }
 0x1c3   :  { %4790 = verf.f32 %v707_v59  ;;  %4544 = vmatmul.mubr.bf16.vlgmr.msra.gmra.mrb[128].mxu0 %v2694_v48  ;;  %v890_v5 = vmul.f32 %v826_v61, %v634_v4  ;;  %v708_v34 = vmul.f32 0.70710677, %v5750_v63  ;;  %v644_v9 = vmul.f32 0.5, %v5750_v63 }
 0x1c4   :  { %4792 = verf.f32 %v705_v28  ;;  %4547 = vmatprep.mubr.bf16.mxu0 %v2695_v53  ;;  %v706_v12 = vmul.f32 0.70710677, %v5753_v40  ;;  %v948_v13 = vpack.c.bf16 %v892_v1, %v891_v0  ;;  %v2641_v53 = vld [vmem:[#allocation7 + $0x60] sm:$0xff]  ;;  %v643_v0 = vmul.f32 0.5, %v5738_v45 }
 0x1c5   :  { %v4783_v10 = vpop.eup %4782  ;;  %4794 = verf.f32 %v708_v34  ;;  %v947_v18 = vpack.c.bf16 %v890_v5, %v889_v2  ;;  %4458 = vmatpush3.bf16.msra.mxu1 %v4739_v49  ;;  %v2639_v49 = vld [vmem:[#allocation7 + $0x50] sm:$0xff]  ;;  %v2699_v5 = vpack.c.bf16 %v2642_v54, %v2641_v53  ;;  %v642_v14 = vmul.f32 0.5, %v5753_v40 }
 0x1c6   :  { %v4785_v15 = vpop.eup %4784  ;;  %v4249_v17 = vpop.f32.mrb[24].mxu0  ;;  %v831_v19 = vadd.f32 1.0, %v4783_v10  ;;  %4796 = verf.f32 %v706_v12  ;;  %4459 = vmatprep.subr.bf16.mxu1 %v4740_v38  ;;  %v2698_v61 = vpack.c.bf16 %v2640_v50, %v2639_v49  ;;  %v2643_v40 = vld [vmem:[#allocation7 + $0x70] sm:$0xff] }
 0x1c7   :  { %v5758_v20 = vadd.f32 %v4249_v17, %v5658_v8  ;;  %v462_v21 = vpop.f32.mrb[25].mxu0  ;;  %v4787_v24 = vpop.eup %4786  ;;  %v829_v25 = vadd.f32 1.0, %v4785_v15  ;;  %4315 = vmatprep.mubr.bf16.mxu1 %v947_v18 }
 0x1c8   :  { %v5762_v26 = vadd.f32 %v5658_v8, %v462_v21  ;;  %v4250_v11 = vpop.f32.mrb[26].mxu0  ;;  %v4789_v29 = vpop.eup %4788  ;;  %v832_v33 = vadd.f32 1.0, %v4787_v24  ;;  %4316 = vmatmul.mubr.bf16.gmra.mrb[12].mxu1 %v948_v13  ;;  %v895_v43 = vmul.f32 %v831_v19, %v639_v56 }
 0x1c9   :  { %v711_v35 = vmul.f32 0.70710677, %v5758_v20  ;;  %v465_v36 = vpop.f32.mrb[27].mxu0  ;;  %v830_v7 = vadd.f32 1.0, %v4789_v29  ;;  %v5770_v42 = vadd.f32 %v4250_v11, %v5658_v8  ;;  %4460 = vmatpush3.bf16.msra.mxu1 %v4740_v38  ;;  %v893_v62 = vmul.f32 %v829_v25, %v637_v30  ;;  %v2645_v25 = vld [vmem:[#allocation7 + $0x80] sm:$0xff]  ;;  %v2646_v11 = vld [vmem:[#allocation7 + $0x88] sm:$0xff] }
 0x1ca   :  { %v709_v39 = vmul.f32 0.70710677, %v5762_v26  ;;  %v896_v44 = vmul.f32 %v832_v33, %v640_v32  ;;  %v5773_v16 = vadd.f32 %v5658_v8, %v465_v36  ;;  %4461 = vmatprep.subr.bf16.mxu1 %v4741_v23 }
 0x1cb   :  { %4798 = verf.f32 %v711_v35  ;;  %4548 = vmatmul.mubr.bf16.gmra.mrb[132].mxu0 %v2696_v22  ;;  %v894_v46 = vmul.f32 %v830_v7, %v638_v37  ;;  %v712_v48 = vmul.f32 0.70710677, %v5770_v42  ;;  %v2644_v22 = vld [vmem:[#allocation7 + $0x78] sm:$0xff]  ;;  %v647_v7 = vmul.f32 0.5, %v5758_v20 }
 0x1cc   :  { %4800 = verf.f32 %v709_v39  ;;  %4551 = vmatprep.mubr.bf16.mxu0 %v2697_v27  ;;  %v710_v51 = vmul.f32 0.70710677, %v5773_v16  ;;  %v950_v41 = vpack.c.bf16 %v896_v44, %v895_v43  ;;  %v2700_v36 = vpack.c.bf16 %v2644_v22, %v2643_v40 }
 0x1cd   :  { %v4791_v31 = vpop.eup %4790  ;;  %4802 = verf.f32 %v712_v48  ;;  %v949_v58 = vpack.c.bf16 %v894_v46, %v893_v62  ;;  %4462 = vmatpush3.bf16.msra.mxu1 %v4741_v23  ;;  %v645_v46 = vmul.f32 0.5, %v5762_v26  ;;  %v648_v48 = vmul.f32 0.5, %v5770_v42 }
 0x1ce   :  { %v4793_v55 = vpop.eup %4792  ;;  %v4253_v57 = vpop.f32.mrb[28].mxu0  ;;  %v835_v59 = vadd.f32 1.0, %v4791_v31  ;;  %4804 = verf.f32 %v710_v51  ;;  %4607 = vmatprep.subr.bf16.mxu1 %v4742_v3  ;;  %v2701_v3 = vpack.c.bf16 %v2646_v11, %v2645_v25  ;;  %v646_v51 = vmul.f32 0.5, %v5773_v16  ;;  %v2647_v16 = vld [vmem:[#allocation7 + $0x90] sm:$0xff] }
 0x1cf   :  { %v5781_v60 = vadd.f32 %v4253_v57, %v5658_v8  ;;  %v478_v4 = vpop.f32.mrb[29].mxu0  ;;  %v4795_v28 = vpop.eup %4794  ;;  %v833_v1 = vadd.f32 1.0, %v4793_v55  ;;  %4319 = vmatprep.mubr.bf16.mxu1 %v949_v58 }
 0x1d0   :  { %v5785_v38 = vadd.f32 %v5658_v8, %v478_v4  ;;  %v4254_v2 = vpop.f32.mrb[30].mxu0  ;;  %v4797_v34 = vpop.eup %4796  ;;  %v836_v10 = vadd.f32 1.0, %v4795_v28  ;;  %4320 = vmatmul.mubr.bf16.gmra.mrb[16].mxu1 %v950_v41  ;;  %v899_v17 = vmul.f32 %v835_v59, %v643_v0  ;;  %v2648_v59 = vld [vmem:[#allocation7 + $0x98] sm:$0xff]  ;;  %v2649_v0 = vld [vmem:[#allocation7 + $0xa0] sm:$0xff] }
 0x1d1   :  { %v715_v12 = vmul.f32 0.70710677, %v5781_v60  ;;  %v481_v13 = vpop.f32.mrb[31].mxu0  ;;  %v834_v45 = vadd.f32 1.0, %v4797_v34  ;;  %v5793_v15 = vadd.f32 %v4254_v2, %v5658_v8  ;;  %v897_v63 = vmul.f32 %v833_v1, %v641_v6  ;;  %v2650_v1 = vld [vmem:[#allocation7 + $0xa8] sm:$0xff] }
 0x1d2   :  { %v713_v47 = vmul.f32 0.70710677, %v5785_v38  ;;  %v900_v18 = vmul.f32 %v836_v10, %v644_v9  ;;  %v5796_v52 = vadd.f32 %v5658_v8, %v481_v13 }
 0x1d3   :  { %4806 = verf.f32 %v715_v12  ;;  %4552 = vmatmul.mubr.bf16.gmra.mrb[136].mxu0 %v2698_v61  ;;  %v898_v19 = vmul.f32 %v834_v45, %v642_v14  ;;  %v716_v21 = vmul.f32 0.70710677, %v5793_v15  ;;  %v2702_v12 = vpack.c.bf16 %v2648_v59, %v2647_v16 }
 0x1d4   :  { %4808 = verf.f32 %v713_v47  ;;  %4555 = vmatprep.mubr.bf16.mxu0 %v2699_v5  ;;  %v714_v24 = vmul.f32 0.70710677, %v5796_v52  ;;  %v952_v56 = vpack.c.bf16 %v900_v18, %v899_v17  ;;  %v651_v14 = vmul.f32 0.5, %v5781_v60 }
 0x1d5   :  { %v4799_v23 = vpop.eup %4798  ;;  %4810 = verf.f32 %v716_v21  ;;  %v951_v30 = vpack.c.bf16 %v898_v19, %v897_v63  ;;  %v2703_v18 = vpack.c.bf16 %v2650_v1, %v2649_v0  ;;  %v649_v19 = vmul.f32 0.5, %v5785_v38 }
 0x1d6   :  { %v4801_v27 = vpop.eup %4800  ;;  %v4257_v29 = vpop.f32.mrb[32].mxu0  ;;  %v839_v32 = vadd.f32 1.0, %v4799_v23  ;;  %4812 = verf.f32 %v714_v24  ;;  %v652_v21 = vmul.f32 0.5, %v5793_v15  ;;  %v650_v24 = vmul.f32 0.5, %v5796_v52  ;;  %v2651_v52 = vld [vmem:[#allocation7 + $0xb0] sm:$0xff] }
 0x1d7   :  { %v5801_v33 = vadd.f32 %v4257_v29, %v5658_v8  ;;  %v494_v35 = vpop.f32.mrb[33].mxu0  ;;  %v4803_v37 = vpop.eup %4802  ;;  %v837_v39 = vadd.f32 1.0, %v4801_v27  ;;  %4323 = vmatprep.mubr.bf16.mxu1 %v951_v30 }
 0x1d8   :  { %v5805_v43 = vadd.f32 %v5658_v8, %v494_v35  ;;  %v4258_v44 = vpop.f32.mrb[34].mxu0  ;;  %v4805_v62 = vpop.eup %4804  ;;  %v840_v49 = vadd.f32 1.0, %v4803_v37  ;;  %4324 = vmatmul.mubr.bf16.gmra.mrb[20].mxu1 %v952_v56  ;;  %v903_v54 = vmul.f32 %v839_v32, %v647_v7  ;;  %v2652_v32 = vld [vmem:[#allocation7 + $0xb8] sm:$0xff]  ;;  %v2653_v7 = vld [vmem:[#allocation7 + $0xc0] sm:$0xff] }
 0x1d9   :  { %v719_v50 = vmul.f32 0.70710677, %v5801_v33  ;;  %v497_v31 = vpop.f32.mrb[35].mxu0  ;;  %v838_v20 = vadd.f32 1.0, %v4805_v62  ;;  %v5813_v53 = vadd.f32 %v4258_v44, %v5658_v8  ;;  %v901_v42 = vmul.f32 %v837_v39, %v645_v46  ;;  %v2654_v39 = vld [vmem:[#allocation7 + $0xc8] sm:$0xff] }
 0x1da   :  { %v717_v41 = vmul.f32 0.70710677, %v5805_v43  ;;  %v904_v55 = vmul.f32 %v840_v49, %v648_v48  ;;  %v5816_v26 = vadd.f32 %v5658_v8, %v497_v31 }
 0x1db   :  { %4814 = verf.f32 %v719_v50  ;;  %4556 = vmatmul.mubr.bf16.gmra.mrb[140].mxu0 %v2700_v36  ;;  %v902_v57 = vmul.f32 %v838_v20, %v646_v51  ;;  %v720_v58 = vmul.f32 0.70710677, %v5813_v53  ;;  %v2704_v50 = vpack.c.bf16 %v2652_v32, %v2651_v52 }
 0x1dc   :  { %4816 = verf.f32 %v717_v41  ;;  %4559 = vmatprep.mubr.bf16.mxu0 %v2701_v3  ;;  %v718_v61 = vmul.f32 0.70710677, %v5816_v26  ;;  %v954_v28 = vpack.c.bf16 %v904_v55, %v903_v54  ;;  %v655_v51 = vmul.f32 0.5, %v5801_v33 }
 0x1dd   :  { %v4807_v4 = vpop.eup %4806  ;;  %4818 = verf.f32 %v720_v58  ;;  %v953_v34 = vpack.c.bf16 %v902_v57, %v901_v42  ;;  %v2705_v55 = vpack.c.bf16 %v2654_v39, %v2653_v7  ;;  %v653_v57 = vmul.f32 0.5, %v5805_v43 }
 0x1de   :  { %v4809_v2 = vpop.eup %4808  ;;  %v4261_v5 = vpop.f32.mrb[36].mxu0  ;;  %v843_v6 = vadd.f32 1.0, %v4807_v4  ;;  %4820 = verf.f32 %v718_v61  ;;  %v656_v58 = vmul.f32 0.5, %v5813_v53  ;;  %v654_v61 = vmul.f32 0.5, %v5816_v26  ;;  %v2655_v26 = vld [vmem:[#allocation7 + $0xd0] sm:$0xff] }
 0x1df   :  { %v5821_v9 = vadd.f32 %v4261_v5, %v5658_v8  ;;  %v510_v10 = vpop.f32.mrb[37].mxu0  ;;  %v4811_v13 = vpop.eup %4810  ;;  %v841_v45 = vadd.f32 1.0, %v4809_v2  ;;  %4327 = vmatprep.mubr.bf16.mxu1 %v953_v34 }
 0x1e0   :  { %v5825_v47 = vadd.f32 %v5658_v8, %v510_v10  ;;  %v4262_v17 = vpop.f32.mrb[38].mxu0  ;;  %v4813_v63 = vpop.eup %4812  ;;  %v844_v40 = vadd.f32 1.0, %v4811_v13  ;;  %4328 = vmatmul.mubr.bf16.gmra.mrb[24].mxu1 %v954_v28  ;;  %v907_v11 = vmul.f32 %v843_v6, %v651_v14  ;;  %v2656_v6 = vld [vmem:[#allocation7 + $0xd8] sm:$0xff]  ;;  %v2657_v14 = vld [vmem:[#allocation7 + $0xe0] sm:$0xff] }
 0x1e1   :  { %v723_v22 = vmul.f32 0.70710677, %v5821_v9  ;;  %v513_v23 = vpop.f32.mrb[39].mxu0  ;;  %v842_v60 = vadd.f32 1.0, %v4813_v63  ;;  %v5833_v25 = vadd.f32 %v4262_v17, %v5658_v8  ;;  %v905_v15 = vmul.f32 %v841_v45, %v649_v19  ;;  %v2658_v45 = vld [vmem:[#allocation7 + $0xe8] sm:$0xff] }
 0x1e2   :  { %v721_v56 = vmul.f32 0.70710677, %v5825_v47  ;;  %v908_v27 = vmul.f32 %v844_v40, %v652_v21  ;;  %v5836_v38 = vadd.f32 %v5658_v8, %v513_v23 }
 0x1e3   :  { %4822 = verf.f32 %v723_v22  ;;  %4560 = vmatmul.mubr.bf16.gmra.mrb[144].mxu0 %v2702_v12  ;;  %v906_v29 = vmul.f32 %v842_v60, %v650_v24  ;;  %v724_v30 = vmul.f32 0.70710677, %v5833_v25  ;;  %v2706_v22 = vpack.c.bf16 %v2656_v6, %v2655_v26 }
 0x1e4   :  { %4824 = verf.f32 %v721_v56  ;;  %4563 = vmatprep.mubr.bf16.mxu0 %v2703_v18  ;;  %v722_v36 = vmul.f32 0.70710677, %v5836_v38  ;;  %v956_v37 = vpack.c.bf16 %v908_v27, %v907_v11  ;;  %v659_v24 = vmul.f32 0.5, %v5821_v9 }
 0x1e5   :  { %v4815_v35 = vpop.eup %4814  ;;  %4826 = verf.f32 %v724_v30  ;;  %v955_v62 = vpack.c.bf16 %v906_v29, %v905_v15  ;;  %v2707_v27 = vpack.c.bf16 %v2658_v45, %v2657_v14  ;;  %v657_v29 = vmul.f32 0.5, %v5825_v47 }
 0x1e6   :  { %v4817_v44 = vpop.eup %4816  ;;  %v4265_v3 = vpop.f32.mrb[40].mxu0  ;;  %v847_v46 = vadd.f32 1.0, %v4815_v35  ;;  %4828 = verf.f32 %v722_v36  ;;  %v660_v30 = vmul.f32 0.5, %v5833_v25  ;;  %v658_v36 = vmul.f32 0.5, %v5836_v38  ;;  %v2659_v38 = vld [vmem:[#allocation7 + $0xf0] sm:$0xff] }
 0x1e7   :  { %v5841_v48 = vadd.f32 %v4265_v3, %v5658_v8  ;;  %v526_v49 = vpop.f32.mrb[41].mxu0  ;;  %v4819_v31 = vpop.eup %4818  ;;  %v845_v20 = vadd.f32 1.0, %v4817_v44  ;;  %4331 = vmatprep.mubr.bf16.mxu1 %v955_v62 }
 0x1e8   :  { %v5845_v41 = vadd.f32 %v5658_v8, %v526_v49  ;;  %v4266_v54 = vpop.f32.mrb[42].mxu0  ;;  %v4821_v42 = vpop.eup %4820  ;;  %v848_v16 = vadd.f32 1.0, %v4819_v31  ;;  %4332 = vmatmul.mubr.bf16.gmra.mrb[28].mxu1 %v956_v37  ;;  %v911_v1 = vmul.f32 %v847_v46, %v655_v51  ;;  %v2660_v46 = vld [vmem:[#allocation7 + $0xf8] sm:$0xff]  ;;  %v2661_v51 = vld [vmem:[#allocation7 + $0x100] sm:$0xff] }
 0x1e9   :  { %v727_v59 = vmul.f32 0.70710677, %v5841_v48  ;;  %v529_v4 = vpop.f32.mrb[43].mxu0  ;;  %v846_v33 = vadd.f32 1.0, %v4821_v42  ;;  %v5853_v0 = vadd.f32 %v4266_v54, %v5658_v8  ;;  %v909_v53 = vmul.f32 %v845_v20, %v653_v57  ;;  %v2662_v20 = vld [vmem:[#allocation7 + $0x108] sm:$0xff] }
 0x1ea   :  { %v725_v28 = vmul.f32 0.70710677, %v5845_v41  ;;  %v912_v2 = vmul.f32 %v848_v16, %v656_v58  ;;  %v5856_v43 = vadd.f32 %v5658_v8, %v529_v4  ;;  %v5883_v57 = vld [vmem:[%s6918_s4] ss:$0 sm:$0xff] }
 0x1eb   :  { %4830 = verf.f32 %v727_v59  ;;  %4564 = vmatmul.mubr.bf16.gmra.mrb[148].mxu0 %v2704_v50  ;;  %v910_v5 = vmul.f32 %v846_v33, %v654_v61  ;;  %v728_v34 = vmul.f32 0.70710677, %v5853_v0  ;;  %v2708_v59 = vpack.c.bf16 %v2660_v46, %v2659_v38 }
 0x1ec   :  { %4832 = verf.f32 %v725_v28  ;;  %4567 = vmatprep.mubr.bf16.mxu0 %v2705_v55  ;;  %v726_v12 = vmul.f32 0.70710677, %v5856_v43  ;;  %v958_v13 = vpack.c.bf16 %v912_v2, %v911_v1  ;;  %v663_v61 = vmul.f32 0.5, %v5841_v48 }
 0x1ed   :  { %v4823_v10 = vpop.eup %4822  ;;  %4834 = verf.f32 %v728_v34  ;;  %v957_v63 = vpack.c.bf16 %v910_v5, %v909_v53  ;;  %v2709_v2 = vpack.c.bf16 %v2662_v20, %v2661_v51  ;;  %v661_v5 = vmul.f32 0.5, %v5845_v41 }
 0x1ee   :  { %v4825_v17 = vpop.eup %4824  ;;  %v4269_v18 = vpop.f32.mrb[44].mxu0  ;;  %v851_v19 = vadd.f32 1.0, %v4823_v10  ;;  %4836 = verf.f32 %v726_v12  ;;  %v664_v34 = vmul.f32 0.5, %v5853_v0  ;;  %v662_v12 = vmul.f32 0.5, %v5856_v43  ;;  %v2663_v43 = vld [vmem:[#allocation7 + $0x110] sm:$0xff] }
 0x1ef   :  { %v5861_v21 = vadd.f32 %v4269_v18, %v5658_v8  ;;  %v542_v40 = vpop.f32.mrb[45].mxu0  ;;  %v4827_v23 = vpop.eup %4826  ;;  %v849_v60 = vadd.f32 1.0, %v4825_v17  ;;  %4335 = vmatprep.mubr.bf16.mxu1 %v957_v63 }
 0x1f0   :  { %v5865_v56 = vadd.f32 %v5658_v8, %v542_v40  ;;  %v4270_v11 = vpop.f32.mrb[46].mxu0  ;;  %v4829_v15 = vpop.eup %4828  ;;  %v852_v52 = vadd.f32 1.0, %v4827_v23  ;;  %4336 = vmatmul.mubr.bf16.gmra.mrb[32].mxu1 %v958_v13  ;;  %v915_v39 = vmul.f32 %v851_v19, %v659_v24  ;;  %v2664_v19 = vld [vmem:[#allocation7 + $0x118] sm:$0xff]  ;;  %v2665_v24 = vld [vmem:[#allocation7 + $0x120] sm:$0xff] }
 0x1f1   :  { %v731_v32 = vmul.f32 0.70710677, %v5861_v21  ;;  %v545_v35 = vpop.f32.mrb[47].mxu0  ;;  %v850_v9 = vadd.f32 1.0, %v4829_v15  ;;  %v5873_v7 = vadd.f32 %v4270_v11, %v5658_v8  ;;  %v913_v25 = vmul.f32 %v849_v60, %v657_v29  ;;  %v2666_v60 = vld [vmem:[#allocation7 + $0x128] sm:$0xff] }
 0x1f2   :  { %v729_v37 = vmul.f32 0.70710677, %v5865_v56  ;;  %v916_v44 = vmul.f32 %v852_v52, %v660_v30  ;;  %v5876_v47 = vadd.f32 %v5658_v8, %v545_v35 }
 0x1f3   :  { %4838 = verf.f32 %v731_v32  ;;  %4568 = vmatmul.mubr.bf16.gmra.mrb[152].mxu0 %v2706_v22  ;;  %v914_v3 = vmul.f32 %v850_v9, %v658_v36  ;;  %v732_v62 = vmul.f32 0.70710677, %v5873_v7  ;;  %v2710_v32 = vpack.c.bf16 %v2664_v19, %v2663_v43 }
 0x1f4   :  { %4840 = verf.f32 %v729_v37  ;;  %4571 = vmatprep.mubr.bf16.mxu0 %v2707_v27  ;;  %v730_v50 = vmul.f32 0.70710677, %v5876_v47  ;;  %v960_v31 = vpack.c.bf16 %v916_v44, %v915_v39  ;;  %v667_v36 = vmul.f32 0.5, %v5861_v21 }
 0x1f5   :  { %v4831_v49 = vpop.eup %4830  ;;  %4842 = verf.f32 %v732_v62  ;;  %v959_v8 = vpack.c.bf16 %v914_v3, %v913_v25  ;;  %v2711_v44 = vpack.c.bf16 %v2666_v60, %v2665_v24  ;;  %v665_v3 = vmul.f32 0.5, %v5865_v56 }
 0x1f6   :  { %v4833_v54 = vpop.eup %4832  ;;  %v4273_v55 = vpop.f32.mrb[48].mxu0  ;;  %v855_v42 = vadd.f32 1.0, %v4831_v49  ;;  %4844 = verf.f32 %v730_v50  ;;  %v668_v62 = vmul.f32 0.5, %v5873_v7  ;;  %v666_v50 = vmul.f32 0.5, %v5876_v47  ;;  %v2667_v47 = vld [vmem:[#allocation7 + $0x130] sm:$0xff] }
 0x1f7   :  { %v5886_v58 = vadd.f32 %v5883_v57, %v4273_v55  ;;  %v558_v16 = vpop.f32.mrb[49].mxu0  ;;  %v4835_v4 = vpop.eup %4834  ;;  %v853_v33 = vadd.f32 1.0, %v4833_v54  ;;  %4339 = vmatprep.mubr.bf16.mxu1 %v959_v8 }
 0x1f8   :  { %v5890_v28 = vadd.f32 %v5883_v57, %v558_v16  ;;  %v4274_v1 = vpop.f32.mrb[50].mxu0  ;;  %v4837_v53 = vpop.eup %4836  ;;  %v856_v26 = vadd.f32 1.0, %v4835_v4  ;;  %4340 = vmatmul.mubr.bf16.gmra.mrb[36].mxu1 %v960_v31  ;;  %v919_v45 = vmul.f32 %v855_v42, %v663_v61  ;;  %v2668_v42 = vld [vmem:[#allocation7 + $0x138] sm:$0xff]  ;;  %v2669_v61 = vld [vmem:[#allocation7 + $0x140] sm:$0xff] }
 0x1f9   :  { %v735_v6 = vmul.f32 0.70710677, %v5886_v58  ;;  %v561_v10 = vpop.f32.mrb[51].mxu0  ;;  %v854_v48 = vadd.f32 1.0, %v4837_v53  ;;  %v5898_v14 = vadd.f32 %v5883_v57, %v4274_v1  ;;  %v917_v0 = vmul.f32 %v853_v33, %v661_v5  ;;  %v2670_v33 = vld [vmem:[#allocation7 + $0x148] sm:$0xff] }
 0x1fa   :  { %v733_v13 = vmul.f32 0.70710677, %v5890_v28  ;;  %v920_v17 = vmul.f32 %v856_v26, %v664_v34  ;;  %v5901_v41 = vadd.f32 %v5883_v57, %v561_v10 }
 0x1fb   :  { %4846 = verf.f32 %v735_v6  ;;  %4572 = vmatmul.mubr.bf16.gmra.mrb[156].mxu0 %v2708_v59  ;;  %v918_v18 = vmul.f32 %v854_v48, %v662_v12  ;;  %v736_v63 = vmul.f32 0.70710677, %v5898_v14  ;;  %v2712_v6 = vpack.c.bf16 %v2668_v42, %v2667_v47 }
 0x1fc   :  { %4848 = verf.f32 %v733_v13  ;;  %4575 = vmatprep.mubr.bf16.mxu0 %v2709_v2  ;;  %v734_v22 = vmul.f32 0.70710677, %v5901_v41  ;;  %v962_v23 = vpack.c.bf16 %v920_v17, %v919_v45  ;;  %v671_v12 = vmul.f32 0.5, %v5886_v58 }
 0x1fd   :  { %v4839_v40 = vpop.eup %4838  ;;  %4850 = verf.f32 %v736_v63  ;;  %v961_v15 = vpack.c.bf16 %v918_v18, %v917_v0  ;;  %v2713_v17 = vpack.c.bf16 %v2670_v33, %v2669_v61  ;;  %v669_v18 = vmul.f32 0.5, %v5890_v28 }
 0x1fe   :  { %v4841_v11 = vpop.eup %4840  ;;  %v4277_v27 = vpop.f32.mrb[52].mxu0  ;;  %v859_v29 = vadd.f32 1.0, %v4839_v40  ;;  %4852 = verf.f32 %v734_v22  ;;  %v672_v63 = vmul.f32 0.5, %v5898_v14  ;;  %v670_v22 = vmul.f32 0.5, %v5901_v41  ;;  %v2671_v41 = vld [vmem:[#allocation7 + $0x150] sm:$0xff] }
 0x1ff   :  { %v5906_v30 = vadd.f32 %v5883_v57, %v4277_v27  ;;  %v574_v52 = vpop.f32.mrb[53].mxu0  ;;  %v4843_v35 = vpop.eup %4842  ;;  %v857_v9 = vadd.f32 1.0, %v4841_v11  ;;  %4343 = vmatprep.mubr.bf16.mxu1 %v961_v15 }
 0x200   :  { %v5910_v37 = vadd.f32 %v5883_v57, %v574_v52  ;;  %v4278_v39 = vpop.f32.mrb[54].mxu0  ;;  %v4845_v25 = vpop.eup %4844  ;;  %v860_v38 = vadd.f32 1.0, %v4843_v35  ;;  %4344 = vmatmul.mubr.bf16.gmra.mrb[40].mxu1 %v962_v23  ;;  %v923_v20 = vmul.f32 %v859_v29, %v667_v36  ;;  %v2672_v29 = vld [vmem:[#allocation7 + $0x158] sm:$0xff]  ;;  %v2673_v36 = vld [vmem:[#allocation7 + $0x160] sm:$0xff] }
 0x201   :  { %v739_v46 = vmul.f32 0.70710677, %v5906_v30  ;;  %v577_v49 = vpop.f32.mrb[55].mxu0  ;;  %v858_v21 = vadd.f32 1.0, %v4845_v25  ;;  %v5918_v51 = vadd.f32 %v5883_v57, %v4278_v39  ;;  %v921_v7 = vmul.f32 %v857_v9, %v665_v3  ;;  %v2674_v9 = vld [vmem:[#allocation7 + $0x168] sm:$0xff] }
 0x202   :  { %v737_v31 = vmul.f32 0.70710677, %v5910_v37  ;;  %v924_v54 = vmul.f32 %v860_v38, %v668_v62  ;;  %v5921_v56 = vadd.f32 %v5883_v57, %v577_v49 }
 0x203   :  { %4854 = verf.f32 %v739_v46  ;;  %4576 = vmatmul.mubr.bf16.gmra.mrb[160].mxu0 %v2710_v32  ;;  %v922_v55 = vmul.f32 %v858_v21, %v666_v50  ;;  %v740_v8 = vmul.f32 0.70710677, %v5918_v51  ;;  %v2714_v46 = vpack.c.bf16 %v2672_v29, %v2671_v41 }
 0x204   :  { %4856 = verf.f32 %v737_v31  ;;  %4579 = vmatprep.mubr.bf16.mxu0 %v2711_v44  ;;  %v738_v59 = vmul.f32 0.70710677, %v5921_v56  ;;  %v964_v4 = vpack.c.bf16 %v924_v54, %v923_v20  ;;  %v675_v50 = vmul.f32 0.5, %v5906_v30 }
 0x205   :  { %v4847_v16 = vpop.eup %4846  ;;  %4858 = verf.f32 %v740_v8  ;;  %v963_v53 = vpack.c.bf16 %v922_v55, %v921_v7  ;;  %v2715_v54 = vpack.c.bf16 %v2674_v9, %v2673_v36  ;;  %v673_v55 = vmul.f32 0.5, %v5910_v37 }
 0x206   :  { %v4849_v1 = vpop.eup %4848  ;;  %v4281_v2 = vpop.f32.mrb[56].mxu0  ;;  %v863_v5 = vadd.f32 1.0, %v4847_v16  ;;  %4860 = verf.f32 %v738_v59  ;;  %v676_v8 = vmul.f32 0.5, %v5918_v51  ;;  %v674_v59 = vmul.f32 0.5, %v5921_v56  ;;  %v5967_v56 = vld [vmem:[%s6922_s8] ss:$0 sm:$0xff] }
 0x207   :  { %v5926_v34 = vadd.f32 %v5883_v57, %v4281_v2  ;;  %v590_v26 = vpop.f32.mrb[57].mxu0  ;;  %v4851_v10 = vpop.eup %4850  ;;  %v861_v48 = vadd.f32 1.0, %v4849_v1  ;;  %4347 = vmatprep.mubr.bf16.mxu1 %v963_v53 }
 0x208   :  { %v5930_v13 = vadd.f32 %v5883_v57, %v590_v26  ;;  %v4282_v45 = vpop.f32.mrb[58].mxu0  ;;  %v4853_v0 = vpop.eup %4852  ;;  %v864_v43 = vadd.f32 1.0, %v4851_v10  ;;  %4348 = vmatmul.mubr.bf16.gmra.mrb[44].mxu1 %v964_v4  ;;  %v927_v60 = vmul.f32 %v863_v5, %v671_v12  ;;  %v2675_v5 = vld [vmem:[#allocation7 + $0x170] sm:$0xff]  ;;  %v2676_v26 = vld [vmem:[#allocation7 + $0x178] sm:$0xff] }
 0x209   :  { %v743_v19 = vmul.f32 0.70710677, %v5926_v34  ;;  %v593_v40 = vpop.f32.mrb[59].mxu0  ;;  %v862_v58 = vadd.f32 1.0, %v4853_v0  ;;  %v5938_v24 = vadd.f32 %v5883_v57, %v4282_v45  ;;  %v925_v14 = vmul.f32 %v861_v48, %v669_v18  ;;  %v2678_v48 = vld [vmem:[#allocation7 + $0x188] sm:$0xff] }
 0x20a   :  { %v741_v23 = vmul.f32 0.70710677, %v5930_v13  ;;  %v928_v11 = vmul.f32 %v864_v43, %v672_v63  ;;  %v5941_v28 = vadd.f32 %v5883_v57, %v593_v40 }
 0x20b   :  { %4862 = verf.f32 %v743_v19  ;;  %4580 = vmatmul.mubr.bf16.gmra.mrb[164].mxu0 %v2712_v6  ;;  %v926_v27 = vmul.f32 %v862_v58, %v670_v22  ;;  %v744_v15 = vmul.f32 0.70710677, %v5938_v24  ;;  %v2716_v19 = vpack.c.bf16 %v2676_v26, %v2675_v5 }
 0x20c   :  { %4864 = verf.f32 %v741_v23  ;;  %4583 = vmatprep.mubr.bf16.mxu0 %v2713_v17  ;;  %v742_v32 = vmul.f32 0.70710677, %v5941_v28  ;;  %v966_v35 = vpack.c.bf16 %v928_v11, %v927_v60  ;;  %v679_v22 = vmul.f32 0.5, %v5926_v34 }
 0x20d   :  { %v4855_v52 = vpop.eup %4854  ;;  %4866 = verf.f32 %v744_v15  ;;  %v965_v25 = vpack.c.bf16 %v926_v27, %v925_v14  ;;  %v677_v27 = vmul.f32 0.5, %v5930_v13  ;;  %v680_v15 = vmul.f32 0.5, %v5938_v24 }
 0x20e   :  { %v4857_v39 = vpop.eup %4856  ;;  %v4285_v44 = vpop.f32.mrb[60].mxu0  ;;  %v867_v3 = vadd.f32 1.0, %v4855_v52  ;;  %4868 = verf.f32 %v742_v32  ;;  %v678_v32 = vmul.f32 0.5, %v5941_v28  ;;  %v2679_v28 = vld [vmem:[#allocation7 + $0x190] sm:$0xff] }
 0x20f   :  { %v5946_v62 = vadd.f32 %v5883_v57, %v4285_v44  ;;  %v606_v38 = vpop.f32.mrb[61].mxu0  ;;  %v4859_v49 = vpop.eup %4858  ;;  %v865_v21 = vadd.f32 1.0, %v4857_v39  ;;  %4351 = vmatprep.mubr.bf16.mxu1 %v965_v25 }
 0x210   :  { %v5950_v31 = vadd.f32 %v5883_v57, %v606_v38  ;;  %v4286_v20 = vpop.f32.mrb[62].mxu0  ;;  %v4861_v7 = vpop.eup %4860  ;;  %v868_v47 = vadd.f32 1.0, %v4859_v49  ;;  %4352 = vmatmul.mubr.bf16.gmra.mrb[48].mxu1 %v966_v35  ;;  %v931_v33 = vmul.f32 %v867_v3, %v675_v50  ;;  %v2680_v3 = vld [vmem:[#allocation7 + $0x198] sm:$0xff]  ;;  %v2681_v50 = vld [vmem:[#allocation7 + $0x1a0] sm:$0xff] }
 0x211   :  { %v747_v42 = vmul.f32 0.70710677, %v5946_v62  ;;  %v609_v16 = vpop.f32.mrb[63].mxu0  ;;  %v866_v30 = vadd.f32 1.0, %v4861_v7  ;;  %v5958_v61 = vadd.f32 %v5883_v57, %v4286_v20  ;;  %v929_v51 = vmul.f32 %v865_v21, %v673_v55  ;;  %v2682_v21 = vld [vmem:[#allocation7 + $0x1a8] sm:$0xff] }
 0x212   :  { %v745_v4 = vmul.f32 0.70710677, %v5950_v31  ;;  %v932_v1 = vmul.f32 %v868_v47, %v676_v8  ;;  %v5961_v37 = vadd.f32 %v5883_v57, %v609_v16  ;;  %v2677_v57 = vld [vmem:[#allocation7 + $0x180] sm:$0xff] }
 0x213   :  { %4870 = verf.f32 %v747_v42  ;;  %4584 = vmatmul.mubr.bf16.gmra.mrb[168].mxu0 %v2714_v46  ;;  %v930_v2 = vmul.f32 %v866_v30, %v674_v59  ;;  %v748_v53 = vmul.f32 0.70710677, %v5958_v61  ;;  %v2717_v11 = vpack.c.bf16 %v2678_v48, %v2677_v57 }
 0x214   :  { %4872 = verf.f32 %v745_v4  ;;  %4587 = vmatprep.mubr.bf16.mxu0 %v2715_v54  ;;  %v746_v10 = vmul.f32 0.70710677, %v5961_v37  ;;  %v968_v12 = vpack.c.bf16 %v932_v1, %v931_v33  ;;  %v2718_v42 = vpack.c.bf16 %v2680_v3, %v2679_v28 }
 0x215   :  { %v4863_v6 = vpop.eup %4862  ;;  %4874 = verf.f32 %v748_v53  ;;  %v967_v0 = vpack.c.bf16 %v930_v2, %v929_v51  ;;  %v683_v59 = vmul.f32 0.5, %v5946_v62  ;;  %v2719_v1 = vpack.c.bf16 %v2682_v21, %v2681_v50 }
 0x216   :  { %v4865_v45 = vpop.eup %4864  ;;  %v4385_v17 = vpop.f32.mrb[64].mxu0  ;;  %v871_v18 = vadd.f32 1.0, %v4863_v6  ;;  %4876 = verf.f32 %v746_v10  ;;  %v681_v2 = vmul.f32 0.5, %v5950_v31  ;;  %v684_v53 = vmul.f32 0.5, %v5958_v61 }
 0x217   :  { %v5971_v63 = vadd.f32 %v4385_v17, %v5967_v56  ;;  %v1598_v43 = vpop.f32.mrb[65].mxu0  ;;  %v4867_v40 = vpop.eup %4866  ;;  %v869_v58 = vadd.f32 1.0, %v4865_v45  ;;  %4355 = vmatprep.mubr.bf16.mxu1 %v967_v0  ;;  %v682_v10 = vmul.f32 0.5, %v5961_v37  ;;  %v2683_v37 = vld [vmem:[#allocation7 + $0x1b0] sm:$0xff] }
 0x218   :  { %v5975_v23 = vadd.f32 %v5967_v56, %v1598_v43  ;;  %v4386_v60 = vpop.f32.mrb[66].mxu0  ;;  %v4869_v14 = vpop.eup %4868  ;;  %v872_v41 = vadd.f32 1.0, %v4867_v40  ;;  %4356 = vmatmul.mubr.bf16.gmra.mrb[52].mxu1 %v968_v12  ;;  %v935_v9 = vmul.f32 %v871_v18, %v679_v22  ;;  %v2684_v18 = vld [vmem:[#allocation7 + $0x1b8] sm:$0xff]  ;;  %v2685_v22 = vld [vmem:[#allocation7 + $0x1c0] sm:$0xff] }
 0x219   :  { %v1919_v29 = vmul.f32 0.70710677, %v5971_v63  ;;  %v1601_v52 = vpop.f32.mrb[67].mxu0  ;;  %v870_v34 = vadd.f32 1.0, %v4869_v14  ;;  %v5983_v36 = vadd.f32 %v4386_v60, %v5967_v56  ;;  %v933_v24 = vmul.f32 %v869_v58, %v677_v27  ;;  %v2686_v58 = vld [vmem:[#allocation7 + $0x1c8] sm:$0xff] }
 0x21a   :  { %v1917_v35 = vmul.f32 0.70710677, %v5975_v23  ;;  %v936_v39 = vmul.f32 %v872_v41, %v680_v15  ;;  %v5986_v13 = vadd.f32 %v5967_v56, %v1601_v52 }
 0x21b   :  { %4878 = verf.f32 %v1919_v29  ;;  %4588 = vmatmul.mubr.bf16.gmra.mrb[172].mxu0 %v2716_v19  ;;  %v934_v44 = vmul.f32 %v870_v34, %v678_v32  ;;  %v1920_v25 = vmul.f32 0.70710677, %v5983_v36  ;;  %v2720_v29 = vpack.c.bf16 %v2684_v18, %v2683_v37 }
 0x21c   :  { %4880 = verf.f32 %v1917_v35  ;;  %4591 = vmatprep.mubr.bf16.mxu0 %v2717_v11  ;;  %v1918_v46 = vmul.f32 0.70710677, %v5986_v13  ;;  %v970_v49 = vpack.c.bf16 %v936_v39, %v935_v9  ;;  %v1855_v32 = vmul.f32 0.5, %v5971_v63 }
 0x21d   :  { %v4871_v38 = vpop.eup %4870  ;;  %4882 = verf.f32 %v1920_v25  ;;  %v969_v7 = vpack.c.bf16 %v934_v44, %v933_v24  ;;  %v2721_v39 = vpack.c.bf16 %v2686_v58, %v2685_v22  ;;  %v1853_v44 = vmul.f32 0.5, %v5975_v23 }
 0x21e   :  { %v4873_v20 = vpop.eup %4872  ;;  %v4389_v54 = vpop.f32.mrb[68].mxu0  ;;  %v875_v55 = vadd.f32 1.0, %v4871_v38  ;;  %4884 = verf.f32 %v1918_v46  ;;  %v1856_v25 = vmul.f32 0.5, %v5983_v36  ;;  %v1854_v46 = vmul.f32 0.5, %v5986_v13  ;;  %v2687_v13 = vld [vmem:[#allocation7 + $0x1d0] sm:$0xff] }
 0x21f   :  { %v5991_v8 = vadd.f32 %v4389_v54, %v5967_v56  ;;  %v1614_v47 = vpop.f32.mrb[69].mxu0  ;;  %v4875_v16 = vpop.eup %4874  ;;  %v873_v30 = vadd.f32 1.0, %v4873_v20  ;;  %4359 = vmatprep.mubr.bf16.mxu1 %v969_v7 }
 0x220   :  { %v5995_v4 = vadd.f32 %v5967_v56, %v1614_v47  ;;  %v4390_v33 = vpop.f32.mrb[70].mxu0  ;;  %v4877_v51 = vpop.eup %4876  ;;  %v876_v5 = vadd.f32 1.0, %v4875_v16  ;;  %4360 = vmatmul.mubr.bf16.gmra.mrb[56].mxu1 %v970_v49  ;;  %v939_v48 = vmul.f32 %v875_v55, %v683_v59  ;;  %v2688_v55 = vld [vmem:[#allocation7 + $0x1d8] sm:$0xff]  ;;  %v2689_v59 = vld [vmem:[#allocation7 + $0x1e0] sm:$0xff] }
 0x221   :  { %v1923_v26 = vmul.f32 0.70710677, %v5991_v8  ;;  %v1617_v6 = vpop.f32.mrb[71].mxu0  ;;  %v874_v62 = vadd.f32 1.0, %v4877_v51  ;;  %v6003_v57 = vadd.f32 %v4390_v33, %v5967_v56  ;;  %v937_v61 = vmul.f32 %v873_v30, %v681_v2  ;;  %v2690_v30 = vld [vmem:[#allocation7 + $0x1e8] sm:$0xff] }
 0x222   :  { %v1921_v12 = vmul.f32 0.70710677, %v5995_v4  ;;  %v940_v45 = vmul.f32 %v876_v5, %v684_v53  ;;  %v6006_v31 = vadd.f32 %v5967_v56, %v1617_v6  ;;  %v4743_v6 = vld [vmem:[%s6927_s13 + $0x8] sm:$0xff]  }
 0x223   :  { %4886 = verf.f32 %v1923_v26  ;;  %4592 = vmatmul.mubr.bf16.gmra.mrb[176].mxu0 %v2718_v42  ;;  %v938_v17 = vmul.f32 %v874_v62, %v682_v10  ;;  %v1924_v0 = vmul.f32 0.70710677, %v6003_v57  ;;  %v2722_v26 = vpack.c.bf16 %v2688_v55, %v2687_v13 }
 0x224   :  { %4888 = verf.f32 %v1921_v12  ;;  %4595 = vmatprep.mubr.bf16.mxu0 %v2719_v1  ;;  %v1922_v19 = vmul.f32 0.70710677, %v6006_v31  ;;  %v972_v40 = vpack.c.bf16 %v940_v45, %v939_v48  ;;  %v1859_v62 = vmul.f32 0.5, %v5991_v8 }
 0x225   :  { %v4879_v43 = vpop.eup %4878  ;;  %4890 = verf.f32 %v1924_v0  ;;  %v971_v14 = vpack.c.bf16 %v938_v17, %v937_v61  ;;  %v2723_v61 = vpack.c.bf16 %v2690_v30, %v2689_v59  ;;  %v1857_v0 = vmul.f32 0.5, %v5995_v4 }
 0x226   :  { %v4881_v60 = vpop.eup %4880  ;;  %v4393_v11 = vpop.f32.mrb[72].mxu0  ;;  %v2047_v27 = vadd.f32 1.0, %v4879_v43  ;;  %4892 = verf.f32 %v1922_v19  ;;  %v1860_v37 = vmul.f32 0.5, %v6003_v57 }
 0x227   :  { %v6011_v15 = vadd.f32 %v4393_v11, %v5967_v56  ;;  %v1630_v41 = vpop.f32.mrb[73].mxu0  ;;  %v4883_v52 = vpop.eup %4882  ;;  %v2045_v34 = vadd.f32 1.0, %v4881_v60  ;;  %4363 = vmatprep.mubr.bf16.mxu1 %v971_v14  ;;  %v5135_v60 = vld [vmem:[%s6927_s13] sm:$0xff]  }
 0x228   :  { %v6015_v35 = vadd.f32 %v5967_v56, %v1630_v41  ;;  %v4394_v9 = vpop.f32.mrb[74].mxu0  ;;  %v4885_v24 = vpop.eup %4884  ;;  %v2048_v28 = vadd.f32 1.0, %v4883_v52  ;;  %4364 = vmatmul.mubr.bf16.gmra.mrb[60].mxu1 %v972_v40  ;;  %v2111_v21 = vmul.f32 %v2047_v27, %v1855_v32  ;;  %v1858_v40 = vmul.f32 0.5, %v6006_v31  ;;  %v4744_v31 = vld [vmem:[%s6927_s13 + $0x10] sm:$0xff]   ;;  %v2692_v52 = vld [vmem:[#allocation7 + $0x1f8] sm:$0xff] }
 0x229   :  { %v1927_v3 = vmul.f32 0.70710677, %v6011_v15  ;;  %v1633_v38 = vpop.f32.mrb[75].mxu0  ;;  %v2046_v63 = vadd.f32 1.0, %v4885_v24  ;;  %v6023_v50 = vadd.f32 %v4394_v9, %v5967_v56  ;;  %v2109_v36 = vmul.f32 %v2045_v34, %v1853_v44 }
 0x22a   :  { %v1925_v49 = vmul.f32 0.70710677, %v6015_v35  ;;  %v2112_v20 = vmul.f32 %v2048_v28, %v1856_v25  ;;  %v6026_v23 = vadd.f32 %v5967_v56, %v1633_v38 }
 0x22b   :  { %4894 = verf.f32 %v1927_v3  ;;  %4596 = vmatmul.mubr.bf16.gmra.mrb[180].mxu0 %v2720_v29  ;;  %v2110_v54 = vmul.f32 %v2046_v63, %v1854_v46  ;;  %v1928_v7 = vmul.f32 0.70710677, %v6023_v50  ;;  %v2691_v29 = vld [vmem:[#allocation7 + $0x1f0] sm:$0xff]  ;;  %v4745_v46 = vld [vmem:[%s6927_s13 + $0x18] sm:$0xff]   ;;  %v1864_v13 = vmul.f32 0.5, %v6023_v50  ;;  %v4746_v50 = vld [vmem:[%s6927_s13 + $0x20] sm:$0xff]  }
 0x22c   :  { %4896 = verf.f32 %v1925_v49  ;;  %4599 = vmatprep.mubr.bf16.mxu0 %v2721_v39  ;;  %v2174_v42 = vpack.c.bf16 %v2112_v20, %v2111_v21  ;;  %v1926_v16 = vmul.f32 0.70710677, %v6026_v23  ;;  %v2724_v38 = vpack.c.bf16 %v2692_v52, %v2691_v29 }
 0x22d   :  { %v4887_v47 = vpop.eup %4886  ;;  %4898 = verf.f32 %v1928_v7  ;;  %v2173_v51 = vpack.c.bf16 %v2110_v54, %v2109_v36  ;;  %v1863_v49 = vmul.f32 0.5, %v6011_v15  ;;  %v1861_v7 = vmul.f32 0.5, %v6015_v35 }
 0x22e   :  { %v4889_v33 = vpop.eup %4888  ;;  %v4397_v1 = vpop.f32.mrb[76].mxu0  ;;  %v2051_v2 = vadd.f32 1.0, %v4887_v47  ;;  %4900 = verf.f32 %v1926_v16  ;;  %v1862_v16 = vmul.f32 0.5, %v6026_v23 }
 0x22f   :  { %v6031_v53 = vadd.f32 %v4397_v1, %v5967_v56  ;;  %v1646_v5 = vpop.f32.mrb[77].mxu0  ;;  %v4891_v10 = vpop.eup %4890  ;;  %v2049_v12 = vadd.f32 1.0, %v4889_v33  ;;  %4463 = vmatprep.mubr.bf16.mxu1 %v2173_v51 }
 0x230   :  { %v6038_v48 = vadd.f32 %v5967_v56, %v1646_v5  ;;  %v4398_v45 = vpop.f32.mrb[78].mxu0  ;;  %v4893_v17 = vpop.eup %4892  ;;  %v2052_v18 = vadd.f32 1.0, %v4891_v10  ;;  %4464 = vmatmul.mubr.bf16.vlgmr.msra.gmra.mrb[64].mxu1 %v2174_v42  ;;  %v2115_v4 = vmul.f32 %v2051_v2, %v1859_v62 }
 0x231   :  { %v1931_v43 = vmul.f32 0.70710677, %v6031_v53  ;;  %v1649_v19 = vpop.f32.mrb[79].mxu0  ;;  %v2050_v8 = vadd.f32 1.0, %v4893_v17  ;;  %v6046_v58 = vadd.f32 %v4398_v45, %v5967_v56  ;;  %4608 = vmatpush3.bf16.msra.mxu1 %v5135_v60  ;;  %v2113_v14 = vmul.f32 %v2049_v12, %v1857_v0  ;;  %v4747_v0 = vld [vmem:[%s6927_s13 + $0x28] sm:$0xff]  }
 0x232   :  { %v1929_v22 = vmul.f32 0.70710677, %v6038_v48  ;;  %v2116_v57 = vmul.f32 %v2052_v18, %v1860_v37  ;;  %v6052_v11 = vadd.f32 %v5967_v56, %v1649_v19  ;;  %4609 = vmatprep.subr.bf16.mxu1 %v4743_v6  ;;  %v1867_v18 = vmul.f32 0.5, %v6031_v53 }
 0x233   :  { %4902 = verf.f32 %v1931_v43  ;;  %4600 = vmatmul.mubr.bf16.gmra.mrb[184].mxu0 %v2722_v26  ;;  %v2114_v27 = vmul.f32 %v2050_v8, %v1858_v40  ;;  %v1932_v41 = vmul.f32 0.70710677, %v6046_v58  ;;  %v1868_v60 = vmul.f32 0.5, %v6046_v58  ;;  %v4748_v58 = vld [vmem:[%s6927_s13 + $0x30] sm:$0xff]  }
 0x234   :  { %4904 = verf.f32 %v1929_v22  ;;  %4603 = vmatprep.mubr.bf16.mxu0 %v2723_v61  ;;  %v1930_v34 = vmul.f32 0.70710677, %v6052_v11  ;;  %v2176_v9 = vpack.c.bf16 %v2116_v57, %v2115_v4  ;;  %v1865_v22 = vmul.f32 0.5, %v6038_v48 }
 0x235   :  { %v4895_v32 = vpop.eup %4894  ;;  %4906 = verf.f32 %v1932_v41  ;;  %v2175_v44 = vpack.c.bf16 %v2114_v27, %v2113_v14  ;;  %4610 = vmatpush3.bf16.msra.mxu1 %v4743_v6  ;;  %v1866_v14 = vmul.f32 0.5, %v6052_v11 }
 0x236   :  { %v4897_v39 = vpop.eup %4896  ;;  %v4401_v24 = vpop.f32.mrb[80].mxu0  ;;  %v2055_v25 = vadd.f32 1.0, %v4895_v32  ;;  %4908 = verf.f32 %v1930_v34  ;;  %4611 = vmatprep.subr.bf16.mxu1 %v4744_v31 }
 0x237   :  { %v6060_v28 = vadd.f32 %v4401_v24, %v5967_v56  ;;  %v1662_v3 = vpop.f32.mrb[81].mxu0  ;;  %v4899_v63 = vpop.eup %4898  ;;  %v2053_v21 = vadd.f32 1.0, %v4897_v39  ;;  %4467 = vmatprep.mubr.bf16.mxu1 %v2175_v44 }
 0x238   :  { %v6067_v20 = vadd.f32 %v5967_v56, %v1662_v3  ;;  %v4402_v36 = vpop.f32.mrb[82].mxu0  ;;  %v4901_v54 = vpop.eup %4900  ;;  %v2056_v55 = vadd.f32 1.0, %v4899_v63  ;;  %4468 = vmatmul.mubr.bf16.gmra.mrb[68].mxu1 %v2176_v9  ;;  %v2119_v33 = vmul.f32 %v2055_v25, %v1863_v49  ;;  %v4749_v49 = vld [vmem:[%s6927_s13 + $0x38] sm:$0xff]  }
 0x239   :  { %v1935_v47 = vmul.f32 0.70710677, %v6060_v28  ;;  %v1665_v42 = vpop.f32.mrb[83].mxu0  ;;  %v2054_v59 = vadd.f32 1.0, %v4901_v54  ;;  %v6075_v30 = vadd.f32 %v4402_v36, %v5967_v56  ;;  %4612 = vmatpush3.bf16.msra.mxu1 %v4744_v31  ;;  %v2117_v23 = vmul.f32 %v2053_v21, %v1861_v7 }
 0x23a   :  { %v1933_v15 = vmul.f32 0.70710677, %v6067_v20  ;;  %v2120_v1 = vmul.f32 %v2056_v55, %v1864_v13  ;;  %v6078_v35 = vadd.f32 %v5967_v56, %v1665_v42  ;;  %4613 = vmatprep.subr.bf16.mxu1 %v4745_v46  ;;  %v1871_v36 = vmul.f32 0.5, %v6060_v28 }
 0x23b   :  { %4910 = verf.f32 %v1935_v47  ;;  %4604 = vmatmul.mubr.bf16.gmra.mrb[188].mxu0 %v2724_v38  ;;  %v2118_v51 = vmul.f32 %v2054_v59, %v1862_v16  ;;  %v1936_v2 = vmul.f32 0.70710677, %v6075_v30  ;;  %v1869_v47 = vmul.f32 0.5, %v6067_v20 }
 0x23c   :  { %4912 = verf.f32 %v1933_v15  ;;  %v1934_v26 = vmul.f32 0.70710677, %v6078_v35  ;;  %v2178_v6 = vpack.c.bf16 %v2120_v1, %v2119_v33  ;;  %v1872_v42 = vmul.f32 0.5, %v6075_v30 }
 0x23d   :  { %v4903_v5 = vpop.eup %4902  ;;  %4914 = verf.f32 %v1936_v2  ;;  %v2177_v12 = vpack.c.bf16 %v2118_v51, %v2117_v23  ;;  %4614 = vmatpush3.bf16.msra.mxu1 %v4745_v46  ;;  %v1870_v33 = vmul.f32 0.5, %v6078_v35 }
 0x23e   :  { %v4905_v10 = vpop.eup %4904  ;;  %v4405_v62 = vpop.f32.mrb[84].mxu0  ;;  %v2059_v45 = vadd.f32 1.0, %v4903_v5  ;;  %4916 = verf.f32 %v1934_v26  ;;  %4615 = vmatprep.subr.bf16.mxu1 %v4746_v50 }
 0x23f   :  { %v6086_v61 = vadd.f32 %v4405_v62, %v5967_v56  ;;  %v1678_v17 = vpop.f32.mrb[85].mxu0  ;;  %v4907_v37 = vpop.eup %4906  ;;  %v2057_v43 = vadd.f32 1.0, %v4905_v10  ;;  %4471 = vmatprep.mubr.bf16.mxu1 %v2177_v12 }
 0x240   :  { %v6093_v19 = vadd.f32 %v5967_v56, %v1678_v17  ;;  %v4406_v40 = vpop.f32.mrb[86].mxu0  ;;  %v4909_v8 = vpop.eup %4908  ;;  %v2060_v4 = vadd.f32 1.0, %v4907_v37  ;;  %4472 = vmatmul.mubr.bf16.gmra.mrb[72].mxu1 %v2178_v6  ;;  %v2123_v29 = vmul.f32 %v2059_v45, %v1867_v18 }
 0x241   :  { %v1939_v57 = vmul.f32 0.70710677, %v6086_v61  ;;  %v1681_v31 = vpop.f32.mrb[87].mxu0  ;;  %v2058_v27 = vadd.f32 1.0, %v4909_v8  ;;  %v6101_v41 = vadd.f32 %v4406_v40, %v5967_v56  ;;  %4616 = vmatpush3.bf16.msra.mxu1 %v4746_v50  ;;  %v2121_v32 = vmul.f32 %v2057_v43, %v1865_v22 }
 0x242   :  { %v1937_v53 = vmul.f32 0.70710677, %v6093_v19  ;;  %v2124_v52 = vmul.f32 %v2060_v4, %v1868_v60  ;;  %v6104_v48 = vadd.f32 %v5967_v56, %v1681_v31  ;;  %4617 = vmatprep.subr.bf16.mxu1 %v4747_v0  ;;  %v1875_v18 = vmul.f32 0.5, %v6086_v61 }
 0x243   :  { %4918 = verf.f32 %v1939_v57  ;;  %v2122_v11 = vmul.f32 %v2058_v27, %v1866_v14  ;;  %v1940_v34 = vmul.f32 0.70710677, %v6101_v41  ;;  %v1873_v60 = vmul.f32 0.5, %v6093_v19 }
 0x244   :  { %4920 = verf.f32 %v1937_v53  ;;  %v1938_v39 = vmul.f32 0.70710677, %v6104_v48  ;;  %v2180_v24 = vpack.c.bf16 %v2124_v52, %v2123_v29  ;;  %v1876_v4 = vmul.f32 0.5, %v6101_v41 }
 0x245   :  { %v4911_v9 = vpop.eup %4910  ;;  %4922 = verf.f32 %v1940_v34  ;;  %v2179_v3 = vpack.c.bf16 %v2122_v11, %v2121_v32  ;;  %4618 = vmatpush3.bf16.msra.mxu1 %v4747_v0  ;;  %v1874_v27 = vmul.f32 0.5, %v6104_v48 }
 0x246   :  { %v4913_v44 = vpop.eup %4912  ;;  %v4409_v25 = vpop.f32.mrb[88].mxu0  ;;  %v2063_v38 = vadd.f32 1.0, %v4911_v9  ;;  %4924 = verf.f32 %v1938_v39  ;;  %4619 = vmatprep.subr.bf16.mxu1 %v4748_v58 }
 0x247   :  { %v6112_v46 = vadd.f32 %v4409_v25, %v5967_v56  ;;  %v1694_v63 = vpop.f32.mrb[89].mxu0  ;;  %v4915_v21 = vpop.eup %4914  ;;  %v2061_v54 = vadd.f32 1.0, %v4913_v44  ;;  %4475 = vmatprep.mubr.bf16.mxu1 %v2179_v3 }
 0x248   :  { %v6119_v7 = vadd.f32 %v5967_v56, %v1694_v63  ;;  %v4410_v13 = vpop.f32.mrb[90].mxu0  ;;  %v4917_v55 = vpop.eup %4916  ;;  %v2064_v16 = vadd.f32 1.0, %v4915_v21  ;;  %4476 = vmatmul.mubr.bf16.gmra.mrb[76].mxu1 %v2180_v24  ;;  %v2127_v23 = vmul.f32 %v2063_v38, %v1871_v36 }
 0x249   :  { %v1943_v59 = vmul.f32 0.70710677, %v6112_v46  ;;  %v1697_v15 = vpop.f32.mrb[91].mxu0  ;;  %v2062_v1 = vadd.f32 1.0, %v4917_v55  ;;  %v6127_v50 = vadd.f32 %v4410_v13, %v5967_v56  ;;  %4620 = vmatpush3.bf16.msra.mxu1 %v4748_v58  ;;  %v2125_v30 = vmul.f32 %v2061_v54, %v1869_v47 }
 0x24a   :  { %v1941_v28 = vmul.f32 0.70710677, %v6119_v7  ;;  %v2128_v51 = vmul.f32 %v2064_v16, %v1872_v42  ;;  %v6130_v20 = vadd.f32 %v5967_v56, %v1697_v15  ;;  %4621 = vmatprep.subr.bf16.mxu1 %v4749_v49  ;;  %v1877_v55 = vmul.f32 0.5, %v6119_v7 }
 0x24b   :  { %4926 = verf.f32 %v1943_v59  ;;  %v2126_v2 = vmul.f32 %v2062_v1, %v1870_v33  ;;  %v1944_v5 = vmul.f32 0.70710677, %v6127_v50  ;;  %v1880_v47 = vmul.f32 0.5, %v6127_v50 }
 0x24c   :  { %4928 = verf.f32 %v1941_v28  ;;  %v1942_v26 = vmul.f32 0.70710677, %v6130_v20  ;;  %v2182_v6 = vpack.c.bf16 %v2128_v51, %v2127_v23  ;;  %v1878_v15 = vmul.f32 0.5, %v6130_v20 }
 0x24d   :  { %v4919_v35 = vpop.eup %4918  ;;  %4930 = verf.f32 %v1944_v5  ;;  %v2181_v12 = vpack.c.bf16 %v2126_v2, %v2125_v30  ;;  %4622 = vmatpush3.bf16.msra.mxu1 %v4749_v49  ;;  %v1879_v49 = vmul.f32 0.5, %v6112_v46 }
 0x24e   :  { %v4921_v10 = vpop.eup %4920  ;;  %v4413_v62 = vpop.f32.mrb[92].mxu0  ;;  %v2067_v45 = vadd.f32 1.0, %v4919_v35  ;;  %4932 = verf.f32 %v1942_v26 }
 0x24f   :  { %v6135_v17 = vadd.f32 %v4413_v62, %v5967_v56  ;;  %v1710_v0 = vpop.f32.mrb[93].mxu0  ;;  %v4923_v37 = vpop.eup %4922  ;;  %v2065_v43 = vadd.f32 1.0, %v4921_v10  ;;  %4479 = vmatprep.mubr.bf16.mxu1 %v2181_v12 }
 0x250   :  { %v6139_v40 = vadd.f32 %v5967_v56, %v1710_v0  ;;  %v4414_v8 = vpop.f32.mrb[94].mxu0  ;;  %v4925_v22 = vpop.eup %4924  ;;  %v2068_v57 = vadd.f32 1.0, %v4923_v37  ;;  %4480 = vmatmul.mubr.bf16.gmra.mrb[80].mxu1 %v2182_v6  ;;  %v2131_v52 = vmul.f32 %v2067_v45, %v1875_v18 }
 0x251   :  { %v1947_v31 = vmul.f32 0.70710677, %v6135_v17  ;;  %v1713_v14 = vpop.f32.mrb[95].mxu0  ;;  %v2066_v53 = vadd.f32 1.0, %v4925_v22  ;;  %v6147_v29 = vadd.f32 %v4414_v8, %v5967_v56  ;;  %v2129_v41 = vmul.f32 %v2065_v43, %v1873_v60 }
 0x252   :  { %v1945_v61 = vmul.f32 0.70710677, %v6139_v40  ;;  %v2132_v58 = vmul.f32 %v2068_v57, %v1876_v4  ;;  %v6150_v19 = vadd.f32 %v5967_v56, %v1713_v14  ;;  %v1883_v0 = vmul.f32 0.5, %v6135_v17 }
 0x253   :  { %4934 = verf.f32 %v1947_v31  ;;  %v2130_v32 = vmul.f32 %v2066_v53, %v1874_v27  ;;  %v1948_v11 = vmul.f32 0.70710677, %v6147_v29  ;;  %v1881_v22 = vmul.f32 0.5, %v6139_v40 }
 0x254   :  { %4936 = verf.f32 %v1945_v61  ;;  %v1946_v48 = vmul.f32 0.70710677, %v6150_v19  ;;  %v2184_v9 = vpack.c.bf16 %v2132_v58, %v2131_v52  ;;  %v1884_v60 = vmul.f32 0.5, %v6147_v29 }
 0x255   :  { %v4927_v34 = vpop.eup %4926  ;;  %4938 = verf.f32 %v1948_v11  ;;  %v2183_v44 = vpack.c.bf16 %v2130_v32, %v2129_v41  ;;  %v1882_v14 = vmul.f32 0.5, %v6150_v19 }
 0x256   :  { %v4929_v39 = vpop.eup %4928  ;;  %v4417_v24 = vpop.f32.mrb[96].mxu0  ;;  %v2071_v25 = vadd.f32 1.0, %v4927_v34  ;;  %4940 = verf.f32 %v1946_v48 }
 0x257   :  { %v6155_v3 = vadd.f32 %v4417_v24, %v5967_v56  ;;  %v1726_v38 = vpop.f32.mrb[97].mxu0  ;;  %v4931_v63 = vpop.eup %4930  ;;  %v2069_v21 = vadd.f32 1.0, %v4929_v39  ;;  %4483 = vmatprep.mubr.bf16.mxu1 %v2183_v44 }
 0x258   :  { %v6159_v36 = vadd.f32 %v5967_v56, %v1726_v38  ;;  %v4418_v54 = vpop.f32.mrb[98].mxu0  ;;  %v4933_v13 = vpop.eup %4932  ;;  %v2072_v42 = vadd.f32 1.0, %v4931_v63  ;;  %4484 = vmatmul.mubr.bf16.gmra.mrb[84].mxu1 %v2184_v9  ;;  %v2135_v28 = vmul.f32 %v2071_v25, %v1879_v49 }
 0x259   :  { %v1951_v16 = vmul.f32 0.70710677, %v6155_v3  ;;  %v1729_v59 = vpop.f32.mrb[99].mxu0  ;;  %v2070_v33 = vadd.f32 1.0, %v4933_v13  ;;  %v6167_v1 = vadd.f32 %v4418_v54, %v5967_v56  ;;  %v2133_v50 = vmul.f32 %v2069_v21, %v1877_v55 }
 0x25a   :  { %v1949_v46 = vmul.f32 0.70710677, %v6159_v36  ;;  %v2136_v23 = vmul.f32 %v2072_v42, %v1880_v47  ;;  %v6170_v7 = vadd.f32 %v5967_v56, %v1729_v59  ;;  %v1887_v38 = vmul.f32 0.5, %v6155_v3 }
 0x25b   :  { %4942 = verf.f32 %v1951_v16  ;;  %v2134_v51 = vmul.f32 %v2070_v33, %v1878_v15  ;;  %v1952_v30 = vmul.f32 0.70710677, %v6167_v1  ;;  %v1885_v13 = vmul.f32 0.5, %v6159_v36 }
 0x25c   :  { %4944 = verf.f32 %v1949_v46  ;;  %v1950_v20 = vmul.f32 0.70710677, %v6170_v7  ;;  %v2186_v5 = vpack.c.bf16 %v2136_v23, %v2135_v28  ;;  %v1888_v55 = vmul.f32 0.5, %v6167_v1 }
 0x25d   :  { %v4935_v2 = vpop.eup %4934  ;;  %4946 = verf.f32 %v1952_v30  ;;  %v2185_v6 = vpack.c.bf16 %v2134_v51, %v2133_v50  ;;  %v1886_v59 = vmul.f32 0.5, %v6170_v7 }
 0x25e   :  { %v4937_v35 = vpop.eup %4936  ;;  %v4421_v26 = vpop.f32.mrb[100].mxu0  ;;  %v2075_v10 = vadd.f32 1.0, %v4935_v2  ;;  %4948 = verf.f32 %v1950_v20 }
 0x25f   :  { %v6175_v62 = vadd.f32 %v4421_v26, %v5967_v56  ;;  %v1742_v12 = vpop.f32.mrb[101].mxu0  ;;  %v4939_v45 = vpop.eup %4938  ;;  %v2073_v37 = vadd.f32 1.0, %v4937_v35  ;;  %4487 = vmatprep.mubr.bf16.mxu1 %v2185_v6 }
 0x260   :  { %v6179_v18 = vadd.f32 %v5967_v56, %v1742_v12  ;;  %v4422_v43 = vpop.f32.mrb[102].mxu0  ;;  %v4941_v8 = vpop.eup %4940  ;;  %v2076_v4 = vadd.f32 1.0, %v4939_v45  ;;  %4488 = vmatmul.mubr.bf16.gmra.mrb[88].mxu1 %v2186_v5  ;;  %v2139_v61 = vmul.f32 %v2075_v10, %v1883_v0 }
 0x261   :  { %v1955_v57 = vmul.f32 0.70710677, %v6175_v62  ;;  %v1745_v31 = vpop.f32.mrb[103].mxu0  ;;  %v2074_v27 = vadd.f32 1.0, %v4941_v8  ;;  %v6187_v53 = vadd.f32 %v4422_v43, %v5967_v56  ;;  %v2137_v29 = vmul.f32 %v2073_v37, %v1881_v22 }
 0x262   :  { %v1953_v17 = vmul.f32 0.70710677, %v6179_v18  ;;  %v2140_v52 = vmul.f32 %v2076_v4, %v1884_v60  ;;  %v6190_v40 = vadd.f32 %v5967_v56, %v1745_v31  ;;  %v1891_v12 = vmul.f32 0.5, %v6175_v62 }
 0x263   :  { %4950 = verf.f32 %v1955_v57  ;;  %v2138_v58 = vmul.f32 %v2074_v27, %v1882_v14  ;;  %v1956_v41 = vmul.f32 0.70710677, %v6187_v53  ;;  %v1889_v8 = vmul.f32 0.5, %v6179_v18 }
 0x264   :  { %4952 = verf.f32 %v1953_v17  ;;  %v1954_v19 = vmul.f32 0.70710677, %v6190_v40  ;;  %v2188_v11 = vpack.c.bf16 %v2140_v52, %v2139_v61  ;;  %v1892_v22 = vmul.f32 0.5, %v6187_v53 }
 0x265   :  { %v4943_v32 = vpop.eup %4942  ;;  %4954 = verf.f32 %v1956_v41  ;;  %v2187_v9 = vpack.c.bf16 %v2138_v58, %v2137_v29  ;;  %v1890_v31 = vmul.f32 0.5, %v6190_v40 }
 0x266   :  { %v4945_v34 = vpop.eup %4944  ;;  %v4425_v48 = vpop.f32.mrb[104].mxu0  ;;  %v2079_v39 = vadd.f32 1.0, %v4943_v32  ;;  %4956 = verf.f32 %v1954_v19 }
 0x267   :  { %v6195_v24 = vadd.f32 %v4425_v48, %v5967_v56  ;;  %v1758_v44 = vpop.f32.mrb[105].mxu0  ;;  %v4947_v25 = vpop.eup %4946  ;;  %v2077_v63 = vadd.f32 1.0, %v4945_v34  ;;  %4491 = vmatprep.mubr.bf16.mxu1 %v2187_v9 }
 0x268   :  { %v6199_v49 = vadd.f32 %v5967_v56, %v1758_v44  ;;  %v4426_v21 = vpop.f32.mrb[106].mxu0  ;;  %v4949_v54 = vpop.eup %4948  ;;  %v2080_v47 = vadd.f32 1.0, %v4947_v25  ;;  %4492 = vmatmul.mubr.bf16.gmra.mrb[92].mxu1 %v2188_v11  ;;  %v2143_v46 = vmul.f32 %v2079_v39, %v1887_v38 }
 0x269   :  { %v1959_v42 = vmul.f32 0.70710677, %v6195_v24  ;;  %v1761_v16 = vpop.f32.mrb[107].mxu0  ;;  %v2078_v15 = vadd.f32 1.0, %v4949_v54  ;;  %v6207_v33 = vadd.f32 %v4426_v21, %v5967_v56  ;;  %v2141_v1 = vmul.f32 %v2077_v63, %v1885_v13 }
 0x26a   :  { %v1957_v3 = vmul.f32 0.70710677, %v6199_v49  ;;  %v2144_v28 = vmul.f32 %v2080_v47, %v1888_v55  ;;  %v6210_v36 = vadd.f32 %v5967_v56, %v1761_v16  ;;  %v1895_v44 = vmul.f32 0.5, %v6195_v24 }
 0x26b   :  { %4958 = verf.f32 %v1959_v42  ;;  %v2142_v23 = vmul.f32 %v2078_v15, %v1886_v59  ;;  %v1960_v50 = vmul.f32 0.70710677, %v6207_v33  ;;  %v1893_v54 = vmul.f32 0.5, %v6199_v49 }
 0x26c   :  { %4960 = verf.f32 %v1957_v3  ;;  %v1958_v7 = vmul.f32 0.70710677, %v6210_v36  ;;  %v2190_v30 = vpack.c.bf16 %v2144_v28, %v2143_v46  ;;  %v1896_v13 = vmul.f32 0.5, %v6207_v33 }
 0x26d   :  { %v4951_v51 = vpop.eup %4950  ;;  %4962 = verf.f32 %v1960_v50  ;;  %v2189_v5 = vpack.c.bf16 %v2142_v23, %v2141_v1  ;;  %v1894_v16 = vmul.f32 0.5, %v6210_v36 }
 0x26e   :  { %v4953_v2 = vpop.eup %4952  ;;  %v4429_v20 = vpop.f32.mrb[108].mxu0  ;;  %v2083_v35 = vadd.f32 1.0, %v4951_v51  ;;  %4964 = verf.f32 %v1958_v7 }
 0x26f   :  { %v6215_v26 = vadd.f32 %v4429_v20, %v5967_v56  ;;  %v1774_v6 = vpop.f32.mrb[109].mxu0  ;;  %v4955_v10 = vpop.eup %4954  ;;  %v2081_v45 = vadd.f32 1.0, %v4953_v2  ;;  %4495 = vmatprep.mubr.bf16.mxu1 %v2189_v5 }
 0x270   :  { %v6219_v0 = vadd.f32 %v5967_v56, %v1774_v6  ;;  %v4430_v37 = vpop.f32.mrb[110].mxu0  ;;  %v4957_v43 = vpop.eup %4956  ;;  %v2084_v60 = vadd.f32 1.0, %v4955_v10  ;;  %4496 = vmatmul.mubr.bf16.gmra.mrb[96].mxu1 %v2190_v30  ;;  %v2147_v17 = vmul.f32 %v2083_v35, %v1891_v12 }
 0x271   :  { %v1963_v4 = vmul.f32 0.70710677, %v6215_v26  ;;  %v1777_v57 = vpop.f32.mrb[111].mxu0  ;;  %v2082_v14 = vadd.f32 1.0, %v4957_v43  ;;  %v6227_v27 = vadd.f32 %v4430_v37, %v5967_v56  ;;  %v2145_v53 = vmul.f32 %v2081_v45, %v1889_v8 }
 0x272   :  { %v1961_v62 = vmul.f32 0.70710677, %v6219_v0  ;;  %v2148_v61 = vmul.f32 %v2084_v60, %v1892_v22  ;;  %v6230_v18 = vadd.f32 %v5967_v56, %v1777_v57  ;;  %v1899_v6 = vmul.f32 0.5, %v6215_v26 }
 0x273   :  { %4966 = verf.f32 %v1963_v4  ;;  %v2146_v52 = vmul.f32 %v2082_v14, %v1890_v31  ;;  %v1964_v29 = vmul.f32 0.70710677, %v6227_v27  ;;  %v1897_v43 = vmul.f32 0.5, %v6219_v0 }
 0x274   :  { %4968 = verf.f32 %v1961_v62  ;;  %v1962_v40 = vmul.f32 0.70710677, %v6230_v18  ;;  %v2192_v41 = vpack.c.bf16 %v2148_v61, %v2147_v17  ;;  %v1900_v8 = vmul.f32 0.5, %v6227_v27  ;;  %v6277_v62 = vld [vmem:[%s6920_s6] ss:$0 sm:$0xff] }
 0x275   :  { %v4959_v58 = vpop.eup %4958  ;;  %4970 = verf.f32 %v1964_v29  ;;  %v2191_v11 = vpack.c.bf16 %v2146_v52, %v2145_v53  ;;  %v1898_v57 = vmul.f32 0.5, %v6230_v18 }
 0x276   :  { %v4961_v32 = vpop.eup %4960  ;;  %v4433_v19 = vpop.f32.mrb[112].mxu0  ;;  %v2087_v34 = vadd.f32 1.0, %v4959_v58  ;;  %4972 = verf.f32 %v1962_v40 }
 0x277   :  { %v6235_v48 = vadd.f32 %v4433_v19, %v5967_v56  ;;  %v1790_v9 = vpop.f32.mrb[113].mxu0  ;;  %v4963_v39 = vpop.eup %4962  ;;  %v2085_v25 = vadd.f32 1.0, %v4961_v32  ;;  %4499 = vmatprep.mubr.bf16.mxu1 %v2191_v11 }
 0x278   :  { %v6239_v38 = vadd.f32 %v5967_v56, %v1790_v9  ;;  %v4434_v63 = vpop.f32.mrb[114].mxu0  ;;  %v4965_v21 = vpop.eup %4964  ;;  %v2088_v55 = vadd.f32 1.0, %v4963_v39  ;;  %4500 = vmatmul.mubr.bf16.gmra.mrb[100].mxu1 %v2192_v41  ;;  %v6249_v56 = vld [vmem:[%s6922_s8] ss:$0 sm:$0xff]  ;;  %v2151_v49 = vmul.f32 %v2087_v34, %v1895_v44 }
 0x279   :  { %v1967_v47 = vmul.f32 0.70710677, %v6235_v48  ;;  %v1793_v42 = vpop.f32.mrb[115].mxu0  ;;  %v2086_v59 = vadd.f32 1.0, %v4965_v21  ;;  %v6252_v15 = vadd.f32 %v6249_v56, %v4434_v63  ;;  %v2149_v46 = vmul.f32 %v2085_v25, %v1893_v54 }
 0x27a   :  { %v1965_v24 = vmul.f32 0.70710677, %v6239_v38  ;;  %v2152_v3 = vmul.f32 %v2088_v55, %v1896_v13  ;;  %v6255_v33 = vadd.f32 %v6249_v56, %v1793_v42  ;;  %v1903_v55 = vmul.f32 0.5, %v6235_v48 }
 0x27b   :  { %4974 = verf.f32 %v1967_v47  ;;  %v2150_v28 = vmul.f32 %v2086_v59, %v1894_v16  ;;  %v1968_v36 = vmul.f32 0.70710677, %v6252_v15 }
 0x27c   :  { %4976 = verf.f32 %v1965_v24  ;;  %v1966_v23 = vmul.f32 0.70710677, %v6255_v33  ;;  %v2194_v50 = vpack.c.bf16 %v2152_v3, %v2151_v49  ;;  %v1901_v49 = vmul.f32 0.5, %v6239_v38 }
 0x27d   :  { %v4967_v1 = vpop.eup %4966  ;;  %4978 = verf.f32 %v1968_v36  ;;  %v2193_v30 = vpack.c.bf16 %v2150_v28, %v2149_v46  ;;  %v1904_v3 = vmul.f32 0.5, %v6252_v15  ;;  %v1902_v36 = vmul.f32 0.5, %v6255_v33 }
 0x27e   :  { %v4969_v51 = vpop.eup %4968  ;;  %v4437_v7 = vpop.f32.mrb[116].mxu0  ;;  %v2091_v2 = vadd.f32 1.0, %v4967_v1  ;;  %4980 = verf.f32 %v1966_v23 }
 0x27f   :  { %v6260_v20 = vadd.f32 %v6249_v56, %v4437_v7  ;;  %v1806_v5 = vpop.f32.mrb[117].mxu0  ;;  %v4971_v35 = vpop.eup %4970  ;;  %v2089_v10 = vadd.f32 1.0, %v4969_v51  ;;  %4503 = vmatprep.mubr.bf16.mxu1 %v2193_v30 }
 0x280   :  { %v6264_v12 = vadd.f32 %v6249_v56, %v1806_v5  ;;  %v4438_v45 = vpop.f32.mrb[118].mxu0  ;;  %v4973_v37 = vpop.eup %4972  ;;  %v2092_v22 = vadd.f32 1.0, %v4971_v35  ;;  %4504 = vmatmul.mubr.bf16.gmra.mrb[104].mxu1 %v2194_v50  ;;  %v2155_v0 = vmul.f32 %v2091_v2, %v1899_v6 }
 0x281   :  { %v1971_v60 = vmul.f32 0.70710677, %v6260_v20  ;;  %v1809_v4 = vpop.f32.mrb[119].mxu0  ;;  %v2090_v31 = vadd.f32 1.0, %v4973_v37  ;;  %v6272_v14 = vadd.f32 %v6249_v56, %v4438_v45  ;;  %v2153_v61 = vmul.f32 %v2089_v10, %v1897_v43 }
 0x282   :  { %v1969_v26 = vmul.f32 0.70710677, %v6264_v12  ;;  %v2156_v27 = vmul.f32 %v2092_v22, %v1900_v8  ;;  %v6280_v17 = vadd.f32 %v6249_v56, %v1809_v4 }
 0x283   :  { %4982 = verf.f32 %v1971_v60  ;;  %v2154_v53 = vmul.f32 %v2090_v31, %v1898_v57  ;;  %v1972_v18 = vmul.f32 0.70710677, %v6272_v14  ;;  %v4305_v52 = vpop.f32.mrb[0].mxu1 }
 0x284   :  { %4984 = verf.f32 %v1969_v26  ;;  %v1970_v58 = vmul.f32 0.70710677, %v6280_v17  ;;  %v1087_v40 = vadd.f32 %v4305_v52, %v6277_v62  ;;  %v1078_v41 = vpop.f32.mrb[1].mxu1  ;;  %v2196_v32 = vpack.c.bf16 %v2156_v27, %v2155_v0 }
 0x285   :  { %v4975_v29 = vpop.eup %4974  ;;  %4986 = verf.f32 %v1972_v18  ;;  %v1079_v11 = vadd.f32 %v6277_v62, %v1078_v41  ;;  %v4306_v34 = vpop.f32.mrb[2].mxu1  ;;  %v2195_v39 = vpack.c.bf16 %v2154_v53, %v2153_v61  ;;  %v1907_v61 = vmul.f32 0.5, %v6260_v20 }
 0x286   :  { %v4977_v19 = vpop.eup %4976  ;;  %v4441_v9 = vpop.f32.mrb[120].mxu0  ;;  %v2095_v44 = vadd.f32 1.0, %v4975_v29  ;;  %4988 = verf.f32 %v1970_v58  ;;  %1335 = vst [vmem:[#allocation16 + $0x10] sm:$0xff] %v1087_v40  ;;  %v1090_v25 = vadd.f32 %v4306_v34, %v6277_v62  ;;  %v1905_v40 = vmul.f32 0.5, %v6264_v12 }
 0x287   :  { %v1081_v63 = vpop.f32.mrb[3].mxu1  ;;  %v6288_v21 = vadd.f32 %v6249_v56, %v4441_v9  ;;  %v1822_v54 = vpop.f32.mrb[121].mxu0  ;;  %v2093_v47 = vadd.f32 1.0, %v4977_v19  ;;  %1333 = vst [vmem:[#allocation16] sm:$0xff] %v1079_v11  ;;  %4507 = vmatprep.mubr.bf16.mxu1 %v2195_v39  ;;  %v1908_v41 = vmul.f32 0.5, %v6272_v14  ;;  %v1906_v11 = vmul.f32 0.5, %v6280_v17 }
 0x288   :  { %v4979_v13 = vpop.eup %4978  ;;  %v1082_v42 = vadd.f32 %v6277_v62, %v1081_v63  ;;  %v6293_v16 = vadd.f32 %v6249_v56, %v1822_v54  ;;  %v4442_v59 = vpop.f32.mrb[122].mxu0  ;;  %1336 = vst [vmem:[#allocation16 + $0x18] sm:$0xff] %v1090_v25  ;;  %4508 = vmatmul.mubr.bf16.gmra.mrb[108].mxu1 %v2196_v32  ;;  %v2159_v51 = vmul.f32 %v2095_v44, %v1903_v55  ;;  %v6334_v17 = vld [vmem:[%s6926_s12] ss:$0 sm:$0xff] }
 0x289   :  { %v4981_v24 = vpop.eup %4980  ;;  %v2096_v46 = vadd.f32 1.0, %v4979_v13  ;;  %v1975_v28 = vmul.f32 0.70710677, %v6288_v21  ;;  %v1825_v48 = vpop.f32.mrb[123].mxu0  ;;  %v6301_v50 = vadd.f32 %v6249_v56, %v4442_v59  ;;  %v2157_v15 = vmul.f32 %v2093_v47, %v1901_v49 }
 0x28a   :  { %v2094_v1 = vadd.f32 1.0, %v4981_v24  ;;  %1334 = vst [vmem:[#allocation16 + $0x8] sm:$0xff] %v1082_v42  ;;  %v1973_v23 = vmul.f32 0.70710677, %v6293_v16  ;;  %v6304_v38 = vadd.f32 %v6249_v56, %v1825_v48 }
 0x28b   :  { %v2160_v7 = vmul.f32 %v2096_v46, %v1904_v3  ;;  %4990 = verf.f32 %v1975_v28  ;;  %v1976_v2 = vmul.f32 0.70710677, %v6301_v50  ;;  %v4309_v5 = vpop.f32.mrb[4].mxu1 }
 0x28c   :  { %v2158_v30 = vmul.f32 %v2094_v1, %v1902_v36  ;;  %4992 = verf.f32 %v1973_v23  ;;  %v1974_v35 = vmul.f32 0.70710677, %v6304_v38  ;;  %v1103_v6 = vadd.f32 %v4309_v5, %v6277_v62  ;;  %v1094_v10 = vpop.f32.mrb[5].mxu1 }
 0x28d   :  { %v4983_v33 = vpop.eup %4982  ;;  %v2198_v45 = vpack.c.bf16 %v2160_v7, %v2159_v51  ;;  %4994 = verf.f32 %v1976_v2  ;;  %v1095_v43 = vadd.f32 %v6277_v62, %v1094_v10  ;;  %v4310_v8 = vpop.f32.mrb[6].mxu1  ;;  %v1912_v10 = vmul.f32 0.5, %v6301_v50 }
 0x28e   :  { %v4985_v37 = vpop.eup %4984  ;;  %v4445_v22 = vpop.f32.mrb[124].mxu0  ;;  %v2197_v60 = vpack.c.bf16 %v2158_v30, %v2157_v15  ;;  %v2099_v4 = vadd.f32 1.0, %v4983_v33  ;;  %4996 = verf.f32 %v1974_v35  ;;  %1339 = vst [vmem:[#allocation16 + $0x30] sm:$0xff] %v1103_v6  ;;  %v1106_v57 = vadd.f32 %v4310_v8, %v6277_v62 }
 0x28f   :  { %v1097_v31 = vpop.f32.mrb[7].mxu1  ;;  %v6312_v26 = vadd.f32 %v6249_v56, %v4445_v22  ;;  %v1838_v0 = vpop.f32.mrb[125].mxu0  ;;  %v2097_v53 = vadd.f32 1.0, %v4985_v37  ;;  %1337 = vst [vmem:[#allocation16 + $0x20] sm:$0xff] %v1095_v43  ;;  %v1911_v15 = vmul.f32 0.5, %v6288_v21  ;;  %v1909_v6 = vmul.f32 0.5, %v6293_v16 }
 0x290   :  { %v4987_v27 = vpop.eup %4986  ;;  %v1098_v18 = vadd.f32 %v6277_v62, %v1097_v31  ;;  %v6317_v52 = vadd.f32 %v6249_v56, %v1838_v0  ;;  %4511 = vmatprep.mubr.bf16.mxu1 %v2197_v60  ;;  %v4446_v29 = vpop.f32.mrb[126].mxu0  ;;  %1340 = vst [vmem:[#allocation16 + $0x38] sm:$0xff] %v1106_v57  ;;  %v2163_v44 = vmul.f32 %v2099_v4, %v1907_v61  ;;  %v1910_v43 = vmul.f32 0.5, %v6304_v38 }
 0x291   :  { %v4989_v58 = vpop.eup %4988  ;;  %v2100_v32 = vadd.f32 1.0, %v4987_v27  ;;  %v1979_v19 = vmul.f32 0.70710677, %v6312_v26  ;;  %4512 = vmatmul.mubr.bf16.gmra.mrb[112].mxu1 %v2198_v45  ;;  %v1841_v20 = vpop.f32.mrb[127].mxu0  ;;  %v6325_v39 = vadd.f32 %v6249_v56, %v4446_v29  ;;  %v2161_v14 = vmul.f32 %v2097_v53, %v1905_v40 }
 0x292   :  { %v2098_v34 = vadd.f32 1.0, %v4989_v58  ;;  %1338 = vst [vmem:[#allocation16 + $0x28] sm:$0xff] %v1098_v18  ;;  %v1977_v9 = vmul.f32 0.70710677, %v6317_v52  ;;  %v6328_v12 = vadd.f32 %v6249_v56, %v1841_v20 }
 0x293   :  { %v2164_v25 = vmul.f32 %v2100_v32, %v1908_v41  ;;  %4998 = verf.f32 %v1979_v19  ;;  %v1980_v54 = vmul.f32 0.70710677, %v6325_v39  ;;  %v4313_v13 = vpop.f32.mrb[8].mxu1 }
 0x294   :  { %v2162_v63 = vmul.f32 %v2098_v34, %v1906_v11  ;;  %5000 = verf.f32 %v1977_v9  ;;  %v1978_v47 = vmul.f32 0.70710677, %v6328_v12  ;;  %v1119_v42 = vadd.f32 %v4313_v13, %v6277_v62  ;;  %v1110_v59 = vpop.f32.mrb[9].mxu1 }
 0x295   :  { %v4991_v55 = vpop.eup %4990  ;;  %v2200_v24 = vpack.c.bf16 %v2164_v25, %v2163_v44  ;;  %5002 = verf.f32 %v1980_v54  ;;  %v1111_v49 = vadd.f32 %v6277_v62, %v1110_v59  ;;  %v4314_v3 = vpop.f32.mrb[10].mxu1  ;;  %v1916_v59 = vmul.f32 0.5, %v6325_v39 }
 0x296   :  { %v4993_v56 = vpop.eup %4992  ;;  %v4545_v46 = vpop.f32.mrb[128].mxu0  ;;  %v2199_v28 = vpack.c.bf16 %v2162_v63, %v2161_v14  ;;  %v2103_v48 = vadd.f32 1.0, %v4991_v55  ;;  %5004 = verf.f32 %v1978_v47  ;;  %1343 = vst [vmem:[#allocation16 + $0x50] sm:$0xff] %v1119_v42  ;;  %v1122_v36 = vadd.f32 %v4314_v3, %v6277_v62 }
 0x297   :  { %v1113_v1 = vpop.f32.mrb[11].mxu1  ;;  %v6341_v23 = vadd.f32 %v4545_v46, %v6334_v17  ;;  %v2830_v51 = vpop.f32.mrb[129].mxu0  ;;  %v2101_v30 = vadd.f32 1.0, %v4993_v56  ;;  %1341 = vst [vmem:[#allocation16 + $0x40] sm:$0xff] %v1111_v49  ;;  %v1915_v14 = vmul.f32 0.5, %v6312_v26  ;;  %v1913_v42 = vmul.f32 0.5, %v6317_v52 }
 0x298   :  { %v4995_v7 = vpop.eup %4994  ;;  %v1114_v2 = vadd.f32 %v6277_v62, %v1113_v1  ;;  %4515 = vmatprep.mubr.bf16.mxu1 %v2199_v28  ;;  %v6346_v5 = vadd.f32 %v6334_v17, %v2830_v51  ;;  %v4546_v33 = vpop.f32.mrb[130].mxu0  ;;  %1344 = vst [vmem:[#allocation16 + $0x58] sm:$0xff] %v1122_v36  ;;  %v2167_v4 = vmul.f32 %v2103_v48, %v1911_v15  ;;  %v1914_v49 = vmul.f32 0.5, %v6328_v12 }
 0x299   :  { %v4997_v35 = vpop.eup %4996  ;;  %v2104_v45 = vadd.f32 1.0, %v4995_v7  ;;  %v3151_v37 = vmul.f32 0.70710677, %v6341_v23  ;;  %4516 = vmatmul.mubr.bf16.gmra.mrb[116].mxu1 %v2200_v24  ;;  %v2833_v21 = vpop.f32.mrb[131].mxu0  ;;  %v6354_v60 = vadd.f32 %v4546_v33, %v6334_v17  ;;  %v2165_v50 = vmul.f32 %v2101_v30, %v1909_v6 }
 0x29a   :  { %v2102_v8 = vadd.f32 1.0, %v4997_v35  ;;  %1342 = vst [vmem:[#allocation16 + $0x48] sm:$0xff] %v1114_v2  ;;  %v3149_v22 = vmul.f32 0.70710677, %v6346_v5  ;;  %v6357_v16 = vadd.f32 %v6334_v17, %v2833_v21 }
 0x29b   :  { %v2168_v57 = vmul.f32 %v2104_v45, %v1912_v10  ;;  %5006 = verf.f32 %v3151_v37  ;;  %v3152_v0 = vmul.f32 0.70710677, %v6354_v60  ;;  %v4317_v27 = vpop.f32.mrb[12].mxu1 }
 0x29c   :  { %v2166_v31 = vmul.f32 %v2102_v8, %v1910_v43  ;;  %5008 = verf.f32 %v3149_v22  ;;  %v3150_v61 = vmul.f32 0.70710677, %v6357_v16  ;;  %v1135_v53 = vadd.f32 %v4317_v27, %v6277_v62  ;;  %v1126_v18 = vpop.f32.mrb[13].mxu1 }
 0x29d   :  { %v4999_v38 = vpop.eup %4998  ;;  %v2202_v29 = vpack.c.bf16 %v2168_v57, %v2167_v4  ;;  %5010 = verf.f32 %v3152_v0  ;;  %v1127_v40 = vadd.f32 %v6277_v62, %v1126_v18  ;;  %v4318_v41 = vpop.f32.mrb[14].mxu1  ;;  %v3088_v18 = vmul.f32 0.5, %v6354_v60 }
 0x29e   :  { %v5001_v58 = vpop.eup %5000  ;;  %v4549_v32 = vpop.f32.mrb[132].mxu0  ;;  %v2201_v19 = vpack.c.bf16 %v2166_v31, %v2165_v50  ;;  %v2107_v20 = vadd.f32 1.0, %v4999_v38  ;;  %5012 = verf.f32 %v3150_v61  ;;  %1347 = vst [vmem:[#allocation16 + $0x70] sm:$0xff] %v1135_v53  ;;  %v1138_v11 = vadd.f32 %v4318_v41, %v6277_v62 }
 0x29f   :  { %v1129_v34 = vpop.f32.mrb[15].mxu1  ;;  %v6365_v9 = vadd.f32 %v4549_v32, %v6334_v17  ;;  %v2846_v44 = vpop.f32.mrb[133].mxu0  ;;  %v2105_v63 = vadd.f32 1.0, %v5001_v58  ;;  %1345 = vst [vmem:[#allocation16 + $0x60] sm:$0xff] %v1127_v40  ;;  %v3087_v50 = vmul.f32 0.5, %v6341_v23  ;;  %v3085_v53 = vmul.f32 0.5, %v6346_v5 }
 0x2a0   :  { %v5003_v25 = vpop.eup %5002  ;;  %v1130_v54 = vadd.f32 %v6277_v62, %v1129_v34  ;;  %4519 = vmatprep.mubr.bf16.mxu1 %v2201_v19  ;;  %v6370_v13 = vadd.f32 %v6334_v17, %v2846_v44  ;;  %v4550_v55 = vpop.f32.mrb[134].mxu0  ;;  %1348 = vst [vmem:[#allocation16 + $0x78] sm:$0xff] %v1138_v11  ;;  %v2171_v48 = vmul.f32 %v2107_v20, %v1915_v14  ;;  %v3086_v40 = vmul.f32 0.5, %v6357_v16 }
 0x2a1   :  { %v5005_v47 = vpop.eup %5004  ;;  %v2108_v24 = vadd.f32 1.0, %v5003_v25  ;;  %v3155_v56 = vmul.f32 0.70710677, %v6365_v9  ;;  %4520 = vmatmul.mubr.bf16.gmra.mrb[120].mxu1 %v2202_v29  ;;  %v2849_v26 = vpop.f32.mrb[135].mxu0  ;;  %v6378_v28 = vadd.f32 %v4550_v55, %v6334_v17  ;;  %v2169_v39 = vmul.f32 %v2105_v63, %v1913_v42 }
 0x2a2   :  { %v2106_v3 = vadd.f32 1.0, %v5005_v47  ;;  %1346 = vst [vmem:[#allocation16 + $0x68] sm:$0xff] %v1130_v54  ;;  %v3153_v46 = vmul.f32 0.70710677, %v6370_v13  ;;  %v6381_v52 = vadd.f32 %v6334_v17, %v2849_v26 }
 0x2a3   :  { %v2172_v36 = vmul.f32 %v2108_v24, %v1916_v59  ;;  %5014 = verf.f32 %v3155_v56  ;;  %v3156_v51 = vmul.f32 0.70710677, %v6378_v28  ;;  %v4321_v7 = vpop.f32.mrb[16].mxu1 }
 0x2a4   :  { %v2170_v1 = vmul.f32 %v2106_v3, %v1914_v49  ;;  %5016 = verf.f32 %v3153_v46  ;;  %v3154_v15 = vmul.f32 0.70710677, %v6381_v52  ;;  %v1151_v30 = vadd.f32 %v4321_v7, %v6277_v62  ;;  %v1142_v2 = vpop.f32.mrb[17].mxu1 }
 0x2a5   :  { %v5007_v12 = vpop.eup %5006  ;;  %v2204_v33 = vpack.c.bf16 %v2172_v36, %v2171_v48  ;;  %5018 = verf.f32 %v3156_v51  ;;  %v1143_v6 = vadd.f32 %v6277_v62, %v1142_v2  ;;  %v4322_v10 = vpop.f32.mrb[18].mxu1  ;;  %v3092_v2 = vmul.f32 0.5, %v6378_v28 }
 0x2a6   :  { %v5009_v35 = vpop.eup %5008  ;;  %v4553_v45 = vpop.f32.mrb[136].mxu0  ;;  %v2203_v37 = vpack.c.bf16 %v2170_v1, %v2169_v39  ;;  %v3279_v21 = vadd.f32 1.0, %v5007_v12  ;;  %5020 = verf.f32 %v3154_v15  ;;  %1351 = vst [vmem:[#allocation16 + $0x90] sm:$0xff] %v1151_v30  ;;  %v1154_v43 = vadd.f32 %v4322_v10, %v6277_v62 }
 0x2a7   :  { %v1145_v8 = vpop.f32.mrb[19].mxu1  ;;  %v6389_v22 = vadd.f32 %v4553_v45, %v6334_v17  ;;  %v2862_v4 = vpop.f32.mrb[137].mxu0  ;;  %v3277_v31 = vadd.f32 1.0, %v5009_v35  ;;  %1349 = vst [vmem:[#allocation16 + $0x80] sm:$0xff] %v1143_v6  ;;  %v3091_v39 = vmul.f32 0.5, %v6365_v9  ;;  %v3089_v30 = vmul.f32 0.5, %v6370_v13 }
 0x2a8   :  { %v5011_v57 = vpop.eup %5010  ;;  %v1146_v0 = vadd.f32 %v6277_v62, %v1145_v8  ;;  %4523 = vmatprep.mubr.bf16.mxu1 %v2203_v37  ;;  %v6394_v27 = vadd.f32 %v6334_v17, %v2862_v4  ;;  %v4554_v38 = vpop.f32.mrb[138].mxu0  ;;  %1352 = vst [vmem:[#allocation16 + $0x98] sm:$0xff] %v1154_v43  ;;  %v3343_v20 = vmul.f32 %v3279_v21, %v3087_v50  ;;  %v3090_v6 = vmul.f32 0.5, %v6381_v52 }
 0x2a9   :  { %v5013_v61 = vpop.eup %5012  ;;  %v3280_v29 = vadd.f32 1.0, %v5011_v57  ;;  %v3159_v58 = vmul.f32 0.70710677, %v6389_v22  ;;  %4524 = vmatmul.mubr.bf16.gmra.mrb[124].mxu1 %v2204_v33  ;;  %v2865_v23 = vpop.f32.mrb[139].mxu0  ;;  %v6402_v19 = vadd.f32 %v4554_v38, %v6334_v17  ;;  %v3341_v60 = vmul.f32 %v3277_v31, %v3085_v53 }
 0x2aa   :  { %v3278_v41 = vadd.f32 1.0, %v5013_v61  ;;  %1350 = vst [vmem:[#allocation16 + $0x88] sm:$0xff] %v1146_v0  ;;  %v3157_v32 = vmul.f32 0.70710677, %v6394_v27  ;;  %v6405_v5 = vadd.f32 %v6334_v17, %v2865_v23 }
 0x2ab   :  { %v3344_v11 = vmul.f32 %v3280_v29, %v3088_v18  ;;  %5022 = verf.f32 %v3159_v58  ;;  %v3160_v44 = vmul.f32 0.70710677, %v6402_v19  ;;  %v4325_v25 = vpop.f32.mrb[20].mxu1 }
 0x2ac   :  { %v3342_v34 = vmul.f32 %v3278_v41, %v3086_v40  ;;  %5024 = verf.f32 %v3157_v32  ;;  %v3158_v63 = vmul.f32 0.70710677, %v6405_v5  ;;  %v1167_v54 = vadd.f32 %v4325_v25, %v6277_v62  ;;  %v1158_v55 = vpop.f32.mrb[21].mxu1 }
 0x2ad   :  { %v5015_v16 = vpop.eup %5014  ;;  %v3406_v14 = vpack.c.bf16 %v3344_v11, %v3343_v20  ;;  %5026 = verf.f32 %v3160_v44  ;;  %v1159_v42 = vadd.f32 %v6277_v62, %v1158_v55  ;;  %v4326_v59 = vpop.f32.mrb[22].mxu1 }
 0x2ae   :  { %v5017_v47 = vpop.eup %5016  ;;  %v4557_v24 = vpop.f32.mrb[140].mxu0  ;;  %v3405_v56 = vpack.c.bf16 %v3342_v34, %v3341_v60  ;;  %v3283_v26 = vadd.f32 1.0, %v5015_v16  ;;  %5028 = verf.f32 %v3158_v63  ;;  %1355 = vst [vmem:[#allocation16 + $0xb0] sm:$0xff] %v1167_v54  ;;  %v1170_v49 = vadd.f32 %v4326_v59, %v6277_v62 }
 0x2af   :  { %v1161_v3 = vpop.f32.mrb[23].mxu1  ;;  %v6413_v46 = vadd.f32 %v4557_v24, %v6334_v17  ;;  %v2878_v48 = vpop.f32.mrb[141].mxu0  ;;  %v3281_v1 = vadd.f32 1.0, %v5017_v47  ;;  %1353 = vst [vmem:[#allocation16 + $0xa0] sm:$0xff] %v1159_v42  ;;  %v3095_v60 = vmul.f32 0.5, %v6389_v22  ;;  %v3093_v63 = vmul.f32 0.5, %v6394_v27 }
 0x2b0   :  { %v5019_v36 = vpop.eup %5018  ;;  %v1162_v51 = vadd.f32 %v6277_v62, %v1161_v3  ;;  %v6418_v7 = vadd.f32 %v6334_v17, %v2878_v48  ;;  %4623 = vmatprep.mubr.bf16.mxu1 %v3405_v56  ;;  %v4558_v12 = vpop.f32.mrb[142].mxu0  ;;  %1356 = vst [vmem:[#allocation16 + $0xb8] sm:$0xff] %v1170_v49  ;;  %v3347_v21 = vmul.f32 %v3283_v26, %v3091_v39  ;;  %v3096_v54 = vmul.f32 0.5, %v6402_v19 }
 0x2b1   :  { %v5021_v15 = vpop.eup %5020  ;;  %v3284_v33 = vadd.f32 1.0, %v5019_v36  ;;  %v3163_v35 = vmul.f32 0.70710677, %v6413_v46  ;;  %4624 = vmatmul.mubr.bf16.vlgmr.msra.gmra.mrb[128].mxu1 %v3406_v14  ;;  %v2881_v9 = vpop.f32.mrb[143].mxu0  ;;  %v6426_v37 = vadd.f32 %v4558_v12, %v6334_v17  ;;  %v3345_v28 = vmul.f32 %v3281_v1, %v3089_v30 }
 0x2b2   :  { %v3282_v10 = vadd.f32 1.0, %v5021_v15  ;;  %1354 = vst [vmem:[#allocation16 + $0xa8] sm:$0xff] %v1162_v51  ;;  %v3161_v45 = vmul.f32 0.70710677, %v6418_v7  ;;  %v6429_v13 = vadd.f32 %v6334_v17, %v2881_v9  ;;  %v3094_v42 = vmul.f32 0.5, %v6405_v5 }
 0x2b3   :  { %v3348_v43 = vmul.f32 %v3284_v33, %v3092_v2  ;;  %5030 = verf.f32 %v3163_v35  ;;  %v3164_v4 = vmul.f32 0.70710677, %v6426_v37  ;;  %v4329_v57 = vpop.f32.mrb[24].mxu1 }
 0x2b4   :  { %v3346_v8 = vmul.f32 %v3282_v10, %v3090_v6  ;;  %5032 = verf.f32 %v3161_v45  ;;  %v3162_v50 = vmul.f32 0.70710677, %v6429_v13  ;;  %v1183_v31 = vadd.f32 %v4329_v57, %v6277_v62  ;;  %v1174_v0 = vpop.f32.mrb[25].mxu1 }
 0x2b5   :  { %v5023_v52 = vpop.eup %5022  ;;  %v3408_v38 = vpack.c.bf16 %v3348_v43, %v3347_v21  ;;  %5034 = verf.f32 %v3164_v4  ;;  %v1175_v53 = vadd.f32 %v6277_v62, %v1174_v0  ;;  %v4330_v18 = vpop.f32.mrb[26].mxu1  ;;  %v3100_v0 = vmul.f32 0.5, %v6426_v37 }
 0x2b6   :  { %v5025_v61 = vpop.eup %5024  ;;  %v4561_v29 = vpop.f32.mrb[144].mxu0  ;;  %v3407_v58 = vpack.c.bf16 %v3346_v8, %v3345_v28  ;;  %v3287_v23 = vadd.f32 1.0, %v5023_v52  ;;  %5036 = verf.f32 %v3162_v50  ;;  %1359 = vst [vmem:[#allocation16 + $0xd0] sm:$0xff] %v1183_v31  ;;  %v1186_v40 = vadd.f32 %v4330_v18, %v6277_v62 }
 0x2b7   :  { %v1177_v41 = vpop.f32.mrb[27].mxu1  ;;  %v6437_v32 = vadd.f32 %v4561_v29, %v6334_v17  ;;  %v2894_v20 = vpop.f32.mrb[145].mxu0  ;;  %v3285_v34 = vadd.f32 1.0, %v5025_v61  ;;  %1357 = vst [vmem:[#allocation16 + $0xc0] sm:$0xff] %v1175_v53  ;;  %v3099_v28 = vmul.f32 0.5, %v6413_v46  ;;  %v3097_v31 = vmul.f32 0.5, %v6418_v7 }
 0x2b8   :  { %v5027_v11 = vpop.eup %5026  ;;  %v1178_v44 = vadd.f32 %v6277_v62, %v1177_v41  ;;  %v6442_v25 = vadd.f32 %v6334_v17, %v2894_v20  ;;  %4627 = vmatprep.mubr.bf16.mxu1 %v3407_v58  ;;  %v4562_v16 = vpop.f32.mrb[146].mxu0  ;;  %1360 = vst [vmem:[#allocation16 + $0xd8] sm:$0xff] %v1186_v40  ;;  %v3351_v26 = vmul.f32 %v3287_v23, %v3095_v60  ;;  %v3098_v53 = vmul.f32 0.5, %v6429_v13 }
 0x2b9   :  { %v5029_v14 = vpop.eup %5028  ;;  %v3288_v55 = vadd.f32 1.0, %v5027_v11  ;;  %v3167_v47 = vmul.f32 0.70710677, %v6437_v32  ;;  %4628 = vmatmul.mubr.bf16.gmra.mrb[132].mxu1 %v3408_v38  ;;  %v2897_v22 = vpop.f32.mrb[147].mxu0  ;;  %v6450_v56 = vadd.f32 %v4562_v16, %v6334_v17  ;;  %v3349_v19 = vmul.f32 %v3285_v34, %v3093_v63 }
 0x2ba   :  { %v3286_v59 = vadd.f32 1.0, %v5029_v14  ;;  %1358 = vst [vmem:[#allocation16 + $0xc8] sm:$0xff] %v1178_v44  ;;  %v3165_v24 = vmul.f32 0.70710677, %v6442_v25  ;;  %v6453_v27 = vadd.f32 %v6334_v17, %v2897_v22 }
 0x2bb   :  { %v3352_v49 = vmul.f32 %v3288_v55, %v3096_v54  ;;  %5038 = verf.f32 %v3167_v47  ;;  %v3168_v48 = vmul.f32 0.70710677, %v6450_v56  ;;  %v4333_v36 = vpop.f32.mrb[28].mxu1 }
 0x2bc   :  { %v3350_v3 = vmul.f32 %v3286_v59, %v3094_v42  ;;  %5040 = verf.f32 %v3165_v24  ;;  %v3166_v39 = vmul.f32 0.70710677, %v6453_v27  ;;  %v1199_v1 = vadd.f32 %v4333_v36, %v6277_v62  ;;  %v1190_v51 = vpop.f32.mrb[29].mxu1 }
 0x2bd   :  { %v5031_v5 = vpop.eup %5030  ;;  %v3410_v12 = vpack.c.bf16 %v3352_v49, %v3351_v26  ;;  %5042 = verf.f32 %v3168_v48  ;;  %v1191_v30 = vadd.f32 %v6277_v62, %v1190_v51  ;;  %v4334_v2 = vpop.f32.mrb[30].mxu1  ;;  %v3104_v51 = vmul.f32 0.5, %v6450_v56 }
 0x2be   :  { %v5033_v15 = vpop.eup %5032  ;;  %v4565_v33 = vpop.f32.mrb[148].mxu0  ;;  %v3409_v35 = vpack.c.bf16 %v3350_v3, %v3349_v19  ;;  %v3291_v9 = vadd.f32 1.0, %v5031_v5  ;;  %5044 = verf.f32 %v3166_v39  ;;  %1363 = vst [vmem:[#allocation16 + $0xf0] sm:$0xff] %v1199_v1  ;;  %v1202_v6 = vadd.f32 %v4334_v2, %v6277_v62 }
 0x2bf   :  { %v1193_v10 = vpop.f32.mrb[31].mxu1  ;;  %v6461_v45 = vadd.f32 %v4565_v33, %v6334_v17  ;;  %v2910_v21 = vpop.f32.mrb[149].mxu0  ;;  %v3289_v8 = vadd.f32 1.0, %v5033_v15  ;;  %1361 = vst [vmem:[#allocation16 + $0xe0] sm:$0xff] %v1191_v30  ;;  %v3103_v19 = vmul.f32 0.5, %v6437_v32  ;;  %v3101_v1 = vmul.f32 0.5, %v6442_v25 }
 0x2c0   :  { %v5035_v43 = vpop.eup %5034  ;;  %v1194_v4 = vadd.f32 %v6277_v62, %v1193_v10  ;;  %v6466_v57 = vadd.f32 %v6334_v17, %v2910_v21  ;;  %4631 = vmatprep.mubr.bf16.mxu1 %v3409_v35  ;;  %v4566_v52 = vpop.f32.mrb[150].mxu0  ;;  %1364 = vst [vmem:[#allocation16 + $0xf8] sm:$0xff] %v1202_v6  ;;  %v3355_v23 = vmul.f32 %v3291_v9, %v3099_v28  ;;  %v3102_v30 = vmul.f32 0.5, %v6453_v27 }
 0x2c1   :  { %v5037_v50 = vpop.eup %5036  ;;  %v3292_v38 = vadd.f32 1.0, %v5035_v43  ;;  %v3171_v61 = vmul.f32 0.70710677, %v6461_v45  ;;  %4632 = vmatmul.mubr.bf16.gmra.mrb[136].mxu1 %v3410_v12  ;;  %v2913_v46 = vpop.f32.mrb[151].mxu0  ;;  %v6474_v58 = vadd.f32 %v4566_v52, %v6334_v17  ;;  %v3353_v37 = vmul.f32 %v3289_v8, %v3097_v31 }
 0x2c2   :  { %v3290_v18 = vadd.f32 1.0, %v5037_v50  ;;  %1362 = vst [vmem:[#allocation16 + $0xe8] sm:$0xff] %v1194_v4  ;;  %v3169_v29 = vmul.f32 0.70710677, %v6466_v57  ;;  %v6477_v7 = vadd.f32 %v6334_v17, %v2913_v46 }
 0x2c3   :  { %v3356_v40 = vmul.f32 %v3292_v38, %v3100_v0  ;;  %5046 = verf.f32 %v3171_v61  ;;  %v3172_v20 = vmul.f32 0.70710677, %v6474_v58  ;;  %v4337_v11 = vpop.f32.mrb[32].mxu1 }
 0x2c4   :  { %v3354_v41 = vmul.f32 %v3290_v18, %v3098_v53  ;;  %5048 = verf.f32 %v3169_v29  ;;  %v3170_v60 = vmul.f32 0.70710677, %v6477_v7  ;;  %v1215_v34 = vadd.f32 %v4337_v11, %v6277_v62  ;;  %v1206_v44 = vpop.f32.mrb[33].mxu1 }
 0x2c5   :  { %v5039_v13 = vpop.eup %5038  ;;  %v3412_v16 = vpack.c.bf16 %v3356_v40, %v3355_v23  ;;  %5050 = verf.f32 %v3172_v20  ;;  %v1207_v63 = vadd.f32 %v6277_v62, %v1206_v44  ;;  %v4338_v54 = vpop.f32.mrb[34].mxu1  ;;  %v3108_v44 = vmul.f32 0.5, %v6474_v58 }
 0x2c6   :  { %v5041_v14 = vpop.eup %5040  ;;  %v4569_v55 = vpop.f32.mrb[152].mxu0  ;;  %v3411_v47 = vpack.c.bf16 %v3354_v41, %v3353_v37  ;;  %v3295_v22 = vadd.f32 1.0, %v5039_v13  ;;  %5052 = verf.f32 %v3170_v60  ;;  %1367 = vst [vmem:[#allocation16 + $0x110] sm:$0xff] %v1215_v34  ;;  %v1218_v42 = vadd.f32 %v4338_v54, %v6277_v62 }
 0x2c7   :  { %v1209_v59 = vpop.f32.mrb[35].mxu1  ;;  %v6485_v24 = vadd.f32 %v4569_v55, %v6334_v17  ;;  %v2926_v26 = vpop.f32.mrb[153].mxu0  ;;  %v3293_v3 = vadd.f32 1.0, %v5041_v14  ;;  %1365 = vst [vmem:[#allocation16 + $0x100] sm:$0xff] %v1207_v63  ;;  %v3107_v37 = vmul.f32 0.5, %v6461_v45  ;;  %v3105_v34 = vmul.f32 0.5, %v6466_v57 }
 0x2c8   :  { %v5043_v49 = vpop.eup %5042  ;;  %v1210_v48 = vadd.f32 %v6277_v62, %v1209_v59  ;;  %v6490_v36 = vadd.f32 %v6334_v17, %v2926_v26  ;;  %4635 = vmatprep.mubr.bf16.mxu1 %v3411_v47  ;;  %v4570_v5 = vpop.f32.mrb[154].mxu0  ;;  %1368 = vst [vmem:[#allocation16 + $0x118] sm:$0xff] %v1218_v42  ;;  %v3359_v9 = vmul.f32 %v3295_v22, %v3103_v19  ;;  %v3106_v63 = vmul.f32 0.5, %v6477_v7 }
 0x2c9   :  { %v5045_v39 = vpop.eup %5044  ;;  %v3296_v12 = vadd.f32 1.0, %v5043_v49  ;;  %v3175_v15 = vmul.f32 0.70710677, %v6485_v24  ;;  %4636 = vmatmul.mubr.bf16.gmra.mrb[140].mxu1 %v3412_v16  ;;  %v2929_v32 = vpop.f32.mrb[155].mxu0  ;;  %v6498_v35 = vadd.f32 %v4570_v5, %v6334_v17  ;;  %v3357_v56 = vmul.f32 %v3293_v3, %v3101_v1 }
 0x2ca   :  { %v3294_v2 = vadd.f32 1.0, %v5045_v39  ;;  %1366 = vst [vmem:[#allocation16 + $0x108] sm:$0xff] %v1210_v48  ;;  %v3173_v33 = vmul.f32 0.70710677, %v6490_v36  ;;  %v6501_v25 = vadd.f32 %v6334_v17, %v2929_v32 }
 0x2cb   :  { %v3360_v6 = vmul.f32 %v3296_v12, %v3104_v51  ;;  %5054 = verf.f32 %v3175_v15  ;;  %v3176_v21 = vmul.f32 0.70710677, %v6498_v35  ;;  %v4341_v43 = vpop.f32.mrb[36].mxu1 }
 0x2cc   :  { %v3358_v10 = vmul.f32 %v3294_v2, %v3102_v30  ;;  %5056 = verf.f32 %v3173_v33  ;;  %v3174_v28 = vmul.f32 0.70710677, %v6501_v25  ;;  %v1231_v8 = vadd.f32 %v4341_v43, %v6277_v62  ;;  %v1222_v4 = vpop.f32.mrb[37].mxu1 }
 0x2cd   :  { %v5047_v27 = vpop.eup %5046  ;;  %v3414_v52 = vpack.c.bf16 %v3360_v6, %v3359_v9  ;;  %5058 = verf.f32 %v3176_v21  ;;  %v1223_v31 = vadd.f32 %v6277_v62, %v1222_v4  ;;  %v4342_v0 = vpop.f32.mrb[38].mxu1  ;;  %v6539_v21 = vld [vmem:[%s6920_s6] ss:$0 sm:$0xff]  ;;  %v3112_v4 = vmul.f32 0.5, %v6498_v35 }
 0x2ce   :  { %v5049_v50 = vpop.eup %5048  ;;  %v4573_v38 = vpop.f32.mrb[156].mxu0  ;;  %v3413_v61 = vpack.c.bf16 %v3358_v10, %v3357_v56  ;;  %v3299_v46 = vadd.f32 1.0, %v5047_v27  ;;  %5060 = verf.f32 %v3174_v28  ;;  %1371 = vst [vmem:[#allocation16 + $0x130] sm:$0xff] %v1231_v8  ;;  %v1234_v53 = vadd.f32 %v4342_v0, %v6277_v62 }
 0x2cf   :  { %v1225_v18 = vpop.f32.mrb[39].mxu1  ;;  %v6509_v29 = vadd.f32 %v4573_v38, %v6334_v17  ;;  %v2942_v23 = vpop.f32.mrb[157].mxu0  ;;  %v3297_v41 = vadd.f32 1.0, %v5049_v50  ;;  %1369 = vst [vmem:[#allocation16 + $0x120] sm:$0xff] %v1223_v31  ;;  %v3111_v56 = vmul.f32 0.5, %v6485_v24  ;;  %v3109_v8 = vmul.f32 0.5, %v6490_v36 }
 0x2d0   :  { %v5051_v40 = vpop.eup %5050  ;;  %v1226_v20 = vadd.f32 %v6277_v62, %v1225_v18  ;;  %v6514_v11 = vadd.f32 %v6334_v17, %v2942_v23  ;;  %4639 = vmatprep.mubr.bf16.mxu1 %v3413_v61  ;;  %v4574_v13 = vpop.f32.mrb[158].mxu0  ;;  %1372 = vst [vmem:[#allocation16 + $0x138] sm:$0xff] %v1234_v53  ;;  %v3363_v22 = vmul.f32 %v3299_v46, %v3107_v37  ;;  %v3110_v31 = vmul.f32 0.5, %v6501_v25 }
 0x2d1   :  { %v5053_v60 = vpop.eup %5052  ;;  %v3300_v16 = vadd.f32 1.0, %v5051_v40  ;;  %v3179_v14 = vmul.f32 0.70710677, %v6509_v29  ;;  %4640 = vmatmul.mubr.bf16.gmra.mrb[144].mxu1 %v3414_v52  ;;  %v2945_v45 = vpop.f32.mrb[159].mxu0  ;;  %v6522_v47 = vadd.f32 %v4574_v13, %v6334_v17  ;;  %v3361_v58 = vmul.f32 %v3297_v41, %v3105_v34 }
 0x2d2   :  { %v3298_v54 = vadd.f32 1.0, %v5053_v60  ;;  %1370 = vst [vmem:[#allocation16 + $0x128] sm:$0xff] %v1226_v20  ;;  %v3177_v55 = vmul.f32 0.70710677, %v6514_v11  ;;  %v6525_v57 = vadd.f32 %v6334_v17, %v2945_v45 }
 0x2d3   :  { %v3364_v42 = vmul.f32 %v3300_v16, %v3108_v44  ;;  %5062 = verf.f32 %v3179_v14  ;;  %v3180_v26 = vmul.f32 0.70710677, %v6522_v47  ;;  %v4345_v49 = vpop.f32.mrb[40].mxu1 }
 0x2d4   :  { %v3362_v59 = vmul.f32 %v3298_v54, %v3106_v63  ;;  %5064 = verf.f32 %v3177_v55  ;;  %v3178_v19 = vmul.f32 0.70710677, %v6525_v57  ;;  %v1247_v3 = vadd.f32 %v4345_v49, %v6277_v62  ;;  %v1238_v48 = vpop.f32.mrb[41].mxu1 }
 0x2d5   :  { %v5055_v7 = vpop.eup %5054  ;;  %v3416_v5 = vpack.c.bf16 %v3364_v42, %v3363_v22  ;;  %5066 = verf.f32 %v3180_v26  ;;  %v1239_v1 = vadd.f32 %v6277_v62, %v1238_v48  ;;  %v4346_v51 = vpop.f32.mrb[42].mxu1  ;;  %v3116_v48 = vmul.f32 0.5, %v6522_v47 }
 0x2d6   :  { %v5057_v39 = vpop.eup %5056  ;;  %v4577_v12 = vpop.f32.mrb[160].mxu0  ;;  %v3415_v15 = vpack.c.bf16 %v3362_v59, %v3361_v58  ;;  %v3303_v32 = vadd.f32 1.0, %v5055_v7  ;;  %5068 = verf.f32 %v3178_v19  ;;  %1375 = vst [vmem:[#allocation16 + $0x150] sm:$0xff] %v1247_v3  ;;  %v1250_v30 = vadd.f32 %v4346_v51, %v6277_v62 }
 0x2d7   :  { %v1241_v2 = vpop.f32.mrb[43].mxu1  ;;  %v6533_v33 = vadd.f32 %v4577_v12, %v6334_v17  ;;  %v2958_v9 = vpop.f32.mrb[161].mxu0  ;;  %v3301_v10 = vadd.f32 1.0, %v5057_v39  ;;  %1373 = vst [vmem:[#allocation16 + $0x140] sm:$0xff] %v1239_v1  ;;  %v3115_v58 = vmul.f32 0.5, %v6509_v29  ;;  %v3113_v3 = vmul.f32 0.5, %v6514_v11 }
 0x2d8   :  { %v5059_v6 = vpop.eup %5058  ;;  %v1242_v43 = vadd.f32 %v6539_v21, %v1241_v2  ;;  %v6543_v27 = vadd.f32 %v6334_v17, %v2958_v9  ;;  %4643 = vmatprep.mubr.bf16.mxu1 %v3415_v15  ;;  %v4578_v62 = vpop.f32.mrb[162].mxu0  ;;  %1376 = vst [vmem:[#allocation16 + $0x158] sm:$0xff] %v1250_v30  ;;  %v3367_v46 = vmul.f32 %v3303_v32, %v3111_v56  ;;  %v3114_v1 = vmul.f32 0.5, %v6525_v57 }
 0x2d9   :  { %v5061_v28 = vpop.eup %5060  ;;  %v3304_v24 = vadd.f32 1.0, %v5059_v6  ;;  %v3183_v52 = vmul.f32 0.70710677, %v6533_v33  ;;  %4644 = vmatmul.mubr.bf16.gmra.mrb[148].mxu1 %v3416_v5  ;;  %v2961_v50 = vpop.f32.mrb[163].mxu0  ;;  %v6551_v61 = vadd.f32 %v4578_v62, %v6334_v17  ;;  %v3365_v35 = vmul.f32 %v3301_v10, %v3109_v8 }
 0x2da   :  { %v3302_v0 = vadd.f32 1.0, %v5061_v28  ;;  %1374 = vst [vmem:[#allocation16 + $0x148] sm:$0xff] %v1242_v43  ;;  %v3181_v38 = vmul.f32 0.70710677, %v6543_v27  ;;  %v6554_v36 = vadd.f32 %v6334_v17, %v2961_v50 }
 0x2db   :  { %v3368_v53 = vmul.f32 %v3304_v24, %v3112_v4  ;;  %5070 = verf.f32 %v3183_v52  ;;  %v3184_v23 = vmul.f32 0.70710677, %v6551_v61  ;;  %v4349_v40 = vpop.f32.mrb[44].mxu1 }
 0x2dc   :  { %v3366_v18 = vmul.f32 %v3302_v0, %v3110_v31  ;;  %5072 = verf.f32 %v3181_v38  ;;  %v3182_v37 = vmul.f32 0.70710677, %v6554_v36  ;;  %v1263_v41 = vadd.f32 %v6539_v21, %v4349_v40  ;;  %v1254_v20 = vpop.f32.mrb[45].mxu1 }
 0x2dd   :  { %v5063_v25 = vpop.eup %5062  ;;  %v3418_v13 = vpack.c.bf16 %v3368_v53, %v3367_v46  ;;  %5074 = verf.f32 %v3184_v23  ;;  %v1255_v34 = vadd.f32 %v6539_v21, %v1254_v20  ;;  %v4350_v44 = vpop.f32.mrb[46].mxu1  ;;  %v3120_v20 = vmul.f32 0.5, %v6551_v61 }
 0x2de   :  { %v5065_v60 = vpop.eup %5064  ;;  %v4581_v16 = vpop.f32.mrb[164].mxu0  ;;  %v3417_v14 = vpack.c.bf16 %v3366_v18, %v3365_v35  ;;  %v3307_v45 = vadd.f32 1.0, %v5063_v25  ;;  %5076 = verf.f32 %v3182_v37  ;;  %1379 = vst [vmem:[#allocation16 + $0x170] sm:$0xff] %v1263_v41  ;;  %v1266_v63 = vadd.f32 %v6539_v21, %v4350_v44 }
 0x2df   :  { %v1257_v54 = vpop.f32.mrb[47].mxu1  ;;  %v6562_v55 = vadd.f32 %v4581_v16, %v6334_v17  ;;  %v2974_v22 = vpop.f32.mrb[165].mxu0  ;;  %v3305_v59 = vadd.f32 1.0, %v5065_v60  ;;  %1377 = vst [vmem:[#allocation16 + $0x160] sm:$0xff] %v1255_v34  ;;  %v3119_v35 = vmul.f32 0.5, %v6533_v33  ;;  %v3117_v41 = vmul.f32 0.5, %v6543_v27 }
 0x2e0   :  { %v5067_v42 = vpop.eup %5066  ;;  %v1258_v26 = vadd.f32 %v6539_v21, %v1257_v54  ;;  %v6567_v49 = vadd.f32 %v6334_v17, %v2974_v22  ;;  %4647 = vmatprep.mubr.bf16.mxu1 %v3417_v14  ;;  %v4582_v7 = vpop.f32.mrb[166].mxu0  ;;  %1380 = vst [vmem:[#allocation16 + $0x178] sm:$0xff] %v1266_v63  ;;  %v3371_v32 = vmul.f32 %v3307_v45, %v3115_v58  ;;  %v3118_v34 = vmul.f32 0.5, %v6554_v36  ;;  %v6601_v16 = vld [vmem:[%s6926_s12] ss:$0 sm:$0xff] }
 0x2e1   :  { %v5069_v19 = vpop.eup %5068  ;;  %v3308_v5 = vadd.f32 1.0, %v5067_v42  ;;  %v3187_v39 = vmul.f32 0.70710677, %v6562_v55  ;;  %4648 = vmatmul.mubr.bf16.gmra.mrb[152].mxu1 %v3418_v13  ;;  %v2977_v29 = vpop.f32.mrb[167].mxu0  ;;  %v6575_v15 = vadd.f32 %v4582_v7, %v6334_v17  ;;  %v3369_v47 = vmul.f32 %v3305_v59, %v3113_v3 }
 0x2e2   :  { %v3306_v51 = vadd.f32 1.0, %v5069_v19  ;;  %1378 = vst [vmem:[#allocation16 + $0x168] sm:$0xff] %v1258_v26  ;;  %v3185_v12 = vmul.f32 0.70710677, %v6567_v49  ;;  %v6578_v11 = vadd.f32 %v6334_v17, %v2977_v29 }
 0x2e3   :  { %v3372_v30 = vmul.f32 %v3308_v5, %v3116_v48  ;;  %5078 = verf.f32 %v3187_v39  ;;  %v3188_v9 = vmul.f32 0.70710677, %v6575_v15  ;;  %v4353_v6 = vpop.f32.mrb[48].mxu1 }
 0x2e4   :  { %v3370_v2 = vmul.f32 %v3306_v51, %v3114_v1  ;;  %5080 = verf.f32 %v3185_v12  ;;  %v3186_v56 = vmul.f32 0.70710677, %v6578_v11  ;;  %v1279_v10 = vadd.f32 %v6539_v21, %v4353_v6  ;;  %v1270_v43 = vpop.f32.mrb[49].mxu1 }
 0x2e5   :  { %v5071_v57 = vpop.eup %5070  ;;  %v3420_v62 = vpack.c.bf16 %v3372_v30, %v3371_v32  ;;  %5082 = verf.f32 %v3188_v9  ;;  %v1271_v8 = vadd.f32 %v6539_v21, %v1270_v43  ;;  %v4354_v4 = vpop.f32.mrb[50].mxu1  ;;  %v3124_v43 = vmul.f32 0.5, %v6575_v15 }
 0x2e6   :  { %v5073_v28 = vpop.eup %5072  ;;  %v4585_v24 = vpop.f32.mrb[168].mxu0  ;;  %v3419_v52 = vpack.c.bf16 %v3370_v2, %v3369_v47  ;;  %v3311_v50 = vadd.f32 1.0, %v5071_v57  ;;  %5084 = verf.f32 %v3186_v56  ;;  %1383 = vst [vmem:[#allocation16 + $0x190] sm:$0xff] %v1279_v10  ;;  %v1282_v31 = vadd.f32 %v6539_v21, %v4354_v4 }
 0x2e7   :  { %v1273_v0 = vpop.f32.mrb[51].mxu1  ;;  %v6586_v38 = vadd.f32 %v4585_v24, %v6334_v17  ;;  %v2990_v46 = vpop.f32.mrb[169].mxu0  ;;  %v3309_v18 = vadd.f32 1.0, %v5073_v28  ;;  %1381 = vst [vmem:[#allocation16 + $0x180] sm:$0xff] %v1271_v8  ;;  %v3123_v47 = vmul.f32 0.5, %v6562_v55  ;;  %v3121_v10 = vmul.f32 0.5, %v6567_v49 }
 0x2e8   :  { %v5075_v53 = vpop.eup %5074  ;;  %v1274_v23 = vadd.f32 %v6539_v21, %v1273_v0  ;;  %v6591_v40 = vadd.f32 %v6334_v17, %v2990_v46  ;;  %4651 = vmatprep.mubr.bf16.mxu1 %v3419_v52  ;;  %v4586_v25 = vpop.f32.mrb[170].mxu0  ;;  %1384 = vst [vmem:[#allocation16 + $0x198] sm:$0xff] %v1282_v31  ;;  %v3375_v61 = vmul.f32 %v3311_v50, %v3119_v35  ;;  %v3122_v8 = vmul.f32 0.5, %v6578_v11 }
 0x2e9   :  { %v5077_v37 = vpop.eup %5076  ;;  %v3312_v13 = vadd.f32 1.0, %v5075_v53  ;;  %v3191_v60 = vmul.f32 0.70710677, %v6586_v38  ;;  %4652 = vmatmul.mubr.bf16.gmra.mrb[156].mxu1 %v3420_v62  ;;  %v2993_v33 = vpop.f32.mrb[171].mxu0  ;;  %v6604_v27 = vadd.f32 %v6601_v16, %v4586_v25  ;;  %v3373_v63 = vmul.f32 %v3309_v18, %v3117_v41 }
 0x2ea   :  { %v3310_v44 = vadd.f32 1.0, %v5077_v37  ;;  %1382 = vst [vmem:[#allocation16 + $0x188] sm:$0xff] %v1274_v23  ;;  %v3189_v17 = vmul.f32 0.70710677, %v6591_v40  ;;  %v6607_v45 = vadd.f32 %v6601_v16, %v2993_v33 }
 0x2eb   :  { %v3376_v14 = vmul.f32 %v3312_v13, %v3120_v20  ;;  %5086 = verf.f32 %v3191_v60  ;;  %v3192_v54 = vmul.f32 0.70710677, %v6604_v27  ;;  %v4357_v22 = vpop.f32.mrb[52].mxu1 }
 0x2ec   :  { %v3374_v36 = vmul.f32 %v3310_v44, %v3118_v34  ;;  %5088 = verf.f32 %v3189_v17  ;;  %v3190_v58 = vmul.f32 0.70710677, %v6607_v45  ;;  %v1295_v59 = vadd.f32 %v6539_v21, %v4357_v22  ;;  %v1286_v26 = vpop.f32.mrb[53].mxu1 }
 0x2ed   :  { %v5079_v42 = vpop.eup %5078  ;;  %v3422_v7 = vpack.c.bf16 %v3376_v14, %v3375_v61  ;;  %5090 = verf.f32 %v3192_v54  ;;  %v1287_v3 = vadd.f32 %v6539_v21, %v1286_v26  ;;  %v4358_v48 = vpop.f32.mrb[54].mxu1  ;;  %v3128_v26 = vmul.f32 0.5, %v6604_v27 }
 0x2ee   :  { %v5081_v19 = vpop.eup %5080  ;;  %v4589_v5 = vpop.f32.mrb[172].mxu0  ;;  %v3421_v39 = vpack.c.bf16 %v3374_v36, %v3373_v63  ;;  %v3315_v29 = vadd.f32 1.0, %v5079_v42  ;;  %5092 = verf.f32 %v3190_v58  ;;  %1387 = vst [vmem:[#allocation16 + $0x1b0] sm:$0xff] %v1295_v59  ;;  %v1298_v1 = vadd.f32 %v6539_v21, %v4358_v48 }
 0x2ef   :  { %v1289_v51 = vpop.f32.mrb[55].mxu1  ;;  %v6615_v12 = vadd.f32 %v6601_v16, %v4589_v5  ;;  %v3006_v32 = vpop.f32.mrb[173].mxu0  ;;  %v3313_v2 = vadd.f32 1.0, %v5081_v19  ;;  %1385 = vst [vmem:[#allocation16 + $0x1a0] sm:$0xff] %v1287_v3  ;;  %v3127_v63 = vmul.f32 0.5, %v6586_v38  ;;  %v3125_v59 = vmul.f32 0.5, %v6591_v40 }
 0x2f0   :  { %v5083_v30 = vpop.eup %5082  ;;  %v1290_v9 = vadd.f32 %v6539_v21, %v1289_v51  ;;  %v6620_v6 = vadd.f32 %v6601_v16, %v3006_v32  ;;  %4655 = vmatprep.mubr.bf16.mxu1 %v3421_v39  ;;  %v4590_v57 = vpop.f32.mrb[174].mxu0  ;;  %1388 = vst [vmem:[#allocation16 + $0x1b8] sm:$0xff] %v1298_v1  ;;  %v3379_v50 = vmul.f32 %v3315_v29, %v3123_v47  ;;  %v3126_v3 = vmul.f32 0.5, %v6607_v45 }
 0x2f1   :  { %v5085_v56 = vpop.eup %5084  ;;  %v3316_v62 = vadd.f32 1.0, %v5083_v30  ;;  %v3195_v28 = vmul.f32 0.70710677, %v6615_v12  ;;  %4656 = vmatmul.mubr.bf16.gmra.mrb[160].mxu1 %v3422_v7  ;;  %v3009_v55 = vpop.f32.mrb[175].mxu0  ;;  %v6628_v52 = vadd.f32 %v6601_v16, %v4590_v57  ;;  %v3377_v15 = vmul.f32 %v3313_v2, %v3121_v10 }
 0x2f2   :  { %v3314_v4 = vadd.f32 1.0, %v5085_v56  ;;  %1386 = vst [vmem:[#allocation16 + $0x1a8] sm:$0xff] %v1290_v9  ;;  %v3193_v24 = vmul.f32 0.70710677, %v6620_v6  ;;  %v6631_v49 = vadd.f32 %v6601_v16, %v3009_v55 }
 0x2f3   :  { %v3380_v31 = vmul.f32 %v3316_v62, %v3124_v43  ;;  %5094 = verf.f32 %v3195_v28  ;;  %v3196_v46 = vmul.f32 0.70710677, %v6628_v52  ;;  %v4361_v53 = vpop.f32.mrb[56].mxu1 }
 0x2f4   :  { %v3378_v0 = vmul.f32 %v3314_v4, %v3122_v8  ;;  %5096 = verf.f32 %v3193_v24  ;;  %v3194_v35 = vmul.f32 0.70710677, %v6631_v49  ;;  %v1311_v18 = vadd.f32 %v6539_v21, %v4361_v53  ;;  %v1302_v23 = vpop.f32.mrb[57].mxu1 }
 0x2f5   :  { %v5087_v11 = vpop.eup %5086  ;;  %v3424_v25 = vpack.c.bf16 %v3380_v31, %v3379_v50  ;;  %5098 = verf.f32 %v3196_v46  ;;  %v1303_v41 = vadd.f32 %v6539_v21, %v1302_v23  ;;  %v4362_v20 = vpop.f32.mrb[58].mxu1  ;;  %v3132_v23 = vmul.f32 0.5, %v6628_v52 }
 0x2f6   :  { %v5089_v37 = vpop.eup %5088  ;;  %v4593_v13 = vpop.f32.mrb[176].mxu0  ;;  %v3423_v60 = vpack.c.bf16 %v3378_v0, %v3377_v15  ;;  %v3319_v33 = vadd.f32 1.0, %v5087_v11  ;;  %5100 = verf.f32 %v3194_v35  ;;  %1391 = vst [vmem:[#allocation16 + $0x1d0] sm:$0xff] %v1311_v18  ;;  %v1314_v34 = vadd.f32 %v6539_v21, %v4362_v20 }
 0x2f7   :  { %v1305_v44 = vpop.f32.mrb[59].mxu1  ;;  %v6639_v17 = vadd.f32 %v6601_v16, %v4593_v13  ;;  %v3022_v61 = vpop.f32.mrb[177].mxu0  ;;  %v3317_v36 = vadd.f32 1.0, %v5089_v37  ;;  %1389 = vst [vmem:[#allocation16 + $0x1c0] sm:$0xff] %v1303_v41  ;;  %v3131_v15 = vmul.f32 0.5, %v6615_v12  ;;  %v3129_v18 = vmul.f32 0.5, %v6620_v6 }
 0x2f8   :  { %v5091_v14 = vpop.eup %5090  ;;  %v1306_v54 = vadd.f32 %v6539_v21, %v1305_v44  ;;  %v6644_v22 = vadd.f32 %v6601_v16, %v3022_v61  ;;  %4659 = vmatprep.mubr.bf16.mxu1 %v3423_v60  ;;  %v4594_v42 = vpop.f32.mrb[178].mxu0  ;;  %1392 = vst [vmem:[#allocation16 + $0x1d8] sm:$0xff] %v1314_v34  ;;  %v3383_v29 = vmul.f32 %v3319_v33, %v3127_v63  ;;  %v3130_v41 = vmul.f32 0.5, %v6631_v49  ;;  %v6681_v6 = vld [vmem:[%s6924_s10] ss:$0 sm:$0xff]  ;;  %s5407_s10 = smov [#allocation17]  }
 0x2f9   :  { %v5093_v58 = vpop.eup %5092  ;;  %v3320_v7 = vadd.f32 1.0, %v5091_v14  ;;  %v3199_v19 = vmul.f32 0.70710677, %v6639_v17  ;;  %4660 = vmatmul.mubr.bf16.gmra.mrb[164].mxu1 %v3424_v25  ;;  %v3025_v38 = vpop.f32.mrb[179].mxu0  ;;  %v6652_v39 = vadd.f32 %v6601_v16, %v4594_v42  ;;  %v3381_v27 = vmul.f32 %v3317_v36, %v3125_v59  ;;  %s3878_s24 = sshll.u32 %s5407_s10, 4  ;;  %s3879_s24 = int_to_ptr.vmem [resolvable:$true] %s3878_s24 }
 0x2fa   :  { %v3318_v48 = vadd.f32 1.0, %v5093_v58  ;;  %1390 = vst [vmem:[#allocation16 + $0x1c8] sm:$0xff] %v1306_v54  ;;  %v3197_v5 = vmul.f32 0.70710677, %v6644_v22  ;;  %v6655_v40 = vadd.f32 %v6601_v16, %v3025_v38  ;;  %s5315_s27 = scalar_lea.vmem %s3879_s24, 8192  ;;  %p5320_p9 = scmp.lt.s32.totalorder %s3879_s24, %s3879_s24 }
 0x2fb   :  { %v3384_v1 = vmul.f32 %v3320_v7, %v3128_v26  ;;  %5102 = verf.f32 %v3199_v19  ;;  %v3200_v32 = vmul.f32 0.70710677, %v6652_v39  ;;  %v4365_v30 = vpop.f32.mrb[60].mxu1  ;;  %p5316_p8 = scmp.ne.s32.totalorder %s3879_s24, %s5315_s27  ;;  %p5321_p10 = scmp.lt.s32.totalorder %s5315_s27, %s5315_s27 }
 0x2fc   :  { %v3382_v51 = vmul.f32 %v3318_v48, %v3126_v3  ;;  %5104 = verf.f32 %v3197_v5  ;;  %v3198_v47 = vmul.f32 0.70710677, %v6655_v40  ;;  %v1327_v2 = vadd.f32 %v6539_v21, %v4365_v30  ;;  %v1318_v9 = vpop.f32.mrb[61].mxu1 }
 0x2fd   :  { %v5095_v45 = vpop.eup %5094  ;;  %v3426_v57 = vpack.c.bf16 %v3384_v1, %v3383_v29  ;;  %5106 = verf.f32 %v3200_v32  ;;  %v1319_v10 = vadd.f32 %v6539_v21, %v1318_v9  ;;  %v4366_v43 = vpop.f32.mrb[62].mxu1  ;;  %v3136_v9 = vmul.f32 0.5, %v6652_v39  ;;  %p5322_p11 = por %p5321_p10, %p5320_p9 }
 0x2fe   :  { %v5097_v56 = vpop.eup %5096  ;;  %v4597_v62 = vpop.f32.mrb[180].mxu0  ;;  %v3425_v28 = vpack.c.bf16 %v3382_v51, %v3381_v27  ;;  %v3323_v55 = vadd.f32 1.0, %v5095_v45  ;;  %5108 = verf.f32 %v3198_v47  ;;  %1395 = vst [vmem:[#allocation16 + $0x1f0] sm:$0xff] %v1327_v2  ;;  %v1330_v8 = vadd.f32 %v6539_v21, %v4366_v43 }
 0x2ff   :  { %v1321_v4 = vpop.f32.mrb[63].mxu1  ;;  %v6663_v24 = vadd.f32 %v6601_v16, %v4597_v62  ;;  %v3038_v50 = vpop.f32.mrb[181].mxu0  ;;  %v3321_v0 = vadd.f32 1.0, %v5097_v56  ;;  %1393 = vst [vmem:[#allocation16 + $0x1e0] sm:$0xff] %v1319_v10  ;;  %v3135_v27 = vmul.f32 0.5, %v6639_v17  ;;  %v3133_v2 = vmul.f32 0.5, %v6644_v22  ;;  %p5323_p12 = pnand %p5322_p11, %p5316_p8 }
 0x300   :  { %v5099_v31 = vpop.eup %5098  ;;  %v1322_v46 = vadd.f32 %v6539_v21, %v1321_v4  ;;  %v6668_v53 = vadd.f32 %v6601_v16, %v3038_v50  ;;  %4663 = vmatprep.mubr.bf16.mxu1 %v3425_v28  ;;  %v4598_v11 = vpop.f32.mrb[182].mxu0  ;;  %1396 = vst [vmem:[#allocation16 + $0x1f8] sm:$0xff] %v1330_v8  ;;  %v3387_v52 = vmul.f32 %v3323_v55, %v3131_v15  ;;  %v3134_v10 = vmul.f32 0.5, %v6655_v40 }
 0x301   :  { %v5101_v35 = vpop.eup %5100  ;;  %v3324_v25 = vadd.f32 1.0, %v5099_v31  ;;  %v3203_v37 = vmul.f32 0.70710677, %v6663_v24  ;;  %4664 = vmatmul.mubr.bf16.gmra.mrb[168].mxu1 %v3426_v57  ;;  %v3041_v12 = vpop.f32.mrb[183].mxu0  ;;  %v6676_v13 = vadd.f32 %v6601_v16, %v4598_v11  ;;  %v3385_v34 = vmul.f32 %v3321_v0, %v3129_v18 }
 0x302   :  { %v3322_v20 = vadd.f32 1.0, %v5101_v35  ;;  %1394 = vst [vmem:[#allocation16 + $0x1e8] sm:$0xff] %v1322_v46  ;;  %v3201_v21 = vmul.f32 0.70710677, %v6668_v53  ;;  %v6684_v33 = vadd.f32 %v6601_v16, %v3041_v12 }
 0x303   :  { %v3388_v60 = vmul.f32 %v3324_v25, %v3132_v23  ;;  %5110 = verf.f32 %v3203_v37  ;;  %v3204_v44 = vmul.f32 0.70710677, %v6676_v13  ;;  %v4465_v61 = vpop.f32.mrb[64].mxu1 }
 0x304   :  { %v3386_v49 = vmul.f32 %v3322_v20, %v3130_v41  ;;  %5112 = verf.f32 %v3201_v21  ;;  %v3202_v63 = vmul.f32 0.70710677, %v6684_v33  ;;  %v2319_v36 = vadd.f32 %v4465_v61, %v6681_v6  ;;  %v2310_v54 = vpop.f32.mrb[65].mxu1 }
 0x305   :  { %v5103_v14 = vpop.eup %5102  ;;  %v3428_v42 = vpack.c.bf16 %v3388_v60, %v3387_v52  ;;  %5114 = verf.f32 %v3204_v44  ;;  %v2311_v59 = vadd.f32 %v6681_v6, %v2310_v54  ;;  %v4466_v26 = vpop.f32.mrb[66].mxu1  ;;  %v3140_v54 = vmul.f32 0.5, %v6676_v13 }
 0x306   :  { %v5105_v58 = vpop.eup %5104  ;;  %v4601_v7 = vpop.f32.mrb[184].mxu0  ;;  %v3427_v19 = vpack.c.bf16 %v3386_v49, %v3385_v34  ;;  %v3327_v38 = vadd.f32 1.0, %v5103_v14  ;;  %5116 = verf.f32 %v3202_v63  ;;  %2567 = vst [vmem:[#allocation17 + $0x10] sm:$0xff] %v2319_v36  ;;  %v2322_v3 = vadd.f32 %v4466_v26, %v6681_v6 }
 0x307   :  { %v2313_v48 = vpop.f32.mrb[67].mxu1  ;;  %v6692_v5 = vadd.f32 %v6601_v16, %v4601_v7  ;;  %v3054_v29 = vpop.f32.mrb[185].mxu0  ;;  %v3325_v51 = vadd.f32 1.0, %v5105_v58  ;;  %2565 = vst [vmem:[#allocation17] sm:$0xff] %v2311_v59  ;;  %v3139_v34 = vmul.f32 0.5, %v6663_v24  ;;  %v3137_v36 = vmul.f32 0.5, %v6668_v53 }
 0x308   :  { %v5107_v1 = vpop.eup %5106  ;;  %v2314_v32 = vadd.f32 %v6681_v6, %v2313_v48  ;;  %v6697_v30 = vadd.f32 %v6601_v16, %v3054_v29  ;;  %4667 = vmatprep.mubr.bf16.mxu1 %v3427_v19  ;;  %v4602_v45 = vpop.f32.mrb[186].mxu0  ;;  %2568 = vst [vmem:[#allocation17 + $0x18] sm:$0xff] %v2322_v3  ;;  %v3391_v55 = vmul.f32 %v3327_v38, %v3135_v27  ;;  %v3138_v59 = vmul.f32 0.5, %v6684_v33 }
 0x309   :  { %v5109_v47 = vpop.eup %5108  ;;  %v3328_v57 = vadd.f32 1.0, %v5107_v1  ;;  %v3207_v56 = vmul.f32 0.70710677, %v6692_v5  ;;  %4668 = vmatmul.mubr.bf16.gmra.mrb[172].mxu1 %v3428_v42  ;;  %v3057_v17 = vpop.f32.mrb[187].mxu0  ;;  %v6705_v28 = vadd.f32 %v6601_v16, %v4602_v45  ;;  %v3389_v39 = vmul.f32 %v3325_v51, %v3133_v2 }
 0x30a   :  { %v3326_v43 = vadd.f32 1.0, %v5109_v47  ;;  %2566 = vst [vmem:[#allocation17 + $0x8] sm:$0xff] %v2314_v32  ;;  %v3205_v62 = vmul.f32 0.70710677, %v6697_v30  ;;  %v6708_v22 = vadd.f32 %v6601_v16, %v3057_v17 }
 0x30b   :  { %v3392_v8 = vmul.f32 %v3328_v57, %v3136_v9  ;;  %5118 = verf.f32 %v3207_v56  ;;  %v3208_v50 = vmul.f32 0.70710677, %v6705_v28  ;;  %v4469_v31 = vpop.f32.mrb[68].mxu1 }
 0x30c   :  { %v3390_v4 = vmul.f32 %v3326_v43, %v3134_v10  ;;  %5120 = verf.f32 %v3205_v62  ;;  %v3206_v15 = vmul.f32 0.70710677, %v6708_v22  ;;  %v2335_v0 = vadd.f32 %v4469_v31, %v6681_v6  ;;  %v2326_v46 = vpop.f32.mrb[69].mxu1 }
 0x30d   :  { %v5111_v40 = vpop.eup %5110  ;;  %v3430_v11 = vpack.c.bf16 %v3392_v8, %v3391_v55  ;;  %5122 = verf.f32 %v3208_v50  ;;  %v2327_v18 = vadd.f32 %v6681_v6, %v2326_v46  ;;  %v4470_v23 = vpop.f32.mrb[70].mxu1  ;;  %v3143_v8 = vmul.f32 0.5, %v6692_v5 }
 0x30e   :  { %v5113_v35 = vpop.eup %5112  ;;  %v4605_v25 = vpop.f32.mrb[188].mxu0  ;;  %v3429_v37 = vpack.c.bf16 %v3390_v4, %v3389_v39  ;;  %v3331_v12 = vadd.f32 1.0, %v5111_v40  ;;  %5124 = verf.f32 %v3206_v15  ;;  %2571 = vst [vmem:[#allocation17 + $0x30] sm:$0xff] %v2335_v0  ;;  %v2338_v41 = vadd.f32 %v4470_v23, %v6681_v6 }
 0x30f   :  { %v2329_v20 = vpop.f32.mrb[71].mxu1  ;;  %v6716_v21 = vadd.f32 %v6601_v16, %v4605_v25  ;;  %v3070_v52 = vpop.f32.mrb[189].mxu0  ;;  %v3329_v49 = vadd.f32 1.0, %v5113_v35  ;;  %2569 = vst [vmem:[#allocation17 + $0x20] sm:$0xff] %v2327_v18  ;;  %v3144_v39 = vmul.f32 0.5, %v6705_v28  ;;  %v3141_v50 = vmul.f32 0.5, %v6697_v30 }
 0x310   :  { %v5115_v60 = vpop.eup %5114  ;;  %v2330_v44 = vadd.f32 %v6681_v6, %v2329_v20  ;;  %v6721_v61 = vadd.f32 %v6601_v16, %v3070_v52  ;;  %4671 = vmatprep.mubr.bf16.mxu1 %v3429_v37  ;;  %v4606_v14 = vpop.f32.mrb[190].mxu0  ;;  %2572 = vst [vmem:[#allocation17 + $0x38] sm:$0xff] %v2338_v41  ;;  %v3395_v38 = vmul.f32 %v3331_v12, %v3139_v34  ;;  %v3142_v31 = vmul.f32 0.5, %v6708_v22 }
 0x311   :  { %v5117_v63 = vpop.eup %5116  ;;  %v3332_v42 = vadd.f32 1.0, %v5115_v60  ;;  %v3211_v58 = vmul.f32 0.70710677, %v6716_v21  ;;  %4672 = vmatmul.mubr.bf16.gmra.mrb[176].mxu1 %v3430_v11  ;;  %v3073_v24 = vpop.f32.mrb[191].mxu0  ;;  %v6729_v19 = vadd.f32 %v6601_v16, %v4606_v14  ;;  %v3393_v13 = vmul.f32 %v3329_v49, %v3137_v36 }
 0x312   :  { %v3330_v26 = vadd.f32 1.0, %v5117_v63  ;;  %2570 = vst [vmem:[#allocation17 + $0x28] sm:$0xff] %v2330_v44  ;;  %v3209_v7 = vmul.f32 0.70710677, %v6721_v61  ;;  %v6732_v53 = vadd.f32 %v6601_v16, %v3073_v24  ;;  %v3147_v44 = vmul.f32 0.5, %v6716_v21 }
 0x313   :  { %v3396_v3 = vmul.f32 %v3332_v42, %v3140_v54  ;;  %5126 = verf.f32 %v3211_v58  ;;  %v3212_v29 = vmul.f32 0.70710677, %v6729_v19  ;;  %v4473_v1 = vpop.f32.mrb[72].mxu1  ;;  %v3148_v14 = vmul.f32 0.5, %v6729_v19 }
 0x314   :  { %v3394_v48 = vmul.f32 %v3330_v26, %v3138_v59  ;;  %5128 = verf.f32 %v3209_v7  ;;  %v3210_v27 = vmul.f32 0.70710677, %v6732_v53  ;;  %v2351_v51 = vadd.f32 %v4473_v1, %v6681_v6  ;;  %v2342_v32 = vpop.f32.mrb[73].mxu1 }
 0x315   :  { %v5119_v33 = vpop.eup %5118  ;;  %v3432_v45 = vpack.c.bf16 %v3396_v3, %v3395_v38  ;;  %5130 = verf.f32 %v3212_v29  ;;  %v2343_v2 = vadd.f32 %v6681_v6, %v2342_v32  ;;  %v4474_v9 = vpop.f32.mrb[74].mxu1  ;;  %v3145_v36 = vmul.f32 0.5, %v6721_v61 }
 0x316   :  { %v5121_v47 = vpop.eup %5120  ;;  %v3431_v16 = vpack.c.bf16 %v3394_v48, %v3393_v13  ;;  %v3335_v57 = vadd.f32 1.0, %v5119_v33  ;;  %5132 = verf.f32 %v3210_v27  ;;  %2575 = vst [vmem:[#allocation17 + $0x50] sm:$0xff] %v2351_v51  ;;  %v2354_v56 = vadd.f32 %v4474_v9, %v6681_v6  ;;  %v2345_v17 = vpop.f32.mrb[75].mxu1 }
 0x317   :  { %v5123_v10 = vpop.eup %5122  ;;  %v3333_v43 = vadd.f32 1.0, %v5121_v47  ;;  %2573 = vst [vmem:[#allocation17 + $0x40] sm:$0xff] %v2343_v2  ;;  %v2346_v62 = vadd.f32 %v6681_v6, %v2345_v17  ;;  %v3146_v54 = vmul.f32 0.5, %v6732_v53 }
 0x318   :  { %4675 = vmatprep.mubr.bf16.mxu1 %v3431_v16  ;;  %v5125_v55 = vpop.eup %5124  ;;  %v3336_v4 = vadd.f32 1.0, %v5123_v10  ;;  %2576 = vst [vmem:[#allocation17 + $0x58] sm:$0xff] %v2354_v56  ;;  %v3399_v15 = vmul.f32 %v3335_v57, %v3143_v8 }
 0x319   :  { %4676 = vmatmul.mubr.bf16.gmra.mrb[180].mxu1 %v3432_v45  ;;  %v3334_v40 = vadd.f32 1.0, %v5125_v55  ;;  %2574 = vst [vmem:[#allocation17 + $0x48] sm:$0xff] %v2346_v62  ;;  %v3397_v46 = vmul.f32 %v3333_v43, %v3141_v50 }
 0x31a   :  { %v3400_v0 = vmul.f32 %v3336_v4, %v3144_v39 }
 0x31b   :  { %v3398_v11 = vmul.f32 %v3334_v40, %v3142_v31  ;;  %v4477_v35 = vpop.f32.mrb[76].mxu1 }
 0x31c   :  { %v2367_v23 = vadd.f32 %v4477_v35, %v6681_v6  ;;  %v2358_v5 = vpop.f32.mrb[77].mxu1  ;;  %v3434_v25 = vpack.c.bf16 %v3400_v0, %v3399_v15 }
 0x31d   :  { %v5127_v18 = vpop.eup %5126  ;;  %v2359_v37 = vadd.f32 %v6681_v6, %v2358_v5  ;;  %v4478_v12 = vpop.f32.mrb[78].mxu1  ;;  %v3433_v41 = vpack.c.bf16 %v3398_v11, %v3397_v46 }
 0x31e   :  { %v5129_v28 = vpop.eup %5128  ;;  %v3339_v30 = vadd.f32 1.0, %v5127_v18  ;;  %2579 = vst [vmem:[#allocation17 + $0x70] sm:$0xff] %v2367_v23  ;;  %v2370_v22 = vadd.f32 %v4478_v12, %v6681_v6  ;;  %v2361_v20 = vpop.f32.mrb[79].mxu1 }
 0x31f   :  { %v5131_v52 = vpop.eup %5130  ;;  %v3337_v60 = vadd.f32 1.0, %v5129_v28  ;;  %2577 = vst [vmem:[#allocation17 + $0x60] sm:$0xff] %v2359_v37  ;;  %v2362_v34 = vadd.f32 %v6681_v6, %v2361_v20  ;;  %4679 = vmatprep.mubr.bf16.mxu1 %v3433_v41 }
 0x320   :  { %v5133_v49 = vpop.eup %5132  ;;  %v3340_v63 = vadd.f32 1.0, %v5131_v52  ;;  %2580 = vst [vmem:[#allocation17 + $0x78] sm:$0xff] %v2370_v22  ;;  %v3403_v58 = vmul.f32 %v3339_v30, %v3147_v44 }
 0x321   :  { %4680 = vmatmul.mubr.bf16.gmra.mrb[184].mxu1 %v3434_v25  ;;  %v3338_v42 = vadd.f32 1.0, %v5133_v49  ;;  %2578 = vst [vmem:[#allocation17 + $0x68] sm:$0xff] %v2362_v34  ;;  %v3401_v59 = vmul.f32 %v3337_v60, %v3145_v36 }
 0x322   :  { %v3404_v24 = vmul.f32 %v3340_v63, %v3148_v14 }
 0x323   :  { %v3402_v26 = vmul.f32 %v3338_v42, %v3146_v54  ;;  %v4481_v7 = vpop.f32.mrb[80].mxu1 }
 0x324   :  { %v2383_v38 = vadd.f32 %v4481_v7, %v6681_v6  ;;  %v2374_v3 = vpop.f32.mrb[81].mxu1  ;;  %v3436_v21 = vpack.c.bf16 %v3404_v24, %v3403_v58 }
 0x325   :  { %v2375_v19 = vadd.f32 %v6681_v6, %v2374_v3  ;;  %v4482_v13 = vpop.f32.mrb[82].mxu1  ;;  %v3435_v48 = vpack.c.bf16 %v3402_v26, %v3401_v59 }
 0x326   :  { %2583 = vst [vmem:[#allocation17 + $0x90] sm:$0xff] %v2383_v38  ;;  %v2386_v61 = vadd.f32 %v4482_v13, %v6681_v6  ;;  %v2377_v29 = vpop.f32.mrb[83].mxu1 }
 0x327   :  { %2581 = vst [vmem:[#allocation17 + $0x80] sm:$0xff] %v2375_v19  ;;  %v2378_v53 = vadd.f32 %v6681_v6, %v2377_v29  ;;  %4683 = vmatprep.mubr.bf16.mxu1 %v3435_v48 }
 0x328   :  { %2584 = vst [vmem:[#allocation17 + $0x98] sm:$0xff] %v2386_v61 }
 0x329   :  { %4684 = vmatmul.mubr.bf16.gmra.mrb[188].mxu1 %v3436_v21  ;;  %2582 = vst [vmem:[#allocation17 + $0x88] sm:$0xff] %v2378_v53 }
 0x32b   :  { %v4485_v1 = vpop.f32.mrb[84].mxu1 }
 0x32c   :  { %v2399_v33 = vadd.f32 %v4485_v1, %v6681_v6  ;;  %v2390_v27 = vpop.f32.mrb[85].mxu1 }
 0x32d   :  { %v2391_v51 = vadd.f32 %v6681_v6, %v2390_v27  ;;  %v4486_v32 = vpop.f32.mrb[86].mxu1 }
 0x32e   :  { %2587 = vst [vmem:[#allocation17 + $0xb0] sm:$0xff] %v2399_v33  ;;  %v2402_v45 = vadd.f32 %v4486_v32, %v6681_v6  ;;  %v2393_v47 = vpop.f32.mrb[87].mxu1 }
 0x32f   :  { %2585 = vst [vmem:[#allocation17 + $0xa0] sm:$0xff] %v2391_v51  ;;  %v2394_v2 = vadd.f32 %v6681_v6, %v2393_v47 }
 0x330   :  { %2588 = vst [vmem:[#allocation17 + $0xb8] sm:$0xff] %v2402_v45 }
 0x331   :  { %2586 = vst [vmem:[#allocation17 + $0xa8] sm:$0xff] %v2394_v2 }
 0x333   :  { %v4489_v9 = vpop.f32.mrb[88].mxu1 }
 0x334   :  { %v2415_v16 = vadd.f32 %v4489_v9, %v6681_v6  ;;  %v2406_v57 = vpop.f32.mrb[89].mxu1 }
 0x335   :  { %v2407_v56 = vadd.f32 %v6681_v6, %v2406_v57  ;;  %v4490_v17 = vpop.f32.mrb[90].mxu1 }
 0x336   :  { %2591 = vst [vmem:[#allocation17 + $0xd0] sm:$0xff] %v2415_v16  ;;  %v2418_v10 = vadd.f32 %v4490_v17, %v6681_v6  ;;  %v2409_v43 = vpop.f32.mrb[91].mxu1 }
 0x337   :  { %2589 = vst [vmem:[#allocation17 + $0xc0] sm:$0xff] %v2407_v56  ;;  %v2410_v62 = vadd.f32 %v6681_v6, %v2409_v43 }
 0x338   :  { %2592 = vst [vmem:[#allocation17 + $0xd8] sm:$0xff] %v2418_v10 }
 0x339   :  { %2590 = vst [vmem:[#allocation17 + $0xc8] sm:$0xff] %v2410_v62 }
 0x33b   :  { %v4493_v55 = vpop.f32.mrb[92].mxu1 }
 0x33c   :  { %v2431_v8 = vadd.f32 %v4493_v55, %v6681_v6  ;;  %v2422_v39 = vpop.f32.mrb[93].mxu1 }
 0x33d   :  { %v2423_v4 = vadd.f32 %v6681_v6, %v2422_v39  ;;  %v4494_v50 = vpop.f32.mrb[94].mxu1 }
 0x33e   :  { %2595 = vst [vmem:[#allocation17 + $0xf0] sm:$0xff] %v2431_v8  ;;  %v2434_v31 = vadd.f32 %v4494_v50, %v6681_v6  ;;  %v2425_v40 = vpop.f32.mrb[95].mxu1 }
 0x33f   :  { %2593 = vst [vmem:[#allocation17 + $0xe0] sm:$0xff] %v2423_v4  ;;  %v2426_v15 = vadd.f32 %v6681_v6, %v2425_v40 }
 0x340   :  { %2596 = vst [vmem:[#allocation17 + $0xf8] sm:$0xff] %v2434_v31 }
 0x341   :  { %2594 = vst [vmem:[#allocation17 + $0xe8] sm:$0xff] %v2426_v15 }
 0x343   :  { %v4497_v0 = vpop.f32.mrb[96].mxu1 }
 0x344   :  { %v2447_v46 = vadd.f32 %v4497_v0, %v6681_v6  ;;  %v2438_v11 = vpop.f32.mrb[97].mxu1 }
 0x345   :  { %v2439_v35 = vadd.f32 %v6681_v6, %v2438_v11  ;;  %v4498_v18 = vpop.f32.mrb[98].mxu1 }
 0x346   :  { %2599 = vst [vmem:[#allocation17 + $0x110] sm:$0xff] %v2447_v46  ;;  %v2450_v23 = vadd.f32 %v4498_v18, %v6681_v6  ;;  %v2441_v5 = vpop.f32.mrb[99].mxu1  ;;  %v6803_v46 = vld [vmem:[%s6928_s14] ss:$0 sm:$0xff] }
 0x347   :  { %2597 = vst [vmem:[#allocation17 + $0x100] sm:$0xff] %v2439_v35  ;;  %v2442_v25 = vadd.f32 %v6681_v6, %v2441_v5 }
 0x348   :  { %2600 = vst [vmem:[#allocation17 + $0x118] sm:$0xff] %v2450_v23 }
 0x349   :  { %2598 = vst [vmem:[#allocation17 + $0x108] sm:$0xff] %v2442_v25 }
 0x34b   :  { %v4501_v28 = vpop.f32.mrb[100].mxu1 }
 0x34c   :  { %v2463_v37 = vadd.f32 %v4501_v28, %v6681_v6  ;;  %v2454_v12 = vpop.f32.mrb[101].mxu1 }
 0x34d   :  { %v2455_v41 = vadd.f32 %v6681_v6, %v2454_v12  ;;  %v4502_v30 = vpop.f32.mrb[102].mxu1 }
 0x34e   :  { %2603 = vst [vmem:[#allocation17 + $0x130] sm:$0xff] %v2463_v37  ;;  %v2466_v22 = vadd.f32 %v4502_v30, %v6681_v6  ;;  %v2457_v20 = vpop.f32.mrb[103].mxu1 }
 0x34f   :  { %2601 = vst [vmem:[#allocation17 + $0x120] sm:$0xff] %v2455_v41  ;;  %v2458_v52 = vadd.f32 %v6681_v6, %v2457_v20 }
 0x350   :  { %2604 = vst [vmem:[#allocation17 + $0x138] sm:$0xff] %v2466_v22 }
 0x351   :  { %2602 = vst [vmem:[#allocation17 + $0x128] sm:$0xff] %v2458_v52 }
 0x353   :  { %v4505_v60 = vpop.f32.mrb[104].mxu1 }
 0x354   :  { %v2479_v34 = vadd.f32 %v4505_v60, %v6681_v6  ;;  %v2470_v49 = vpop.f32.mrb[105].mxu1 }
 0x355   :  { %v2471_v44 = vadd.f32 %v6681_v6, %v2470_v49  ;;  %v4506_v14 = vpop.f32.mrb[106].mxu1 }
 0x356   :  { %2607 = vst [vmem:[#allocation17 + $0x150] sm:$0xff] %v2479_v34  ;;  %v2482_v63 = vadd.f32 %v4506_v14, %v6681_v6  ;;  %v2473_v36 = vpop.f32.mrb[107].mxu1 }
 0x357   :  { %2605 = vst [vmem:[#allocation17 + $0x140] sm:$0xff] %v2471_v44  ;;  %v2474_v54 = vadd.f32 %v6681_v6, %v2473_v36 }
 0x358   :  { %2608 = vst [vmem:[#allocation17 + $0x158] sm:$0xff] %v2482_v63 }
 0x359   :  { %2606 = vst [vmem:[#allocation17 + $0x148] sm:$0xff] %v2474_v54 }
 0x35b   :  { %v4509_v42 = vpop.f32.mrb[108].mxu1 }
 0x35c   :  { %v2495_v58 = vadd.f32 %v4509_v42, %v6681_v6  ;;  %v2486_v24 = vpop.f32.mrb[109].mxu1 }
 0x35d   :  { %v2487_v59 = vadd.f32 %v6681_v6, %v2486_v24  ;;  %v4510_v26 = vpop.f32.mrb[110].mxu1 }
 0x35e   :  { %2611 = vst [vmem:[#allocation17 + $0x170] sm:$0xff] %v2495_v58  ;;  %v2498_v7 = vadd.f32 %v4510_v26, %v6681_v6  ;;  %v2489_v38 = vpop.f32.mrb[111].mxu1 }
 0x35f   :  { %2609 = vst [vmem:[#allocation17 + $0x160] sm:$0xff] %v2487_v59  ;;  %v2490_v3 = vadd.f32 %v6681_v6, %v2489_v38 }
 0x360   :  { %2612 = vst [vmem:[#allocation17 + $0x178] sm:$0xff] %v2498_v7 }
 0x361   :  { %2610 = vst [vmem:[#allocation17 + $0x168] sm:$0xff] %v2490_v3 }
 0x364   :  { %v4513_v21 = vpop.f32.mrb[112].mxu1 }
 0x365   :  { %v2511_v19 = vadd.f32 %v4513_v21, %v6681_v6  ;;  %v2502_v13 = vpop.f32.mrb[113].mxu1 }
 0x366   :  { %v2503_v48 = vadd.f32 %v6681_v6, %v2502_v13  ;;  %v4514_v61 = vpop.f32.mrb[114].mxu1 }
 0x367   :  { %2615 = vst [vmem:[#allocation17 + $0x190] sm:$0xff] %v2511_v19  ;;  %v2514_v29 = vadd.f32 %v4514_v61, %v6681_v6  ;;  %v2505_v53 = vpop.f32.mrb[115].mxu1 }
 0x368   :  { %2613 = vst [vmem:[#allocation17 + $0x180] sm:$0xff] %v2503_v48  ;;  %v2506_v1 = vadd.f32 %v6681_v6, %v2505_v53 }
 0x369   :  { %2616 = vst [vmem:[#allocation17 + $0x198] sm:$0xff] %v2514_v29 }
 0x36a   :  { %2614 = vst [vmem:[#allocation17 + $0x188] sm:$0xff] %v2506_v1 }
 0x36c   :  { %v4517_v33 = vpop.f32.mrb[116].mxu1 }
 0x36d   :  { %v2527_v27 = vadd.f32 %v4517_v33, %v6681_v6  ;;  %v2518_v51 = vpop.f32.mrb[117].mxu1 }
 0x36e   :  { %v2519_v32 = vadd.f32 %v6681_v6, %v2518_v51  ;;  %v4518_v45 = vpop.f32.mrb[118].mxu1 }
 0x36f   :  { %2619 = vst [vmem:[#allocation17 + $0x1b0] sm:$0xff] %v2527_v27  ;;  %v2530_v47 = vadd.f32 %v4518_v45, %v6681_v6  ;;  %v2521_v2 = vpop.f32.mrb[119].mxu1 }
 0x370   :  { %2617 = vst [vmem:[#allocation17 + $0x1a0] sm:$0xff] %v2519_v32  ;;  %v2522_v9 = vadd.f32 %v6681_v6, %v2521_v2 }
 0x371   :  { %2620 = vst [vmem:[#allocation17 + $0x1b8] sm:$0xff] %v2530_v47 }
 0x372   :  { %2618 = vst [vmem:[#allocation17 + $0x1a8] sm:$0xff] %v2522_v9 }
 0x374   :  { %v4521_v16 = vpop.f32.mrb[120].mxu1 }
 0x375   :  { %v2543_v57 = vadd.f32 %v4521_v16, %v6681_v6  ;;  %v2534_v56 = vpop.f32.mrb[121].mxu1 }
 0x376   :  { %v2535_v17 = vadd.f32 %v6681_v6, %v2534_v56  ;;  %v4522_v10 = vpop.f32.mrb[122].mxu1 }
 0x377   :  { %2623 = vst [vmem:[#allocation17 + $0x1d0] sm:$0xff] %v2543_v57  ;;  %v2546_v43 = vadd.f32 %v4522_v10, %v6681_v6  ;;  %v2537_v62 = vpop.f32.mrb[123].mxu1 }
 0x378   :  { %2621 = vst [vmem:[#allocation17 + $0x1c0] sm:$0xff] %v2535_v17  ;;  %v2538_v55 = vadd.f32 %v6681_v6, %v2537_v62 }
 0x379   :  { %2624 = vst [vmem:[#allocation17 + $0x1d8] sm:$0xff] %v2546_v43 }
 0x37a   :  { %2622 = vst [vmem:[#allocation17 + $0x1c8] sm:$0xff] %v2538_v55 }
 0x37c   :  { %v4525_v8 = vpop.f32.mrb[124].mxu1 }
 0x37d   :  { %v2559_v39 = vadd.f32 %v4525_v8, %v6681_v6  ;;  %v2550_v4 = vpop.f32.mrb[125].mxu1 }
 0x37e   :  { %v2551_v50 = vadd.f32 %v6681_v6, %v2550_v4  ;;  %v4526_v31 = vpop.f32.mrb[126].mxu1 }
 0x37f   :  { %2627 = vst [vmem:[#allocation17 + $0x1f0] sm:$0xff] %v2559_v39  ;;  %v2562_v40 = vadd.f32 %v4526_v31, %v6681_v6  ;;  %v2553_v15 = vpop.f32.mrb[127].mxu1 }
 0x380   :  { %2625 = vst [vmem:[#allocation17 + $0x1e0] sm:$0xff] %v2551_v50  ;;  %v2554_v0 = vadd.f32 %v6681_v6, %v2553_v15 }
 0x381   :  { %2628 = vst [vmem:[#allocation17 + $0x1f8] sm:$0xff] %v2562_v40 }
 0x382   :  { %2626 = vst [vmem:[#allocation17 + $0x1e8] sm:$0xff] %v2554_v0 }
 0x383   :  { %5326 = shalt.err (!%p5323_p12)
}
 0x384   :  { %s5327_s9 = scalar_lea.hbm %s6930_s16, 8192 }
 0x385   :  { %p5328_p13 = scmp.ne.s32.totalorder %s6930_s16, %s5327_s9  ;;  %p5331_p0 = scmp.lt.u32.totalorder %s5327_s9, %s6930_s16 }
 0x387   :  { %p5333_p1 = pnand %p5331_p0, %p5328_p13 }
 0x389   :  { %5336 = shalt.err (!%p5333_p1)
}
 0x38a   :  { %3884 = dma.vmem_to_hbm [thread:$0]  %s3879_s24, 8192, %s6930_s16, [#allocation18], %s6947_s29, %s6947_s29, %s6946_s7   ;;  %v4625_v6 = vpop.f32.mrb[128].mxu1 }
 0x38b   :  { %v3551_v11 = vadd.f32 %v4625_v6, %v6803_v46  ;;  %v3542_v35 = vpop.f32.mrb[129].mxu1  ;;  %s5337_s21 = scalar_lea.vmem %s3867_s3, 8192  ;;  %p5342_p3 = scmp.lt.s32.totalorder %s3867_s3, %s3867_s3 }
 0x38c   :  { %p5338_p2 = scmp.ne.s32.totalorder %s3867_s3, %s5337_s21  ;;  %p5343_p4 = scmp.lt.s32.totalorder %s5337_s21, %s5337_s21 }
 0x38e   :  { %p5344_p5 = por %p5343_p4, %p5342_p3 }
 0x390   :  { %p5345_p6 = pnand %p5344_p5, %p5338_p2 }
 0x392   :  { %5348 = shalt.err (!%p5345_p6)
}
 0x393   :  { %s5349_s28 = scalar_lea.hbm %s6929_s15, 8192 }
 0x394   :  { %p5350_p7 = scmp.ne.s32.totalorder %s6929_s15, %s5349_s28  ;;  %p5353_p8 = scmp.lt.u32.totalorder %s5349_s28, %s6929_s15 }
 0x396   :  { %p5355_p9 = pnand %p5353_p8, %p5350_p7 }
 0x398   :  { %5358 = shalt.err (!%p5355_p9)
}
 0x399   :  { %3872 = dma.vmem_to_hbm [thread:$0]  %s3867_s3, 8192, %s6929_s15, [#allocation4], %s6947_s29, %s6947_s29, %s6946_s7   ;;  %v3543_v18 = vadd.f32 %v6803_v46, %v3542_v35  ;;  %v4626_v23 = vpop.f32.mrb[130].mxu1  ;;  %3799 = vst [vmem:[#allocation19 + $0x10] sm:$0xff] %v3551_v11 }
 0x39a   :  { %v3554_v5 = vadd.f32 %v4626_v23, %v6803_v46  ;;  %v3545_v25 = vpop.f32.mrb[131].mxu1  ;;  %s5409_s15 = smov [#allocation19]  }
 0x39b   :  { %3797 = vst [vmem:[#allocation19] sm:$0xff] %v3543_v18  ;;  %v3546_v28 = vadd.f32 %v6803_v46, %v3545_v25  ;;  %v4629_v37 = vpop.f32.mrb[132].mxu1  ;;  %s3890_s12 = sshll.u32 %s5409_s15, 4  ;;  %s3891_s12 = int_to_ptr.vmem [resolvable:$true] %s3890_s12 }
 0x39c   :  { %3800 = vst [vmem:[#allocation19 + $0x18] sm:$0xff] %v3554_v5  ;;  %v3567_v12 = vadd.f32 %v4629_v37, %v6803_v46  ;;  %v3558_v41 = vpop.f32.mrb[133].mxu1  ;;  %s5359_s19 = scalar_lea.vmem %s3891_s12, 8192  ;;  %p5364_p11 = scmp.lt.s32.totalorder %s3891_s12, %s3891_s12 }
 0x39d   :  { %3798 = vst [vmem:[#allocation19 + $0x8] sm:$0xff] %v3546_v28  ;;  %v3559_v30 = vadd.f32 %v6803_v46, %v3558_v41  ;;  %v4630_v22 = vpop.f32.mrb[134].mxu1  ;;  %p5360_p10 = scmp.ne.s32.totalorder %s3891_s12, %s5359_s19  ;;  %p5365_p12 = scmp.lt.s32.totalorder %s5359_s19, %s5359_s19 }
 0x39e   :  { %3803 = vst [vmem:[#allocation19 + $0x30] sm:$0xff] %v3567_v12  ;;  %v3570_v20 = vadd.f32 %v4630_v22, %v6803_v46  ;;  %v3561_v52 = vpop.f32.mrb[135].mxu1 }
 0x39f   :  { %3801 = vst [vmem:[#allocation19 + $0x20] sm:$0xff] %v3559_v30  ;;  %v3562_v60 = vadd.f32 %v6803_v46, %v3561_v52  ;;  %v4633_v34 = vpop.f32.mrb[136].mxu1  ;;  %p5366_p13 = por %p5365_p12, %p5364_p11 }
 0x3a0   :  { %3804 = vst [vmem:[#allocation19 + $0x38] sm:$0xff] %v3570_v20  ;;  %v3583_v49 = vadd.f32 %v4633_v34, %v6803_v46  ;;  %v3574_v44 = vpop.f32.mrb[137].mxu1 }
 0x3a1   :  { %3802 = vst [vmem:[#allocation19 + $0x28] sm:$0xff] %v3562_v60  ;;  %v3575_v14 = vadd.f32 %v6803_v46, %v3574_v44  ;;  %v4634_v63 = vpop.f32.mrb[138].mxu1  ;;  %p5367_p0 = pnand %p5366_p13, %p5360_p10 }
 0x3a2   :  { %3807 = vst [vmem:[#allocation19 + $0x50] sm:$0xff] %v3583_v49  ;;  %v3586_v36 = vadd.f32 %v4634_v63, %v6803_v46  ;;  %v3577_v54 = vpop.f32.mrb[139].mxu1 }
 0x3a3   :  { %3805 = vst [vmem:[#allocation19 + $0x40] sm:$0xff] %v3575_v14  ;;  %v3578_v42 = vadd.f32 %v6803_v46, %v3577_v54  ;;  %v4637_v58 = vpop.f32.mrb[140].mxu1 }
 0x3a4   :  { %3808 = vst [vmem:[#allocation19 + $0x58] sm:$0xff] %v3586_v36  ;;  %v3599_v24 = vadd.f32 %v4637_v58, %v6803_v46  ;;  %v3590_v59 = vpop.f32.mrb[141].mxu1 }
 0x3a5   :  { %3806 = vst [vmem:[#allocation19 + $0x48] sm:$0xff] %v3578_v42  ;;  %v3591_v26 = vadd.f32 %v6803_v46, %v3590_v59  ;;  %v4638_v7 = vpop.f32.mrb[142].mxu1 }
 0x3a6   :  { %3811 = vst [vmem:[#allocation19 + $0x70] sm:$0xff] %v3599_v24  ;;  %v3602_v38 = vadd.f32 %v4638_v7, %v6803_v46  ;;  %v3593_v3 = vpop.f32.mrb[143].mxu1 }
 0x3a7   :  { %3809 = vst [vmem:[#allocation19 + $0x60] sm:$0xff] %v3591_v26  ;;  %v3594_v21 = vadd.f32 %v6803_v46, %v3593_v3  ;;  %v4641_v19 = vpop.f32.mrb[144].mxu1 }
 0x3a8   :  { %3812 = vst [vmem:[#allocation19 + $0x78] sm:$0xff] %v3602_v38  ;;  %v3615_v13 = vadd.f32 %v4641_v19, %v6803_v46  ;;  %v3606_v48 = vpop.f32.mrb[145].mxu1 }
 0x3a9   :  { %3810 = vst [vmem:[#allocation19 + $0x68] sm:$0xff] %v3594_v21  ;;  %v3607_v61 = vadd.f32 %v6803_v46, %v3606_v48  ;;  %v4642_v29 = vpop.f32.mrb[146].mxu1 }
 0x3aa   :  { %3815 = vst [vmem:[#allocation19 + $0x90] sm:$0xff] %v3615_v13  ;;  %v3618_v53 = vadd.f32 %v4642_v29, %v6803_v46  ;;  %v3609_v1 = vpop.f32.mrb[147].mxu1 }
 0x3ab   :  { %3813 = vst [vmem:[#allocation19 + $0x80] sm:$0xff] %v3607_v61  ;;  %v3610_v33 = vadd.f32 %v6803_v46, %v3609_v1 }
 0x3ac   :  { %3816 = vst [vmem:[#allocation19 + $0x98] sm:$0xff] %v3618_v53  ;;  %v4645_v27 = vpop.f32.mrb[148].mxu1 }
 0x3ad   :  { %3814 = vst [vmem:[#allocation19 + $0x88] sm:$0xff] %v3610_v33  ;;  %v3631_v51 = vadd.f32 %v4645_v27, %v6803_v46  ;;  %v3622_v32 = vpop.f32.mrb[149].mxu1 }
 0x3ae   :  { %v3623_v45 = vadd.f32 %v6803_v46, %v3622_v32  ;;  %v4646_v47 = vpop.f32.mrb[150].mxu1 }
 0x3af   :  { %3819 = vst [vmem:[#allocation19 + $0xb0] sm:$0xff] %v3631_v51  ;;  %v3634_v2 = vadd.f32 %v4646_v47, %v6803_v46  ;;  %v3625_v9 = vpop.f32.mrb[151].mxu1 }
 0x3b0   :  { %3817 = vst [vmem:[#allocation19 + $0xa0] sm:$0xff] %v3623_v45  ;;  %v3626_v16 = vadd.f32 %v6803_v46, %v3625_v9 }
 0x3b1   :  { %3820 = vst [vmem:[#allocation19 + $0xb8] sm:$0xff] %v3634_v2 }
 0x3b2   :  { %3818 = vst [vmem:[#allocation19 + $0xa8] sm:$0xff] %v3626_v16 }
 0x3b4   :  { %v4649_v57 = vpop.f32.mrb[152].mxu1 }
 0x3b5   :  { %v3647_v56 = vadd.f32 %v4649_v57, %v6803_v46  ;;  %v3638_v17 = vpop.f32.mrb[153].mxu1 }
 0x3b6   :  { %v3639_v10 = vadd.f32 %v6803_v46, %v3638_v17  ;;  %v4650_v43 = vpop.f32.mrb[154].mxu1 }
 0x3b7   :  { %3823 = vst [vmem:[#allocation19 + $0xd0] sm:$0xff] %v3647_v56  ;;  %v3650_v62 = vadd.f32 %v4650_v43, %v6803_v46  ;;  %v3641_v55 = vpop.f32.mrb[155].mxu1 }
 0x3b8   :  { %3821 = vst [vmem:[#allocation19 + $0xc0] sm:$0xff] %v3639_v10  ;;  %v3642_v8 = vadd.f32 %v6803_v46, %v3641_v55 }
 0x3b9   :  { %3824 = vst [vmem:[#allocation19 + $0xd8] sm:$0xff] %v3650_v62 }
 0x3ba   :  { %3822 = vst [vmem:[#allocation19 + $0xc8] sm:$0xff] %v3642_v8 }
 0x3bc   :  { %v4653_v39 = vpop.f32.mrb[156].mxu1 }
 0x3bd   :  { %v3663_v4 = vadd.f32 %v4653_v39, %v6803_v46  ;;  %v3654_v50 = vpop.f32.mrb[157].mxu1 }
 0x3be   :  { %v3655_v31 = vadd.f32 %v6803_v46, %v3654_v50  ;;  %v4654_v40 = vpop.f32.mrb[158].mxu1 }
 0x3bf   :  { %3827 = vst [vmem:[#allocation19 + $0xf0] sm:$0xff] %v3663_v4  ;;  %v3666_v15 = vadd.f32 %v4654_v40, %v6803_v46  ;;  %v3657_v0 = vpop.f32.mrb[159].mxu1 }
 0x3c0   :  { %3825 = vst [vmem:[#allocation19 + $0xe0] sm:$0xff] %v3655_v31  ;;  %v3658_v6 = vadd.f32 %v6803_v46, %v3657_v0 }
 0x3c1   :  { %3828 = vst [vmem:[#allocation19 + $0xf8] sm:$0xff] %v3666_v15 }
 0x3c2   :  { %3826 = vst [vmem:[#allocation19 + $0xe8] sm:$0xff] %v3658_v6 }
 0x3c4   :  { %v4657_v11 = vpop.f32.mrb[160].mxu1 }
 0x3c5   :  { %v3679_v35 = vadd.f32 %v4657_v11, %v6803_v46  ;;  %v3670_v18 = vpop.f32.mrb[161].mxu1 }
 0x3c6   :  { %v3671_v23 = vadd.f32 %v6803_v46, %v3670_v18  ;;  %v4658_v5 = vpop.f32.mrb[162].mxu1 }
 0x3c7   :  { %3831 = vst [vmem:[#allocation19 + $0x110] sm:$0xff] %v3679_v35  ;;  %v3682_v25 = vadd.f32 %v4658_v5, %v6803_v46  ;;  %v3673_v28 = vpop.f32.mrb[163].mxu1 }
 0x3c8   :  { %3829 = vst [vmem:[#allocation19 + $0x100] sm:$0xff] %v3671_v23  ;;  %v3674_v37 = vadd.f32 %v6803_v46, %v3673_v28 }
 0x3c9   :  { %3832 = vst [vmem:[#allocation19 + $0x118] sm:$0xff] %v3682_v25 }
 0x3ca   :  { %3830 = vst [vmem:[#allocation19 + $0x108] sm:$0xff] %v3674_v37 }
 0x3cc   :  { %v4661_v12 = vpop.f32.mrb[164].mxu1 }
 0x3cd   :  { %v3695_v41 = vadd.f32 %v4661_v12, %v6803_v46  ;;  %v3686_v30 = vpop.f32.mrb[165].mxu1 }
 0x3ce   :  { %v3687_v22 = vadd.f32 %v6803_v46, %v3686_v30  ;;  %v4662_v20 = vpop.f32.mrb[166].mxu1 }
 0x3cf   :  { %3835 = vst [vmem:[#allocation19 + $0x130] sm:$0xff] %v3695_v41  ;;  %v3698_v52 = vadd.f32 %v4662_v20, %v6803_v46  ;;  %v3689_v60 = vpop.f32.mrb[167].mxu1 }
 0x3d0   :  { %3833 = vst [vmem:[#allocation19 + $0x120] sm:$0xff] %v3687_v22  ;;  %v3690_v34 = vadd.f32 %v6803_v46, %v3689_v60 }
 0x3d1   :  { %3836 = vst [vmem:[#allocation19 + $0x138] sm:$0xff] %v3698_v52 }
 0x3d2   :  { %3834 = vst [vmem:[#allocation19 + $0x128] sm:$0xff] %v3690_v34 }
 0x3d4   :  { %v4665_v49 = vpop.f32.mrb[168].mxu1 }
 0x3d5   :  { %v3711_v44 = vadd.f32 %v4665_v49, %v6803_v46  ;;  %v3702_v14 = vpop.f32.mrb[169].mxu1 }
 0x3d6   :  { %v3703_v63 = vadd.f32 %v6803_v46, %v3702_v14  ;;  %v4666_v36 = vpop.f32.mrb[170].mxu1 }
 0x3d7   :  { %3839 = vst [vmem:[#allocation19 + $0x150] sm:$0xff] %v3711_v44  ;;  %v3714_v54 = vadd.f32 %v4666_v36, %v6803_v46  ;;  %v3705_v42 = vpop.f32.mrb[171].mxu1 }
 0x3d8   :  { %3837 = vst [vmem:[#allocation19 + $0x140] sm:$0xff] %v3703_v63  ;;  %v3706_v58 = vadd.f32 %v6803_v46, %v3705_v42 }
 0x3d9   :  { %3840 = vst [vmem:[#allocation19 + $0x158] sm:$0xff] %v3714_v54 }
 0x3da   :  { %3838 = vst [vmem:[#allocation19 + $0x148] sm:$0xff] %v3706_v58 }
 0x3dc   :  { %v4669_v24 = vpop.f32.mrb[172].mxu1 }
 0x3dd   :  { %v3727_v59 = vadd.f32 %v4669_v24, %v6803_v46  ;;  %v3718_v26 = vpop.f32.mrb[173].mxu1 }
 0x3de   :  { %v3719_v7 = vadd.f32 %v6803_v46, %v3718_v26  ;;  %v4670_v38 = vpop.f32.mrb[174].mxu1 }
 0x3df   :  { %3843 = vst [vmem:[#allocation19 + $0x170] sm:$0xff] %v3727_v59  ;;  %v3730_v3 = vadd.f32 %v4670_v38, %v6803_v46  ;;  %v3721_v21 = vpop.f32.mrb[175].mxu1 }
 0x3e0   :  { %3841 = vst [vmem:[#allocation19 + $0x160] sm:$0xff] %v3719_v7  ;;  %v3722_v19 = vadd.f32 %v6803_v46, %v3721_v21 }
 0x3e1   :  { %3844 = vst [vmem:[#allocation19 + $0x178] sm:$0xff] %v3730_v3 }
 0x3e2   :  { %3842 = vst [vmem:[#allocation19 + $0x168] sm:$0xff] %v3722_v19 }
 0x3e4   :  { %v4673_v13 = vpop.f32.mrb[176].mxu1 }
 0x3e5   :  { %v3743_v48 = vadd.f32 %v4673_v13, %v6803_v46  ;;  %v3734_v61 = vpop.f32.mrb[177].mxu1 }
 0x3e6   :  { %v3735_v29 = vadd.f32 %v6803_v46, %v3734_v61  ;;  %v4674_v53 = vpop.f32.mrb[178].mxu1 }
 0x3e7   :  { %3847 = vst [vmem:[#allocation19 + $0x190] sm:$0xff] %v3743_v48  ;;  %v3746_v1 = vadd.f32 %v4674_v53, %v6803_v46  ;;  %v3737_v33 = vpop.f32.mrb[179].mxu1 }
 0x3e8   :  { %3845 = vst [vmem:[#allocation19 + $0x180] sm:$0xff] %v3735_v29  ;;  %v3738_v27 = vadd.f32 %v6803_v46, %v3737_v33 }
 0x3e9   :  { %3848 = vst [vmem:[#allocation19 + $0x198] sm:$0xff] %v3746_v1 }
 0x3ea   :  { %3846 = vst [vmem:[#allocation19 + $0x188] sm:$0xff] %v3738_v27 }
 0x3ec   :  { %v4677_v51 = vpop.f32.mrb[180].mxu1 }
 0x3ed   :  { %v3759_v32 = vadd.f32 %v4677_v51, %v6803_v46  ;;  %v3750_v45 = vpop.f32.mrb[181].mxu1 }
 0x3ee   :  { %v3751_v47 = vadd.f32 %v6803_v46, %v3750_v45  ;;  %v4678_v2 = vpop.f32.mrb[182].mxu1 }
 0x3ef   :  { %3851 = vst [vmem:[#allocation19 + $0x1b0] sm:$0xff] %v3759_v32  ;;  %v3762_v9 = vadd.f32 %v4678_v2, %v6803_v46  ;;  %v3753_v16 = vpop.f32.mrb[183].mxu1 }
 0x3f0   :  { %3849 = vst [vmem:[#allocation19 + $0x1a0] sm:$0xff] %v3751_v47  ;;  %v3754_v57 = vadd.f32 %v6803_v46, %v3753_v16 }
 0x3f1   :  { %3852 = vst [vmem:[#allocation19 + $0x1b8] sm:$0xff] %v3762_v9 }
 0x3f2   :  { %3850 = vst [vmem:[#allocation19 + $0x1a8] sm:$0xff] %v3754_v57 }
 0x3f4   :  { %v4681_v56 = vpop.f32.mrb[184].mxu1 }
 0x3f5   :  { %v3775_v17 = vadd.f32 %v4681_v56, %v6803_v46  ;;  %v3766_v10 = vpop.f32.mrb[185].mxu1 }
 0x3f6   :  { %v3767_v43 = vadd.f32 %v6803_v46, %v3766_v10  ;;  %v4682_v62 = vpop.f32.mrb[186].mxu1 }
 0x3f7   :  { %3855 = vst [vmem:[#allocation19 + $0x1d0] sm:$0xff] %v3775_v17  ;;  %v3778_v55 = vadd.f32 %v4682_v62, %v6803_v46  ;;  %v3769_v8 = vpop.f32.mrb[187].mxu1 }
 0x3f8   :  { %3853 = vst [vmem:[#allocation19 + $0x1c0] sm:$0xff] %v3767_v43  ;;  %v3770_v39 = vadd.f32 %v6803_v46, %v3769_v8 }
 0x3f9   :  { %3856 = vst [vmem:[#allocation19 + $0x1d8] sm:$0xff] %v3778_v55 }
 0x3fa   :  { %3854 = vst [vmem:[#allocation19 + $0x1c8] sm:$0xff] %v3770_v39 }
 0x3fc   :  { %v4685_v4 = vpop.f32.mrb[188].mxu1 }
 0x3fd   :  { %v3791_v50 = vadd.f32 %v4685_v4, %v6803_v46  ;;  %v3782_v31 = vpop.f32.mrb[189].mxu1 }
 0x3fe   :  { %v3783_v40 = vadd.f32 %v6803_v46, %v3782_v31  ;;  %v4686_v15 = vpop.f32.mrb[190].mxu1 }
 0x3ff   :  { %3859 = vst [vmem:[#allocation19 + $0x1f0] sm:$0xff] %v3791_v50  ;;  %v3794_v0 = vadd.f32 %v4686_v15, %v6803_v46  ;;  %v3785_v6 = vpop.f32.mrb[191].mxu1 }
 0x400   :  { %3857 = vst [vmem:[#allocation19 + $0x1e0] sm:$0xff] %v3783_v40  ;;  %v3786_v11 = vadd.f32 %v6803_v46, %v3785_v6 }
 0x401   :  { %3860 = vst [vmem:[#allocation19 + $0x1f8] sm:$0xff] %v3794_v0 }
 0x402   :  { %3858 = vst [vmem:[#allocation19 + $0x1e8] sm:$0xff] %v3786_v11 }
 0x403   :  { %5370 = shalt.err (!%p5367_p0)
}
 0x404   :  { %s6949_s1 = sld [smem:[#allocation29_spill]] }
 0x40a   :  { %s5371_s20 = scalar_lea.hbm %s6949_s1, 8192 }
 0x40b   :  { %p5372_p1 = scmp.ne.s32.totalorder %s6949_s1, %s5371_s20  ;;  %p5375_p2 = scmp.lt.u32.totalorder %s5371_s20, %s6949_s1 }
 0x40d   :  { %p5377_p3 = pnand %p5375_p2, %p5372_p1 }
 0x40f   :  { %5380 = shalt.err (!%p5377_p3)
}
 0x410   :  { %3896 = dma.vmem_to_hbm [thread:$0]  %s3891_s12, 8192, %s6949_s1, [#allocation18], %s6947_s29, %s6947_s29, %s6946_s7  }
 0x411   :  { %5391 = dma.done.wait [#allocation4], 8192  }
 0x412   :  { %5392 = vsyncadd [#allocation4], 4294959104 }
 0x413   :  { %5393 = dma.done.wait [#allocation18], 16384  }
 0x414   :  { %5394 = vsyncadd [#allocation18], 4294950912 }
 0x415   :  { %3906 = vsyncpa [#allocation3], 1 }
 0x416   :  { %3907 = vsyncpa [#allocation6], 1 }
 0x417   :  { %3908 = vsyncpa [#allocation9], 1 }
 0x418   :  { %3909 = vsyncpa [#allocation12], 1 }
 0x419   :  { %3910 = vsyncpa [#allocation15], 1 }
 0x41a   :  { %3911 = vsyncpa [#allocation4], 1 }
 0x41b   :  { %3912 = vsyncpa [#allocation18], 1 }

</bundles_post_ra>
